<compile_context>
chip_gen: v7x
topology: tpu7x:2x2x1
jax: 0.10.0
libtpu: 0.0.40
codegen_flags: <defaults>
</compile_context>

<pallas_src>
import functools

import jax
import jax.numpy as jnp
from jax.experimental import pallas as pl
from jax.experimental.pallas import tpu as pltpu

EPS_BN = 1e-5     # nn.BatchNorm1d default eps
EPS_COS = 1e-8    # F.cosine_similarity default eps

_VMEM = pl.BlockSpec(memory_space=pltpu.MemorySpace.VMEM)

_W = 64            # padded feature width (= projector out_dim)
_ENC_KPAD = 8      # encoder input channels padded 3 -> 8 (MXU-friendly K)

# ---- parameter-slab row offsets (matrix blocks start at multiples of 8) ----
_R_EW = 0                      # [8,  W]  encoder weight (real [3, 32])
_R_P1W = 8                     # [64, W]  (real [32, 64], rows 32:63 zero)
_R_P2W = 72                    # [64, W]
_R_P3W = 136                   # [64, W]
_R_H1W = 200                   # [64, W]  (real cols 0:32)
_R_H2W = 264                   # [64, W]  (real rows 0:32)
_R_VEC = 328                   # bias / BN-gamma / BN-beta rows start here
_V_EB = _R_VEC + 0
_V_P1B, _V_P1G, _V_P1BT = _R_VEC + 1, _R_VEC + 2, _R_VEC + 3
_V_P2B, _V_P2G, _V_P2BT = _R_VEC + 4, _R_VEC + 5, _R_VEC + 6
_V_P3B, _V_P3G, _V_P3BT = _R_VEC + 7, _R_VEC + 8, _R_VEC + 9
_V_H1B, _V_H1G, _V_H1BT = _R_VEC + 10, _R_VEC + 11, _R_VEC + 12
_V_H2B = _R_VEC + 13
_SLAB_ROWS = _R_VEC + 16       # 344 rows (multiple of 8)


# ---------------------------------------------------------------------------
# Fused kernel: encoder + projector + predictor + loss, both branches at once.
# ---------------------------------------------------------------------------
def _simsiam_fused_kernel(x1_ref, x2_ref, prm_ref, loss_ref, xpad_ref,
                          *, batch, n_pts):
    rows = batch * n_pts            # flattened points per branch
    two_b = 2 * batch

    def vrow(r):                    # [1, W] bias / gamma / beta row
        return prm_ref[r:r + 1, :]

    def wmat(r0, nrows=_W):         # sublane-aligned static weight slice
        return prm_ref[r0:r0 + nrows, :]

    # ---- encoder input: channel-pad 3 -> 8 into VMEM scratch, branches stacked ----
    xpad_ref[...] = jnp.zeros_like(xpad_ref)
    xpad_ref[0:rows, 0:3] = x1_ref[...]
    xpad_ref[rows:2 * rows, 0:3] = x2_ref[...]

    # ---- encoder stand-in: per-point Linear(3->32) + ReLU + max-pool over N ----
    # One [2BN, 8] x [8, W] MXU matmul for both branches; bias + ReLU hoisted past
    # the max-pool (exact: bias is N-invariant, ReLU monotone).
    h = jnp.dot(xpad_ref[...], wmat(_R_EW, _ENC_KPAD),
                preferred_element_type=jnp.float32)            # [2BN, W]
    feat = jnp.max(h.reshape(two_b, n_pts, _W), axis=1)        # [2B, W]
    feat = jnp.maximum(feat + vrow(_V_EB), 0.0)

    def dense(x, r0, b_row):
        return jnp.dot(x, wmat(r0), preferred_element_type=jnp.float32) + vrow(b_row)

    def bn(y, g_row, bt_row):
        # Training-mode BatchNorm1d (biased batch variance) with PER-BRANCH stats:
        # view [2B, W] as [2, B, W] (B = 8 = one sublane tile -> layout-free) so the
        # fused 2B-row matmuls keep the semantics of separate f(x1), f(x2).
        y3 = y.reshape(2, batch, _W)
        m = jnp.mean(y3, axis=1, keepdims=True)
        v = jnp.mean((y3 - m) ** 2, axis=1, keepdims=True)
        yn = ((y3 - m) * jax.lax.rsqrt(v + EPS_BN)).reshape(two_b, _W)
        return yn * vrow(g_row) + vrow(bt_row)

    # ---- projection_MLP: (Linear+BN+ReLU) x2, then Linear+BN ----
    y = jnp.maximum(bn(dense(feat, _R_P1W, _V_P1B), _V_P1G, _V_P1BT), 0.0)
    y = jnp.maximum(bn(dense(y,    _R_P2W, _V_P2B), _V_P2G, _V_P2BT), 0.0)
    z = bn(dense(y, _R_P3W, _V_P3B), _V_P3G, _V_P3BT)          # [2B, W]

    # ---- prediction_MLP: Linear+BN+ReLU, then plain Linear ----
    y = jnp.maximum(bn(dense(z, _R_H1W, _V_H1B), _V_H1G, _V_H1BT), 0.0)
    p = dense(y, _R_H2W, _V_H2B)                               # [2B, W]

    # ---- loss = D(p1, z2)/2 + D(p2, z1)/2,  D = -mean(cosine_similarity) ----
    # Swap the branch halves of z with a sublane roll so ONE pass of lane reductions
    # over all 2B rows covers both terms.  .detach() is forward-identity here.
    z_sw = pltpu.roll(z, shift=batch, axis=0)                  # [z2 ; z1]
    dots = jnp.sum(p * z_sw, axis=-1, keepdims=True)           # [2B, 1]
    pn = jnp.maximum(jnp.sqrt(jnp.sum(p * p, axis=-1, keepdims=True)), EPS_COS)
    zn = jnp.maximum(jnp.sqrt(jnp.sum(z_sw * z_sw, axis=-1, keepdims=True)), EPS_COS)
    # NOTE: clamps each norm separately (current F.cosine_similarity behaviour);
    # differs from older torch only if both norms are ~1e-8.
    cos = dots * pl.reciprocal(pn * zn, approx=True)
    loss_ref[...] = -jnp.sum(cos, axis=0, keepdims=True) * (0.5 / batch)


# ---------------------------------------------------------------------------
# Wrapper: one pallas_call for the whole forward pass (3 operands in, scalar out).
# ---------------------------------------------------------------------------
def point_simsiam_forward(x1, x2, params):
    B, N, C = x1.shape
    assert C == 3 and B % 8 == 0 and N % 8 == 0, "expect [B,N,3], B and N % 8 == 0"
    x1f = x1.reshape(B * N, C)          # contiguous reshape: free, no HBM copy
    x2f = x2.reshape(B * N, C)
    kernel = functools.partial(_simsiam_fused_kernel, batch=B, n_pts=N)
    loss = pl.pallas_call(
        kernel,
        out_shape=jax.ShapeDtypeStruct((1, 1), jnp.float32),
        in_specs=[_VMEM, _VMEM, _VMEM],
        out_specs=_VMEM,
        scratch_shapes=[pltpu.VMEM((2 * B * N, _ENC_KPAD), jnp.float32)],
    )(x1f, x2f, params["slab"])
    return loss[0, 0]


# ---------------------------------------------------------------------------
# Deterministic parameter init: builds the single packed slab (host side, once).
# ---------------------------------------------------------------------------
def init_params(key, enc_dim=32, pred_hidden=32):
    proj_dim = _W
    ks = jax.random.split(key, 12)

    def lin(kw, kb, din, dout):
        bound = 1.0 / jnp.sqrt(jnp.float32(din))
        w = jax.random.uniform(kw, (din, dout), jnp.float32, -bound, bound)
        b = jax.random.uniform(kb, (1, dout), jnp.float32, -bound, bound)
        return w, b

    e_w,  e_b  = lin(ks[0],  ks[1],  3, enc_dim)
    p1_w, p1_b = lin(ks[2],  ks[3],  enc_dim, proj_dim)
    p2_w, p2_b = lin(ks[4],  ks[5],  proj_dim, proj_dim)
    p3_w, p3_b = lin(ks[6],  ks[7],  proj_dim, proj_dim)
    h1_w, h1_b = lin(ks[8],  ks[9],  proj_dim, pred_hidden)
    h2_w, h2_b = lin(ks[10], ks[11], pred_hidden, proj_dim)

    def padw(w, nrows):   # zero-pad a weight block to [nrows, _W]
        return jnp.pad(w, ((0, nrows - w.shape[0]), (0, _W - w.shape[1])))

    def padv(v):          # zero-pad bias/beta rows (padded channels stay exactly 0)
        return jnp.pad(v, ((0, 0), (0, _W - v.shape[1])))

    one = jnp.ones((1, _W), jnp.float32)
    zero = jnp.zeros((1, _W), jnp.float32)

    slab = jnp.concatenate(
        [padw(e_w, 8),                                      # _R_EW
         padw(p1_w, _W), padw(p2_w, _W), padw(p3_w, _W),    # projector weights
         padw(h1_w, _W), padw(h2_w, _W),                    # predictor weights
         padv(e_b),                                         # _V_EB
         padv(p1_b), one, zero,                             # p1: bias, gamma, beta
         padv(p2_b), one, zero,                             # p2
         padv(p3_b), one, zero,                             # p3
         padv(h1_b), one, zero,                             # h1
         padv(h2_b),                                        # h2 bias
         zero, zero],                                       # pad rows -> 344
        axis=0)
    assert slab.shape == (_SLAB_ROWS, _W)
    return {"slab": slab}


if __name__ == "__main__":
    key = jax.random.PRNGKey(0)
    kx1, kx2, kp = jax.random.split(key, 3)
    B, N = 8, 64
    x1 = jax.random.normal(kx1, (B, N, 3), jnp.float32)
    x2 = jax.random.normal(kx2, (B, N, 3), jnp.float32)
    params = init_params(kp)

    loss = jax.jit(point_simsiam_forward)(x1, x2, params)
    jax.block_until_ready(loss)
    print("KERNEL_OK")
</pallas_src>

<mosaic_0001>
module attributes {stable_mosaic.version = 11 : i64} {
  func.func @_simsiam_fused_kernel(%arg0: memref<512x3xf32, #tpu.memory_space<vmem>>, %arg1: memref<512x3xf32, #tpu.memory_space<vmem>>, %arg2: memref<344x64xf32, #tpu.memory_space<vmem>>, %arg3: memref<1x1xf32, #tpu.memory_space<vmem>>, %arg4: memref<1024x8xf32, #tpu.memory_space<vmem>>) attributes {dimension_semantics = [], scalar_prefetch = 0 : i64, scratch_operands = 1 : i64, tpu.core_type = #tpu.core_type<tc>} {
    %cst = arith.constant 0.000000e+00 : f32
    %0 = vector.broadcast %cst : f32 to vector<1024x8xf32>
    %c0 = arith.constant 0 : index
    %c0_0 = arith.constant 0 : index
    %1 = vector.load %arg4[%c0, %c0_0] : memref<1024x8xf32, #tpu.memory_space<vmem>>, vector<1024x8xf32>
    tpu.vector_store %arg4[%c0, %c0_0], %0 {strides = array<i32>} : memref<1024x8xf32, #tpu.memory_space<vmem>>, vector<1024x8xf32>,
    %c0_1 = arith.constant 0 : index
    %c0_2 = arith.constant 0 : index
    %2 = vector.load %arg0[%c0_1, %c0_2] : memref<512x3xf32, #tpu.memory_space<vmem>>, vector<512x3xf32>
    %c0_3 = arith.constant 0 : index
    %c0_4 = arith.constant 0 : index
    %3 = vector.load %arg4[%c0_3, %c0_4] : memref<1024x8xf32, #tpu.memory_space<vmem>>, vector<512x3xf32>
    tpu.vector_store %arg4[%c0_3, %c0_4], %2 {strides = array<i32>} : memref<1024x8xf32, #tpu.memory_space<vmem>>, vector<512x3xf32>,
    %c0_5 = arith.constant 0 : index
    %c0_6 = arith.constant 0 : index
    %4 = vector.load %arg1[%c0_5, %c0_6] : memref<512x3xf32, #tpu.memory_space<vmem>>, vector<512x3xf32>
    %c512 = arith.constant 512 : index
    %c0_7 = arith.constant 0 : index
    %5 = vector.load %arg4[%c512, %c0_7] : memref<1024x8xf32, #tpu.memory_space<vmem>>, vector<512x3xf32>
    tpu.vector_store %arg4[%c512, %c0_7], %4 {strides = array<i32>} : memref<1024x8xf32, #tpu.memory_space<vmem>>, vector<512x3xf32>,
    %c0_8 = arith.constant 0 : index
    %c0_9 = arith.constant 0 : index
    %6 = vector.load %arg4[%c0_8, %c0_9] : memref<1024x8xf32, #tpu.memory_space<vmem>>, vector<1024x8xf32>
    %c0_10 = arith.constant 0 : index
    %c0_11 = arith.constant 0 : index
    %7 = vector.load %arg2[%c0_10, %c0_11] : memref<344x64xf32, #tpu.memory_space<vmem>>, vector<8x64xf32>
    %cst_12 = arith.constant dense<0.000000e+00> : vector<1024x64xf32>
    %8 = tpu.matmul %6, %7, %cst_12 {dimension_numbers = #tpu.dot_dimension_numbers<[1], [0], [0], [1], [0, 0, 1, 1], [], []>} : vector<1024x8xf32>, vector<8x64xf32>, vector<1024x64xf32> -> vector<1024x64xf32>
    %9 = vector.shape_cast %8 : vector<1024x64xf32> to vector<16x64x64xf32>
    %cst_13 = arith.constant dense<0xFF800000> : vector<16x64xf32>
    %10 = vector.multi_reduction <maximumf>, %9, %cst_13 [1] : vector<16x64x64xf32> to vector<16x64xf32>
    %c328 = arith.constant 328 : index
    %c0_14 = arith.constant 0 : index
    %11 = vector.load %arg2[%c328, %c0_14] : memref<344x64xf32, #tpu.memory_space<vmem>>, vector<1x64xf32>
    %12 = vector.broadcast %11 : vector<1x64xf32> to vector<16x64xf32>
    %13 = arith.addf %10, %12 : vector<16x64xf32>
    %cst_15 = arith.constant 0.000000e+00 : f32
    %14 = vector.broadcast %cst_15 : f32 to vector<16x64xf32>
    %15 = arith.maximumf %13, %14 : vector<16x64xf32>
    %c8 = arith.constant 8 : index
    %c0_16 = arith.constant 0 : index
    %16 = vector.load %arg2[%c8, %c0_16] : memref<344x64xf32, #tpu.memory_space<vmem>>, vector<64x64xf32>
    %cst_17 = arith.constant dense<0.000000e+00> : vector<16x64xf32>
    %17 = tpu.matmul %15, %16, %cst_17 {dimension_numbers = #tpu.dot_dimension_numbers<[1], [0], [0], [1], [0, 0, 1, 1], [], []>} : vector<16x64xf32>, vector<64x64xf32>, vector<16x64xf32> -> vector<16x64xf32>
    %c329 = arith.constant 329 : index
    %c0_18 = arith.constant 0 : index
    %18 = vector.load %arg2[%c329, %c0_18] : memref<344x64xf32, #tpu.memory_space<vmem>>, vector<1x64xf32>
    %19 = vector.broadcast %18 : vector<1x64xf32> to vector<16x64xf32>
    %20 = arith.addf %17, %19 : vector<16x64xf32>
    %21 = vector.shape_cast %20 : vector<16x64xf32> to vector<2x8x64xf32>
    %cst_19 = arith.constant dense<0.000000e+00> : vector<2x64xf32>
    %22 = vector.multi_reduction <add>, %21, %cst_19 [1] : vector<2x8x64xf32> to vector<2x64xf32>
    %23 = vector.shape_cast %22 : vector<2x64xf32> to vector<2x1x64xf32>
    %cst_20 = arith.constant 8.000000e+00 : f32
    %24 = vector.broadcast %cst_20 : f32 to vector<2x1x64xf32>
    %25 = arith.divf %23, %24 : vector<2x1x64xf32>
    %26 = vector.broadcast %25 : vector<2x1x64xf32> to vector<2x8x64xf32>
    %27 = arith.subf %21, %26 : vector<2x8x64xf32>
    %28 = arith.mulf %27, %27 : vector<2x8x64xf32>
    %cst_21 = arith.constant dense<0.000000e+00> : vector<2x64xf32>
    %29 = vector.multi_reduction <add>, %28, %cst_21 [1] : vector<2x8x64xf32> to vector<2x64xf32>
    %30 = vector.shape_cast %29 : vector<2x64xf32> to vector<2x1x64xf32>
    %cst_22 = arith.constant 8.000000e+00 : f32
    %31 = vector.broadcast %cst_22 : f32 to vector<2x1x64xf32>
    %32 = arith.divf %30, %31 : vector<2x1x64xf32>
    %33 = vector.broadcast %25 : vector<2x1x64xf32> to vector<2x8x64xf32>
    %34 = arith.subf %21, %33 : vector<2x8x64xf32>
    %cst_23 = arith.constant 9.99999974E-6 : f32
    %35 = vector.broadcast %cst_23 : f32 to vector<2x1x64xf32>
    %36 = arith.addf %32, %35 : vector<2x1x64xf32>
    %37 = math.rsqrt %36 : vector<2x1x64xf32>
    %38 = vector.broadcast %37 : vector<2x1x64xf32> to vector<2x8x64xf32>
    %39 = arith.mulf %34, %38 : vector<2x8x64xf32>
    %40 = vector.shape_cast %39 : vector<2x8x64xf32> to vector<16x64xf32>
    %c330 = arith.constant 330 : index
    %c0_24 = arith.constant 0 : index
    %41 = vector.load %arg2[%c330, %c0_24] : memref<344x64xf32, #tpu.memory_space<vmem>>, vector<1x64xf32>
    %42 = vector.broadcast %41 : vector<1x64xf32> to vector<16x64xf32>
    %43 = arith.mulf %40, %42 : vector<16x64xf32>
    %c331 = arith.constant 331 : index
    %c0_25 = arith.constant 0 : index
    %44 = vector.load %arg2[%c331, %c0_25] : memref<344x64xf32, #tpu.memory_space<vmem>>, vector<1x64xf32>
    %45 = vector.broadcast %44 : vector<1x64xf32> to vector<16x64xf32>
    %46 = arith.addf %43, %45 : vector<16x64xf32>
    %cst_26 = arith.constant 0.000000e+00 : f32
    %47 = vector.broadcast %cst_26 : f32 to vector<16x64xf32>
    %48 = arith.maximumf %46, %47 : vector<16x64xf32>
    %c72 = arith.constant 72 : index
    %c0_27 = arith.constant 0 : index
    %49 = vector.load %arg2[%c72, %c0_27] : memref<344x64xf32, #tpu.memory_space<vmem>>, vector<64x64xf32>
    %cst_28 = arith.constant dense<0.000000e+00> : vector<16x64xf32>
    %50 = tpu.matmul %48, %49, %cst_28 {dimension_numbers = #tpu.dot_dimension_numbers<[1], [0], [0], [1], [0, 0, 1, 1], [], []>} : vector<16x64xf32>, vector<64x64xf32>, vector<16x64xf32> -> vector<16x64xf32>
    %c332 = arith.constant 332 : index
    %c0_29 = arith.constant 0 : index
    %51 = vector.load %arg2[%c332, %c0_29] : memref<344x64xf32, #tpu.memory_space<vmem>>, vector<1x64xf32>
    %52 = vector.broadcast %51 : vector<1x64xf32> to vector<16x64xf32>
    %53 = arith.addf %50, %52 : vector<16x64xf32>
    %54 = vector.shape_cast %53 : vector<16x64xf32> to vector<2x8x64xf32>
    %cst_30 = arith.constant dense<0.000000e+00> : vector<2x64xf32>
    %55 = vector.multi_reduction <add>, %54, %cst_30 [1] : vector<2x8x64xf32> to vector<2x64xf32>
    %56 = vector.shape_cast %55 : vector<2x64xf32> to vector<2x1x64xf32>
    %cst_31 = arith.constant 8.000000e+00 : f32
    %57 = vector.broadcast %cst_31 : f32 to vector<2x1x64xf32>
    %58 = arith.divf %56, %57 : vector<2x1x64xf32>
    %59 = vector.broadcast %58 : vector<2x1x64xf32> to vector<2x8x64xf32>
    %60 = arith.subf %54, %59 : vector<2x8x64xf32>
    %61 = arith.mulf %60, %60 : vector<2x8x64xf32>
    %cst_32 = arith.constant dense<0.000000e+00> : vector<2x64xf32>
    %62 = vector.multi_reduction <add>, %61, %cst_32 [1] : vector<2x8x64xf32> to vector<2x64xf32>
    %63 = vector.shape_cast %62 : vector<2x64xf32> to vector<2x1x64xf32>
    %cst_33 = arith.constant 8.000000e+00 : f32
    %64 = vector.broadcast %cst_33 : f32 to vector<2x1x64xf32>
    %65 = arith.divf %63, %64 : vector<2x1x64xf32>
    %66 = vector.broadcast %58 : vector<2x1x64xf32> to vector<2x8x64xf32>
    %67 = arith.subf %54, %66 : vector<2x8x64xf32>
    %cst_34 = arith.constant 9.99999974E-6 : f32
    %68 = vector.broadcast %cst_34 : f32 to vector<2x1x64xf32>
    %69 = arith.addf %65, %68 : vector<2x1x64xf32>
    %70 = math.rsqrt %69 : vector<2x1x64xf32>
    %71 = vector.broadcast %70 : vector<2x1x64xf32> to vector<2x8x64xf32>
    %72 = arith.mulf %67, %71 : vector<2x8x64xf32>
    %73 = vector.shape_cast %72 : vector<2x8x64xf32> to vector<16x64xf32>
    %c333 = arith.constant 333 : index
    %c0_35 = arith.constant 0 : index
    %74 = vector.load %arg2[%c333, %c0_35] : memref<344x64xf32, #tpu.memory_space<vmem>>, vector<1x64xf32>
    %75 = vector.broadcast %74 : vector<1x64xf32> to vector<16x64xf32>
    %76 = arith.mulf %73, %75 : vector<16x64xf32>
    %c334 = arith.constant 334 : index
    %c0_36 = arith.constant 0 : index
    %77 = vector.load %arg2[%c334, %c0_36] : memref<344x64xf32, #tpu.memory_space<vmem>>, vector<1x64xf32>
    %78 = vector.broadcast %77 : vector<1x64xf32> to vector<16x64xf32>
    %79 = arith.addf %76, %78 : vector<16x64xf32>
    %cst_37 = arith.constant 0.000000e+00 : f32
    %80 = vector.broadcast %cst_37 : f32 to vector<16x64xf32>
    %81 = arith.maximumf %79, %80 : vector<16x64xf32>
    %c136 = arith.constant 136 : index
    %c0_38 = arith.constant 0 : index
    %82 = vector.load %arg2[%c136, %c0_38] : memref<344x64xf32, #tpu.memory_space<vmem>>, vector<64x64xf32>
    %cst_39 = arith.constant dense<0.000000e+00> : vector<16x64xf32>
    %83 = tpu.matmul %81, %82, %cst_39 {dimension_numbers = #tpu.dot_dimension_numbers<[1], [0], [0], [1], [0, 0, 1, 1], [], []>} : vector<16x64xf32>, vector<64x64xf32>, vector<16x64xf32> -> vector<16x64xf32>
    %c335 = arith.constant 335 : index
    %c0_40 = arith.constant 0 : index
    %84 = vector.load %arg2[%c335, %c0_40] : memref<344x64xf32, #tpu.memory_space<vmem>>, vector<1x64xf32>
    %85 = vector.broadcast %84 : vector<1x64xf32> to vector<16x64xf32>
    %86 = arith.addf %83, %85 : vector<16x64xf32>
    %87 = vector.shape_cast %86 : vector<16x64xf32> to vector<2x8x64xf32>
    %cst_41 = arith.constant dense<0.000000e+00> : vector<2x64xf32>
    %88 = vector.multi_reduction <add>, %87, %cst_41 [1] : vector<2x8x64xf32> to vector<2x64xf32>
    %89 = vector.shape_cast %88 : vector<2x64xf32> to vector<2x1x64xf32>
    %cst_42 = arith.constant 8.000000e+00 : f32
    %90 = vector.broadcast %cst_42 : f32 to vector<2x1x64xf32>
    %91 = arith.divf %89, %90 : vector<2x1x64xf32>
    %92 = vector.broadcast %91 : vector<2x1x64xf32> to vector<2x8x64xf32>
    %93 = arith.subf %87, %92 : vector<2x8x64xf32>
    %94 = arith.mulf %93, %93 : vector<2x8x64xf32>
    %cst_43 = arith.constant dense<0.000000e+00> : vector<2x64xf32>
    %95 = vector.multi_reduction <add>, %94, %cst_43 [1] : vector<2x8x64xf32> to vector<2x64xf32>
    %96 = vector.shape_cast %95 : vector<2x64xf32> to vector<2x1x64xf32>
    %cst_44 = arith.constant 8.000000e+00 : f32
    %97 = vector.broadcast %cst_44 : f32 to vector<2x1x64xf32>
    %98 = arith.divf %96, %97 : vector<2x1x64xf32>
    %99 = vector.broadcast %91 : vector<2x1x64xf32> to vector<2x8x64xf32>
    %100 = arith.subf %87, %99 : vector<2x8x64xf32>
    %cst_45 = arith.constant 9.99999974E-6 : f32
    %101 = vector.broadcast %cst_45 : f32 to vector<2x1x64xf32>
    %102 = arith.addf %98, %101 : vector<2x1x64xf32>
    %103 = math.rsqrt %102 : vector<2x1x64xf32>
    %104 = vector.broadcast %103 : vector<2x1x64xf32> to vector<2x8x64xf32>
    %105 = arith.mulf %100, %104 : vector<2x8x64xf32>
    %106 = vector.shape_cast %105 : vector<2x8x64xf32> to vector<16x64xf32>
    %c336 = arith.constant 336 : index
    %c0_46 = arith.constant 0 : index
    %107 = vector.load %arg2[%c336, %c0_46] : memref<344x64xf32, #tpu.memory_space<vmem>>, vector<1x64xf32>
    %108 = vector.broadcast %107 : vector<1x64xf32> to vector<16x64xf32>
    %109 = arith.mulf %106, %108 : vector<16x64xf32>
    %c337 = arith.constant 337 : index
    %c0_47 = arith.constant 0 : index
    %110 = vector.load %arg2[%c337, %c0_47] : memref<344x64xf32, #tpu.memory_space<vmem>>, vector<1x64xf32>
    %111 = vector.broadcast %110 : vector<1x64xf32> to vector<16x64xf32>
    %112 = arith.addf %109, %111 : vector<16x64xf32>
    %c200 = arith.constant 200 : index
    %c0_48 = arith.constant 0 : index
    %113 = vector.load %arg2[%c200, %c0_48] : memref<344x64xf32, #tpu.memory_space<vmem>>, vector<64x64xf32>
    %cst_49 = arith.constant dense<0.000000e+00> : vector<16x64xf32>
    %114 = tpu.matmul %112, %113, %cst_49 {dimension_numbers = #tpu.dot_dimension_numbers<[1], [0], [0], [1], [0, 0, 1, 1], [], []>} : vector<16x64xf32>, vector<64x64xf32>, vector<16x64xf32> -> vector<16x64xf32>
    %c338 = arith.constant 338 : index
    %c0_50 = arith.constant 0 : index
    %115 = vector.load %arg2[%c338, %c0_50] : memref<344x64xf32, #tpu.memory_space<vmem>>, vector<1x64xf32>
    %116 = vector.broadcast %115 : vector<1x64xf32> to vector<16x64xf32>
    %117 = arith.addf %114, %116 : vector<16x64xf32>
    %118 = vector.shape_cast %117 : vector<16x64xf32> to vector<2x8x64xf32>
    %cst_51 = arith.constant dense<0.000000e+00> : vector<2x64xf32>
    %119 = vector.multi_reduction <add>, %118, %cst_51 [1] : vector<2x8x64xf32> to vector<2x64xf32>
    %120 = vector.shape_cast %119 : vector<2x64xf32> to vector<2x1x64xf32>
    %cst_52 = arith.constant 8.000000e+00 : f32
    %121 = vector.broadcast %cst_52 : f32 to vector<2x1x64xf32>
    %122 = arith.divf %120, %121 : vector<2x1x64xf32>
    %123 = vector.broadcast %122 : vector<2x1x64xf32> to vector<2x8x64xf32>
    %124 = arith.subf %118, %123 : vector<2x8x64xf32>
    %125 = arith.mulf %124, %124 : vector<2x8x64xf32>
    %cst_53 = arith.constant dense<0.000000e+00> : vector<2x64xf32>
    %126 = vector.multi_reduction <add>, %125, %cst_53 [1] : vector<2x8x64xf32> to vector<2x64xf32>
    %127 = vector.shape_cast %126 : vector<2x64xf32> to vector<2x1x64xf32>
    %cst_54 = arith.constant 8.000000e+00 : f32
    %128 = vector.broadcast %cst_54 : f32 to vector<2x1x64xf32>
    %129 = arith.divf %127, %128 : vector<2x1x64xf32>
    %130 = vector.broadcast %122 : vector<2x1x64xf32> to vector<2x8x64xf32>
    %131 = arith.subf %118, %130 : vector<2x8x64xf32>
    %cst_55 = arith.constant 9.99999974E-6 : f32
    %132 = vector.broadcast %cst_55 : f32 to vector<2x1x64xf32>
    %133 = arith.addf %129, %132 : vector<2x1x64xf32>
    %134 = math.rsqrt %133 : vector<2x1x64xf32>
    %135 = vector.broadcast %134 : vector<2x1x64xf32> to vector<2x8x64xf32>
    %136 = arith.mulf %131, %135 : vector<2x8x64xf32>
    %137 = vector.shape_cast %136 : vector<2x8x64xf32> to vector<16x64xf32>
    %c339 = arith.constant 339 : index
    %c0_56 = arith.constant 0 : index
    %138 = vector.load %arg2[%c339, %c0_56] : memref<344x64xf32, #tpu.memory_space<vmem>>, vector<1x64xf32>
    %139 = vector.broadcast %138 : vector<1x64xf32> to vector<16x64xf32>
    %140 = arith.mulf %137, %139 : vector<16x64xf32>
    %c340 = arith.constant 340 : index
    %c0_57 = arith.constant 0 : index
    %141 = vector.load %arg2[%c340, %c0_57] : memref<344x64xf32, #tpu.memory_space<vmem>>, vector<1x64xf32>
    %142 = vector.broadcast %141 : vector<1x64xf32> to vector<16x64xf32>
    %143 = arith.addf %140, %142 : vector<16x64xf32>
    %cst_58 = arith.constant 0.000000e+00 : f32
    %144 = vector.broadcast %cst_58 : f32 to vector<16x64xf32>
    %145 = arith.maximumf %143, %144 : vector<16x64xf32>
    %c264 = arith.constant 264 : index
    %c0_59 = arith.constant 0 : index
    %146 = vector.load %arg2[%c264, %c0_59] : memref<344x64xf32, #tpu.memory_space<vmem>>, vector<64x64xf32>
    %cst_60 = arith.constant dense<0.000000e+00> : vector<16x64xf32>
    %147 = tpu.matmul %145, %146, %cst_60 {dimension_numbers = #tpu.dot_dimension_numbers<[1], [0], [0], [1], [0, 0, 1, 1], [], []>} : vector<16x64xf32>, vector<64x64xf32>, vector<16x64xf32> -> vector<16x64xf32>
    %c341 = arith.constant 341 : index
    %c0_61 = arith.constant 0 : index
    %148 = vector.load %arg2[%c341, %c0_61] : memref<344x64xf32, #tpu.memory_space<vmem>>, vector<1x64xf32>
    %149 = vector.broadcast %148 : vector<1x64xf32> to vector<16x64xf32>
    %150 = arith.addf %147, %149 : vector<16x64xf32>
    %c8_i32 = arith.constant 8 : i32
    %151 = tpu.dynamic_rotate %112 by %c8_i32 dim 0 : vector<16x64xf32>, i32 -> vector<16x64xf32>
    %152 = arith.mulf %150, %151 : vector<16x64xf32>
    %cst_62 = arith.constant dense<0.000000e+00> : vector<16xf32>
    %153 = vector.multi_reduction <add>, %152, %cst_62 [1] : vector<16x64xf32> to vector<16xf32>
    %154 = vector.shape_cast %153 : vector<16xf32> to vector<16x1xf32>
    %155 = arith.mulf %150, %150 : vector<16x64xf32>
    %cst_63 = arith.constant dense<0.000000e+00> : vector<16xf32>
    %156 = vector.multi_reduction <add>, %155, %cst_63 [1] : vector<16x64xf32> to vector<16xf32>
    %157 = vector.shape_cast %156 : vector<16xf32> to vector<16x1xf32>
    %158 = math.sqrt %157 : vector<16x1xf32>
    %cst_64 = arith.constant 9.99999993E-9 : f32
    %159 = vector.broadcast %cst_64 : f32 to vector<16x1xf32>
    %160 = arith.maximumf %158, %159 : vector<16x1xf32>
    %161 = arith.mulf %151, %151 : vector<16x64xf32>
    %cst_65 = arith.constant dense<0.000000e+00> : vector<16xf32>
    %162 = vector.multi_reduction <add>, %161, %cst_65 [1] : vector<16x64xf32> to vector<16xf32>
    %163 = vector.shape_cast %162 : vector<16xf32> to vector<16x1xf32>
    %164 = math.sqrt %163 : vector<16x1xf32>
    %cst_66 = arith.constant 9.99999993E-9 : f32
    %165 = vector.broadcast %cst_66 : f32 to vector<16x1xf32>
    %166 = arith.maximumf %164, %165 : vector<16x1xf32>
    %167 = arith.mulf %160, %166 : vector<16x1xf32>
    %168 = tpu.reciprocal %167 {approx = true} : vector<16x1xf32> -> vector<16x1xf32>
    %169 = arith.mulf %154, %168 : vector<16x1xf32>
    %cst_67 = arith.constant dense<0.000000e+00> : vector<1xf32>
    %170 = vector.multi_reduction <add>, %169, %cst_67 [0] : vector<16x1xf32> to vector<1xf32>
    %171 = vector.shape_cast %170 : vector<1xf32> to vector<1x1xf32>
    %cst_68 = arith.constant 0.000000e+00 : f32
    %172 = vector.broadcast %cst_68 : f32 to vector<1x1xf32>
    %173 = arith.subf %172, %171 : vector<1x1xf32>
    %cst_69 = arith.constant 6.250000e-02 : f32
    %174 = vector.broadcast %cst_69 : f32 to vector<1x1xf32>
    %175 = arith.mulf %173, %174 : vector<1x1xf32>
    %c0_70 = arith.constant 0 : index
    %c0_71 = arith.constant 0 : index
    %176 = vector.load %arg3[%c0_70, %c0_71] : memref<1x1xf32, #tpu.memory_space<vmem>>, vector<1x1xf32>
    tpu.vector_store %arg3[%c0_70, %c0_71], %175 {strides = array<i32>} : memref<1x1xf32, #tpu.memory_space<vmem>>, vector<1x1xf32>,
    return
  }
}

</mosaic_0001>

<bundles_post_ra>
// kernel: point_simsiam_forward.1
= control target key start
LH: loop header
LB: loop body
LE: loop exit
PB: predicated region body
PF: predicated region fallthrough
CT: control target
= control target key end

     0   :  { %vm15_vm0 = vcmask 64512   ;;  %vm208_vm1 = vcmask 23552   ;;  %v3586_v3 = vmov 0.0   ;;  %s4935_s0 = inlined_call_operand.vmem [shape: f32[512,3], index: 0, kind: input, shape index: {}]   ;;  %s4936_s1 = inlined_call_operand.vmem [shape: f32[512,3], index: 1, kind: input, shape index: {}]   ;;  %s4937_s2 = inlined_call_operand.vmem [shape: f32[344,64], index: 2, kind: input, shape index: {}]   ;;  %s4938_s3 = inlined_call_operand.hbm [shape: f32[1,1], index: 3, kind: output, shape index: {}]  }
   0x1   :  { %v3611_v0 = vld [vmem:[%s4937_s2] sm:$0xff]  ;;  %v3621_v2 = vld [vmem:[%s4935_s0 + $0x8] sm:$0xff]  ;;  %16 = vst.msk [vmem:[#allocation2] sm:$0xff] %vm15_vm0, %v3586_v3  ;;  %17 = vst.msk [vmem:[#allocation2 + $0x8] sm:$0xff] %vm15_vm0, %v3586_v3 }
   0x2   :  { %v3616_v1 = vld [vmem:[%s4935_s0] sm:$0xff]  ;;  %3161 = vmatprep.subr.mxu0 %v3611_v0  ;;  %18 = vst.msk [vmem:[#allocation2 + $0x10] sm:$0xff] %vm15_vm0, %v3586_v3  ;;  %19 = vst.msk [vmem:[#allocation2 + $0x18] sm:$0xff] %vm15_vm0, %v3586_v3  ;;  %v146_v4 = vld [vmem:[%s4935_s0 + $0x10] sm:$0xff]  ;;  %3530 = vmatprep.subr.mxu1 %v3611_v0 }
   0x3   :  { %20 = vst.msk [vmem:[#allocation2 + $0x20] sm:$0xff] %vm15_vm0, %v3586_v3  ;;  %21 = vst.msk [vmem:[#allocation2 + $0x28] sm:$0xff] %vm15_vm0, %v3586_v3  ;;  %v147_v5 = vld [vmem:[%s4935_s0 + $0x18] sm:$0xff]  ;;  %v148_v6 = vld [vmem:[%s4935_s0 + $0x20] sm:$0xff]  ;;  %3162 = vmatpush3.msra.mxu0 %v3611_v0  ;;  %3531 = vmatpush3.msra.mxu1 %v3611_v0 }
   0x4   :  { %22 = vst.msk [vmem:[#allocation2 + $0x30] sm:$0xff] %vm15_vm0, %v3586_v3  ;;  %23 = vst.msk [vmem:[#allocation2 + $0x38] sm:$0xff] %vm15_vm0, %v3586_v3  ;;  %v149_v7 = vld [vmem:[%s4935_s0 + $0x28] sm:$0xff]  ;;  %v150_v8 = vld [vmem:[%s4935_s0 + $0x30] sm:$0xff] }
   0x5   :  { %24 = vst.msk [vmem:[#allocation2 + $0x40] sm:$0xff] %vm15_vm0, %v3586_v3  ;;  %25 = vst.msk [vmem:[#allocation2 + $0x48] sm:$0xff] %vm15_vm0, %v3586_v3  ;;  %v151_v9 = vld [vmem:[%s4935_s0 + $0x38] sm:$0xff]  ;;  %v152_v10 = vld [vmem:[%s4935_s0 + $0x40] sm:$0xff] }
   0x6   :  { %26 = vst.msk [vmem:[#allocation2 + $0x50] sm:$0xff] %vm15_vm0, %v3586_v3  ;;  %27 = vst.msk [vmem:[#allocation2 + $0x58] sm:$0xff] %vm15_vm0, %v3586_v3  ;;  %v153_v11 = vld [vmem:[%s4935_s0 + $0x48] sm:$0xff]  ;;  %v154_v12 = vld [vmem:[%s4935_s0 + $0x50] sm:$0xff] }
   0x7   :  { %28 = vst.msk [vmem:[#allocation2 + $0x60] sm:$0xff] %vm15_vm0, %v3586_v3  ;;  %29 = vst.msk [vmem:[#allocation2 + $0x68] sm:$0xff] %vm15_vm0, %v3586_v3  ;;  %v155_v13 = vld [vmem:[%s4935_s0 + $0x58] sm:$0xff]  ;;  %v156_v14 = vld [vmem:[%s4935_s0 + $0x60] sm:$0xff] }
   0x8   :  { %30 = vst.msk [vmem:[#allocation2 + $0x70] sm:$0xff] %vm15_vm0, %v3586_v3  ;;  %31 = vst.msk [vmem:[#allocation2 + $0x78] sm:$0xff] %vm15_vm0, %v3586_v3  ;;  %v157_v15 = vld [vmem:[%s4935_s0 + $0x68] sm:$0xff]  ;;  %v158_v16 = vld [vmem:[%s4935_s0 + $0x70] sm:$0xff] }
   0x9   :  { %32 = vst.msk [vmem:[#allocation2 + $0x80] sm:$0xff] %vm15_vm0, %v3586_v3  ;;  %33 = vst.msk [vmem:[#allocation2 + $0x88] sm:$0xff] %vm15_vm0, %v3586_v3  ;;  %v159_v17 = vld [vmem:[%s4935_s0 + $0x78] sm:$0xff]  ;;  %v160_v18 = vld [vmem:[%s4935_s0 + $0x80] sm:$0xff] }
   0xa   :  { %34 = vst.msk [vmem:[#allocation2 + $0x90] sm:$0xff] %vm15_vm0, %v3586_v3  ;;  %35 = vst.msk [vmem:[#allocation2 + $0x98] sm:$0xff] %vm15_vm0, %v3586_v3  ;;  %v161_v19 = vld [vmem:[%s4935_s0 + $0x88] sm:$0xff]  ;;  %v162_v20 = vld [vmem:[%s4935_s0 + $0x90] sm:$0xff] }
   0xb   :  { %36 = vst.msk [vmem:[#allocation2 + $0xa0] sm:$0xff] %vm15_vm0, %v3586_v3  ;;  %37 = vst.msk [vmem:[#allocation2 + $0xa8] sm:$0xff] %vm15_vm0, %v3586_v3  ;;  %v163_v21 = vld [vmem:[%s4935_s0 + $0x98] sm:$0xff]  ;;  %v164_v22 = vld [vmem:[%s4935_s0 + $0xa0] sm:$0xff] }
   0xc   :  { %38 = vst.msk [vmem:[#allocation2 + $0xb0] sm:$0xff] %vm15_vm0, %v3586_v3  ;;  %39 = vst.msk [vmem:[#allocation2 + $0xb8] sm:$0xff] %vm15_vm0, %v3586_v3  ;;  %v165_v23 = vld [vmem:[%s4935_s0 + $0xa8] sm:$0xff]  ;;  %v166_v24 = vld [vmem:[%s4935_s0 + $0xb0] sm:$0xff] }
   0xd   :  { %40 = vst.msk [vmem:[#allocation2 + $0xc0] sm:$0xff] %vm15_vm0, %v3586_v3  ;;  %41 = vst.msk [vmem:[#allocation2 + $0xc8] sm:$0xff] %vm15_vm0, %v3586_v3  ;;  %v167_v25 = vld [vmem:[%s4935_s0 + $0xb8] sm:$0xff]  ;;  %v168_v26 = vld [vmem:[%s4935_s0 + $0xc0] sm:$0xff] }
   0xe   :  { %42 = vst.msk [vmem:[#allocation2 + $0xd0] sm:$0xff] %vm15_vm0, %v3586_v3  ;;  %43 = vst.msk [vmem:[#allocation2 + $0xd8] sm:$0xff] %vm15_vm0, %v3586_v3  ;;  %v169_v27 = vld [vmem:[%s4935_s0 + $0xc8] sm:$0xff]  ;;  %v170_v35 = vld [vmem:[%s4935_s0 + $0xd0] sm:$0xff] }
   0xf   :  { %44 = vst.msk [vmem:[#allocation2 + $0xe0] sm:$0xff] %vm15_vm0, %v3586_v3  ;;  %45 = vst.msk [vmem:[#allocation2 + $0xe8] sm:$0xff] %vm15_vm0, %v3586_v3  ;;  %v171_v37 = vld [vmem:[%s4935_s0 + $0xd8] sm:$0xff]  ;;  %v172_v38 = vld [vmem:[%s4935_s0 + $0xe0] sm:$0xff] }
  0x10   :  { %46 = vst.msk [vmem:[#allocation2 + $0xf0] sm:$0xff] %vm15_vm0, %v3586_v3  ;;  %47 = vst.msk [vmem:[#allocation2 + $0xf8] sm:$0xff] %vm15_vm0, %v3586_v3  ;;  %v173_v39 = vld [vmem:[%s4935_s0 + $0xe8] sm:$0xff]  ;;  %v174_v41 = vld [vmem:[%s4935_s0 + $0xf0] sm:$0xff] }
  0x11   :  { %48 = vst.msk [vmem:[#allocation2 + $0x100] sm:$0xff] %vm15_vm0, %v3586_v3  ;;  %49 = vst.msk [vmem:[#allocation2 + $0x108] sm:$0xff] %vm15_vm0, %v3586_v3  ;;  %v175_v42 = vld [vmem:[%s4935_s0 + $0xf8] sm:$0xff]  ;;  %v176_v43 = vld [vmem:[%s4935_s0 + $0x100] sm:$0xff] }
  0x12   :  { %50 = vst.msk [vmem:[#allocation2 + $0x110] sm:$0xff] %vm15_vm0, %v3586_v3  ;;  %51 = vst.msk [vmem:[#allocation2 + $0x118] sm:$0xff] %vm15_vm0, %v3586_v3  ;;  %v177_v44 = vld [vmem:[%s4935_s0 + $0x108] sm:$0xff]  ;;  %v178_v45 = vld [vmem:[%s4935_s0 + $0x110] sm:$0xff] }
  0x13   :  { %52 = vst.msk [vmem:[#allocation2 + $0x120] sm:$0xff] %vm15_vm0, %v3586_v3  ;;  %53 = vst.msk [vmem:[#allocation2 + $0x128] sm:$0xff] %vm15_vm0, %v3586_v3  ;;  %v179_v46 = vld [vmem:[%s4935_s0 + $0x118] sm:$0xff]  ;;  %v180_v47 = vld [vmem:[%s4935_s0 + $0x120] sm:$0xff] }
  0x14   :  { %54 = vst.msk [vmem:[#allocation2 + $0x130] sm:$0xff] %vm15_vm0, %v3586_v3  ;;  %55 = vst.msk [vmem:[#allocation2 + $0x138] sm:$0xff] %vm15_vm0, %v3586_v3  ;;  %v181_v48 = vld [vmem:[%s4935_s0 + $0x128] sm:$0xff]  ;;  %v182_v49 = vld [vmem:[%s4935_s0 + $0x130] sm:$0xff] }
  0x15   :  { %56 = vst.msk [vmem:[#allocation2 + $0x140] sm:$0xff] %vm15_vm0, %v3586_v3  ;;  %57 = vst.msk [vmem:[#allocation2 + $0x148] sm:$0xff] %vm15_vm0, %v3586_v3  ;;  %v183_v51 = vld [vmem:[%s4935_s0 + $0x138] sm:$0xff]  ;;  %v291_v52 = vld [vmem:[%s4936_s1 + $0x90] sm:$0xff] }
  0x16   :  { %58 = vst.msk [vmem:[#allocation2 + $0x150] sm:$0xff] %vm15_vm0, %v3586_v3  ;;  %59 = vst.msk [vmem:[#allocation2 + $0x158] sm:$0xff] %vm15_vm0, %v3586_v3  ;;  %v292_v53 = vld [vmem:[%s4936_s1 + $0x98] sm:$0xff]  ;;  %v184_v54 = vld [vmem:[%s4935_s0 + $0x140] sm:$0xff] }
  0x17   :  { %60 = vst.msk [vmem:[#allocation2 + $0x160] sm:$0xff] %vm15_vm0, %v3586_v3  ;;  %61 = vst.msk [vmem:[#allocation2 + $0x168] sm:$0xff] %vm15_vm0, %v3586_v3  ;;  %v185_v55 = vld [vmem:[%s4935_s0 + $0x148] sm:$0xff]  ;;  %v293_v56 = vld [vmem:[%s4936_s1 + $0xa0] sm:$0xff] }
  0x18   :  { %62 = vst.msk [vmem:[#allocation2 + $0x170] sm:$0xff] %vm15_vm0, %v3586_v3  ;;  %63 = vst.msk [vmem:[#allocation2 + $0x178] sm:$0xff] %vm15_vm0, %v3586_v3  ;;  %v294_v57 = vld [vmem:[%s4936_s1 + $0xa8] sm:$0xff]  ;;  %v186_v58 = vld [vmem:[%s4935_s0 + $0x150] sm:$0xff] }
  0x19   :  { %64 = vst.msk [vmem:[#allocation2 + $0x180] sm:$0xff] %vm15_vm0, %v3586_v3  ;;  %65 = vst.msk [vmem:[#allocation2 + $0x188] sm:$0xff] %vm15_vm0, %v3586_v3  ;;  %v187_v59 = vld [vmem:[%s4935_s0 + $0x158] sm:$0xff]  ;;  %v295_v61 = vld [vmem:[%s4936_s1 + $0xb0] sm:$0xff] }
  0x1a   :  { %66 = vst.msk [vmem:[#allocation2 + $0x190] sm:$0xff] %vm15_vm0, %v3586_v3  ;;  %67 = vst.msk [vmem:[#allocation2 + $0x198] sm:$0xff] %vm15_vm0, %v3586_v3  ;;  %v296_v62 = vld [vmem:[%s4936_s1 + $0xb8] sm:$0xff] }
  0x1b   :  { %68 = vst.msk [vmem:[#allocation2 + $0x1a0] sm:$0xff] %vm15_vm0, %v3586_v3  ;;  %69 = vst.msk [vmem:[#allocation2 + $0x1a8] sm:$0xff] %vm15_vm0, %v3586_v3 }
  0x1c   :  { %70 = vst.msk [vmem:[#allocation2 + $0x1b0] sm:$0xff] %vm15_vm0, %v3586_v3  ;;  %71 = vst.msk [vmem:[#allocation2 + $0x1b8] sm:$0xff] %vm15_vm0, %v3586_v3 }
  0x1d   :  { %72 = vst.msk [vmem:[#allocation2 + $0x1c0] sm:$0xff] %vm15_vm0, %v3586_v3  ;;  %73 = vst.msk [vmem:[#allocation2 + $0x1c8] sm:$0xff] %vm15_vm0, %v3586_v3 }
  0x1e   :  { %74 = vst.msk [vmem:[#allocation2 + $0x1d0] sm:$0xff] %vm15_vm0, %v3586_v3  ;;  %75 = vst.msk [vmem:[#allocation2 + $0x1d8] sm:$0xff] %vm15_vm0, %v3586_v3 }
  0x1f   :  { %76 = vst.msk [vmem:[#allocation2 + $0x1e0] sm:$0xff] %vm15_vm0, %v3586_v3  ;;  %77 = vst.msk [vmem:[#allocation2 + $0x1e8] sm:$0xff] %vm15_vm0, %v3586_v3 }
  0x20   :  { %78 = vst.msk [vmem:[#allocation2 + $0x1f0] sm:$0xff] %vm15_vm0, %v3586_v3  ;;  %79 = vst.msk [vmem:[#allocation2 + $0x1f8] sm:$0xff] %vm15_vm0, %v3586_v3 }
  0x21   :  { %80 = vst.msk [vmem:[#allocation2 + $0x200] sm:$0xff] %vm15_vm0, %v3586_v3  ;;  %81 = vst.msk [vmem:[#allocation2 + $0x208] sm:$0xff] %vm15_vm0, %v3586_v3 }
  0x22   :  { %82 = vst.msk [vmem:[#allocation2 + $0x210] sm:$0xff] %vm15_vm0, %v3586_v3  ;;  %83 = vst.msk [vmem:[#allocation2 + $0x218] sm:$0xff] %vm15_vm0, %v3586_v3 }
  0x23   :  { %84 = vst.msk [vmem:[#allocation2 + $0x220] sm:$0xff] %vm15_vm0, %v3586_v3  ;;  %85 = vst.msk [vmem:[#allocation2 + $0x228] sm:$0xff] %vm15_vm0, %v3586_v3 }
  0x24   :  { %86 = vst.msk [vmem:[#allocation2 + $0x230] sm:$0xff] %vm15_vm0, %v3586_v3  ;;  %87 = vst.msk [vmem:[#allocation2 + $0x238] sm:$0xff] %vm15_vm0, %v3586_v3 }
  0x25   :  { %88 = vst.msk [vmem:[#allocation2 + $0x240] sm:$0xff] %vm15_vm0, %v3586_v3  ;;  %89 = vst.msk [vmem:[#allocation2 + $0x248] sm:$0xff] %vm15_vm0, %v3586_v3 }
  0x26   :  { %90 = vst.msk [vmem:[#allocation2 + $0x250] sm:$0xff] %vm15_vm0, %v3586_v3  ;;  %91 = vst.msk [vmem:[#allocation2 + $0x258] sm:$0xff] %vm15_vm0, %v3586_v3 }
  0x27   :  { %92 = vst.msk [vmem:[#allocation2 + $0x260] sm:$0xff] %vm15_vm0, %v3586_v3  ;;  %93 = vst.msk [vmem:[#allocation2 + $0x268] sm:$0xff] %vm15_vm0, %v3586_v3 }
  0x28   :  { %94 = vst.msk [vmem:[#allocation2 + $0x270] sm:$0xff] %vm15_vm0, %v3586_v3  ;;  %95 = vst.msk [vmem:[#allocation2 + $0x278] sm:$0xff] %vm15_vm0, %v3586_v3 }
  0x29   :  { %96 = vst.msk [vmem:[#allocation2 + $0x280] sm:$0xff] %vm15_vm0, %v3586_v3  ;;  %97 = vst.msk [vmem:[#allocation2 + $0x288] sm:$0xff] %vm15_vm0, %v3586_v3 }
  0x2a   :  { %98 = vst.msk [vmem:[#allocation2 + $0x290] sm:$0xff] %vm15_vm0, %v3586_v3  ;;  %99 = vst.msk [vmem:[#allocation2 + $0x298] sm:$0xff] %vm15_vm0, %v3586_v3 }
  0x2b   :  { %100 = vst.msk [vmem:[#allocation2 + $0x2a0] sm:$0xff] %vm15_vm0, %v3586_v3  ;;  %101 = vst.msk [vmem:[#allocation2 + $0x2a8] sm:$0xff] %vm15_vm0, %v3586_v3 }
  0x2c   :  { %102 = vst.msk [vmem:[#allocation2 + $0x2b0] sm:$0xff] %vm15_vm0, %v3586_v3  ;;  %103 = vst.msk [vmem:[#allocation2 + $0x2b8] sm:$0xff] %vm15_vm0, %v3586_v3 }
  0x2d   :  { %104 = vst.msk [vmem:[#allocation2 + $0x2c0] sm:$0xff] %vm15_vm0, %v3586_v3  ;;  %105 = vst.msk [vmem:[#allocation2 + $0x2c8] sm:$0xff] %vm15_vm0, %v3586_v3 }
  0x2e   :  { %106 = vst.msk [vmem:[#allocation2 + $0x2d0] sm:$0xff] %vm15_vm0, %v3586_v3  ;;  %107 = vst.msk [vmem:[#allocation2 + $0x2d8] sm:$0xff] %vm15_vm0, %v3586_v3 }
  0x2f   :  { %108 = vst.msk [vmem:[#allocation2 + $0x2e0] sm:$0xff] %vm15_vm0, %v3586_v3  ;;  %109 = vst.msk [vmem:[#allocation2 + $0x2e8] sm:$0xff] %vm15_vm0, %v3586_v3 }
  0x30   :  { %110 = vst.msk [vmem:[#allocation2 + $0x2f0] sm:$0xff] %vm15_vm0, %v3586_v3  ;;  %111 = vst.msk [vmem:[#allocation2 + $0x2f8] sm:$0xff] %vm15_vm0, %v3586_v3 }
  0x31   :  { %112 = vst.msk [vmem:[#allocation2 + $0x300] sm:$0xff] %vm15_vm0, %v3586_v3  ;;  %113 = vst.msk [vmem:[#allocation2 + $0x308] sm:$0xff] %vm15_vm0, %v3586_v3 }
  0x32   :  { %114 = vst.msk [vmem:[#allocation2 + $0x310] sm:$0xff] %vm15_vm0, %v3586_v3  ;;  %115 = vst.msk [vmem:[#allocation2 + $0x318] sm:$0xff] %vm15_vm0, %v3586_v3 }
  0x33   :  { %116 = vst.msk [vmem:[#allocation2 + $0x320] sm:$0xff] %vm15_vm0, %v3586_v3  ;;  %117 = vst.msk [vmem:[#allocation2 + $0x328] sm:$0xff] %vm15_vm0, %v3586_v3 }
  0x34   :  { %118 = vst.msk [vmem:[#allocation2 + $0x330] sm:$0xff] %vm15_vm0, %v3586_v3  ;;  %119 = vst.msk [vmem:[#allocation2 + $0x338] sm:$0xff] %vm15_vm0, %v3586_v3 }
  0x35   :  { %120 = vst.msk [vmem:[#allocation2 + $0x340] sm:$0xff] %vm15_vm0, %v3586_v3  ;;  %121 = vst.msk [vmem:[#allocation2 + $0x348] sm:$0xff] %vm15_vm0, %v3586_v3 }
  0x36   :  { %122 = vst.msk [vmem:[#allocation2 + $0x350] sm:$0xff] %vm15_vm0, %v3586_v3  ;;  %123 = vst.msk [vmem:[#allocation2 + $0x358] sm:$0xff] %vm15_vm0, %v3586_v3 }
  0x37   :  { %124 = vst.msk [vmem:[#allocation2 + $0x360] sm:$0xff] %vm15_vm0, %v3586_v3  ;;  %125 = vst.msk [vmem:[#allocation2 + $0x368] sm:$0xff] %vm15_vm0, %v3586_v3 }
  0x38   :  { %126 = vst.msk [vmem:[#allocation2 + $0x370] sm:$0xff] %vm15_vm0, %v3586_v3  ;;  %127 = vst.msk [vmem:[#allocation2 + $0x378] sm:$0xff] %vm15_vm0, %v3586_v3 }
  0x39   :  { %128 = vst.msk [vmem:[#allocation2 + $0x380] sm:$0xff] %vm15_vm0, %v3586_v3  ;;  %129 = vst.msk [vmem:[#allocation2 + $0x388] sm:$0xff] %vm15_vm0, %v3586_v3 }
  0x3a   :  { %130 = vst.msk [vmem:[#allocation2 + $0x390] sm:$0xff] %vm15_vm0, %v3586_v3  ;;  %131 = vst.msk [vmem:[#allocation2 + $0x398] sm:$0xff] %vm15_vm0, %v3586_v3 }
  0x3b   :  { %132 = vst.msk [vmem:[#allocation2 + $0x3a0] sm:$0xff] %vm15_vm0, %v3586_v3  ;;  %133 = vst.msk [vmem:[#allocation2 + $0x3a8] sm:$0xff] %vm15_vm0, %v3586_v3 }
  0x3c   :  { %134 = vst.msk [vmem:[#allocation2 + $0x3b0] sm:$0xff] %vm15_vm0, %v3586_v3  ;;  %135 = vst.msk [vmem:[#allocation2 + $0x3b8] sm:$0xff] %vm15_vm0, %v3586_v3 }
  0x3d   :  { %136 = vst.msk [vmem:[#allocation2 + $0x3c0] sm:$0xff] %vm15_vm0, %v3586_v3  ;;  %137 = vst.msk [vmem:[#allocation2 + $0x3c8] sm:$0xff] %vm15_vm0, %v3586_v3 }
  0x3e   :  { %138 = vst.msk [vmem:[#allocation2 + $0x3d0] sm:$0xff] %vm15_vm0, %v3586_v3  ;;  %139 = vst.msk [vmem:[#allocation2 + $0x3d8] sm:$0xff] %vm15_vm0, %v3586_v3 }
  0x3f   :  { %140 = vst.msk [vmem:[#allocation2 + $0x3e0] sm:$0xff] %vm15_vm0, %v3586_v3  ;;  %141 = vst.msk [vmem:[#allocation2 + $0x3e8] sm:$0xff] %vm15_vm0, %v3586_v3 }
  0x40   :  { %142 = vst.msk [vmem:[#allocation2 + $0x3f0] sm:$0xff] %vm15_vm0, %v3586_v3  ;;  %143 = vst.msk [vmem:[#allocation2 + $0x3f8] sm:$0xff] %vm15_vm0, %v3586_v3 }
  0x41   :  { %209 = vst.msk [vmem:[#allocation2] sm:$0xff] %vm208_vm1, %v3616_v1  ;;  %210 = vst.msk [vmem:[#allocation2 + $0x8] sm:$0xff] %vm208_vm1, %v3621_v2 }
  0x42   :  { %211 = vst.msk [vmem:[#allocation2 + $0x10] sm:$0xff] %vm208_vm1, %v146_v4  ;;  %212 = vst.msk [vmem:[#allocation2 + $0x18] sm:$0xff] %vm208_vm1, %v147_v5 }
  0x43   :  { %213 = vst.msk [vmem:[#allocation2 + $0x20] sm:$0xff] %vm208_vm1, %v148_v6  ;;  %214 = vst.msk [vmem:[#allocation2 + $0x28] sm:$0xff] %vm208_vm1, %v149_v7 }
  0x44   :  { %215 = vst.msk [vmem:[#allocation2 + $0x30] sm:$0xff] %vm208_vm1, %v150_v8  ;;  %216 = vst.msk [vmem:[#allocation2 + $0x38] sm:$0xff] %vm208_vm1, %v151_v9  ;;  %v188_v8 = vld [vmem:[%s4935_s0 + $0x160] sm:$0xff] }
  0x45   :  { %217 = vst.msk [vmem:[#allocation2 + $0x40] sm:$0xff] %vm208_vm1, %v152_v10  ;;  %218 = vst.msk [vmem:[#allocation2 + $0x48] sm:$0xff] %vm208_vm1, %v153_v11  ;;  %v189_v10 = vld [vmem:[%s4935_s0 + $0x168] sm:$0xff]  ;;  %v297_v11 = vld [vmem:[%s4936_s1 + $0xc0] sm:$0xff] }
  0x46   :  { %219 = vst.msk [vmem:[#allocation2 + $0x50] sm:$0xff] %vm208_vm1, %v154_v12  ;;  %220 = vst.msk [vmem:[#allocation2 + $0x58] sm:$0xff] %vm208_vm1, %v155_v13  ;;  %v298_v12 = vld [vmem:[%s4936_s1 + $0xc8] sm:$0xff] }
  0x47   :  { %221 = vst.msk [vmem:[#allocation2 + $0x60] sm:$0xff] %vm208_vm1, %v156_v14  ;;  %222 = vst.msk [vmem:[#allocation2 + $0x68] sm:$0xff] %vm208_vm1, %v157_v15  ;;  %v190_v15 = vld [vmem:[%s4935_s0 + $0x170] sm:$0xff] }
  0x48   :  { %223 = vst.msk [vmem:[#allocation2 + $0x70] sm:$0xff] %vm208_vm1, %v158_v16  ;;  %224 = vst.msk [vmem:[#allocation2 + $0x78] sm:$0xff] %vm208_vm1, %v159_v17  ;;  %v401_v28 = vld [vmem:[#allocation2] sm:$0xff]  ;;  %v402_v29 = vld [vmem:[#allocation2 + $0x8] sm:$0xff] }
  0x49   :  { %225 = vst.msk [vmem:[#allocation2 + $0x80] sm:$0xff] %vm208_vm1, %v160_v18  ;;  %226 = vst.msk [vmem:[#allocation2 + $0x88] sm:$0xff] %vm208_vm1, %v161_v19  ;;  %v403_v30 = vld [vmem:[#allocation2 + $0x10] sm:$0xff]  ;;  %3163 = vmatprep.mubr.msk.f32.mxu0 %vm15_vm0, %v401_v28  ;;  %v404_v31 = vld [vmem:[#allocation2 + $0x18] sm:$0xff] }
  0x4a   :  { %227 = vst.msk [vmem:[#allocation2 + $0x90] sm:$0xff] %vm208_vm1, %v162_v20  ;;  %228 = vst.msk [vmem:[#allocation2 + $0x98] sm:$0xff] %vm208_vm1, %v163_v21  ;;  %3164 = vmatmul.mubr.msk.f32.vlgmr.msra.gmra.mrb[0].mxu0 %vm15_vm0, %v402_v29  ;;  %v405_v32 = vld [vmem:[#allocation2 + $0x20] sm:$0xff]  ;;  %v406_v33 = vld [vmem:[#allocation2 + $0x28] sm:$0xff] }
  0x4b   :  { %229 = vst.msk [vmem:[#allocation2 + $0xa0] sm:$0xff] %vm208_vm1, %v164_v22  ;;  %230 = vst.msk [vmem:[#allocation2 + $0xa8] sm:$0xff] %vm208_vm1, %v165_v23  ;;  %3166 = vmatprep.mubr.msk.f32.mxu0 %vm15_vm0, %v403_v30  ;;  %v407_v34 = vld [vmem:[#allocation2 + $0x30] sm:$0xff]  ;;  %v408_v36 = vld [vmem:[#allocation2 + $0x38] sm:$0xff] }
  0x4c   :  { %231 = vst.msk [vmem:[#allocation2 + $0xb0] sm:$0xff] %vm208_vm1, %v166_v24  ;;  %232 = vst.msk [vmem:[#allocation2 + $0xb8] sm:$0xff] %vm208_vm1, %v167_v25  ;;  %v409_v40 = vld [vmem:[#allocation2 + $0x40] sm:$0xff]  ;;  %v410_v50 = vld [vmem:[#allocation2 + $0x48] sm:$0xff] }
  0x4d   :  { %233 = vst.msk [vmem:[#allocation2 + $0xc0] sm:$0xff] %vm208_vm1, %v168_v26  ;;  %234 = vst.msk [vmem:[#allocation2 + $0xc8] sm:$0xff] %vm208_vm1, %v169_v27  ;;  %v411_v60 = vld [vmem:[#allocation2 + $0x50] sm:$0xff]  ;;  %v412_v63 = vld [vmem:[#allocation2 + $0x58] sm:$0xff] }
  0x4e   :  { %3167 = vmatmul.mubr.msk.f32.gmra.mrb[2].mxu0 %vm15_vm0, %v404_v31  ;;  %235 = vst.msk [vmem:[#allocation2 + $0xd0] sm:$0xff] %vm208_vm1, %v170_v35  ;;  %236 = vst.msk [vmem:[#allocation2 + $0xd8] sm:$0xff] %vm208_vm1, %v171_v37  ;;  %v413_v0 = vld [vmem:[#allocation2 + $0x60] sm:$0xff]  ;;  %v414_v4 = vld [vmem:[#allocation2 + $0x68] sm:$0xff] }
  0x4f   :  { %3169 = vmatprep.mubr.msk.f32.mxu0 %vm15_vm0, %v405_v32  ;;  %237 = vst.msk [vmem:[#allocation2 + $0xe0] sm:$0xff] %vm208_vm1, %v172_v38  ;;  %238 = vst.msk [vmem:[#allocation2 + $0xe8] sm:$0xff] %vm208_vm1, %v173_v39  ;;  %v415_v5 = vld [vmem:[#allocation2 + $0x70] sm:$0xff]  ;;  %v416_v9 = vld [vmem:[#allocation2 + $0x78] sm:$0xff] }
  0x50   :  { %239 = vst.msk [vmem:[#allocation2 + $0xf0] sm:$0xff] %vm208_vm1, %v174_v41  ;;  %240 = vst.msk [vmem:[#allocation2 + $0xf8] sm:$0xff] %vm208_vm1, %v175_v42  ;;  %v417_v13 = vld [vmem:[#allocation2 + $0x80] sm:$0xff]  ;;  %v191_v16 = vld [vmem:[%s4935_s0 + $0x178] sm:$0xff] }
  0x51   :  { %241 = vst.msk [vmem:[#allocation2 + $0x100] sm:$0xff] %vm208_vm1, %v176_v43  ;;  %242 = vst.msk [vmem:[#allocation2 + $0x108] sm:$0xff] %vm208_vm1, %v177_v44  ;;  %v299_v17 = vld [vmem:[%s4936_s1 + $0xd0] sm:$0xff]  ;;  %v300_v18 = vld [vmem:[%s4936_s1 + $0xd8] sm:$0xff] }
  0x52   :  { %3170 = vmatmul.mubr.msk.f32.gmra.mrb[4].mxu0 %vm15_vm0, %v406_v33  ;;  %243 = vst.msk [vmem:[#allocation2 + $0x110] sm:$0xff] %vm208_vm1, %v178_v45  ;;  %244 = vst.msk [vmem:[#allocation2 + $0x118] sm:$0xff] %vm208_vm1, %v179_v46  ;;  %v192_v19 = vld [vmem:[%s4935_s0 + $0x180] sm:$0xff]  ;;  %v193_v20 = vld [vmem:[%s4935_s0 + $0x188] sm:$0xff] }
  0x53   :  { %3172 = vmatprep.mubr.msk.f32.mxu0 %vm15_vm0, %v407_v34  ;;  %245 = vst.msk [vmem:[#allocation2 + $0x120] sm:$0xff] %vm208_vm1, %v180_v47  ;;  %246 = vst.msk [vmem:[#allocation2 + $0x128] sm:$0xff] %vm208_vm1, %v181_v48  ;;  %v301_v21 = vld [vmem:[%s4936_s1 + $0xe0] sm:$0xff]  ;;  %v302_v22 = vld [vmem:[%s4936_s1 + $0xe8] sm:$0xff] }
  0x54   :  { %247 = vst.msk [vmem:[#allocation2 + $0x130] sm:$0xff] %vm208_vm1, %v182_v49  ;;  %248 = vst.msk [vmem:[#allocation2 + $0x138] sm:$0xff] %vm208_vm1, %v183_v51  ;;  %v194_v23 = vld [vmem:[%s4935_s0 + $0x190] sm:$0xff]  ;;  %v418_v24 = vld [vmem:[#allocation2 + $0x88] sm:$0xff] }
  0x55   :  { %355 = vst.msk [vmem:[#allocation2 + $0x290] sm:$0xff] %vm208_vm1, %v291_v52  ;;  %356 = vst.msk [vmem:[#allocation2 + $0x298] sm:$0xff] %vm208_vm1, %v292_v53  ;;  %v195_v25 = vld [vmem:[%s4935_s0 + $0x198] sm:$0xff]  ;;  %v303_v26 = vld [vmem:[%s4936_s1 + $0xf0] sm:$0xff] }
  0x56   :  { %3173 = vmatmul.mubr.msk.f32.gmra.mrb[6].mxu0 %vm15_vm0, %v408_v36  ;;  %249 = vst.msk [vmem:[#allocation2 + $0x140] sm:$0xff] %vm208_vm1, %v184_v54  ;;  %250 = vst.msk [vmem:[#allocation2 + $0x148] sm:$0xff] %vm208_vm1, %v185_v55  ;;  %v304_v27 = vld [vmem:[%s4936_s1 + $0xf8] sm:$0xff]  ;;  %v196_v28 = vld [vmem:[%s4935_s0 + $0x1a0] sm:$0xff] }
  0x57   :  { %3175 = vmatprep.mubr.msk.f32.mxu0 %vm15_vm0, %v409_v40  ;;  %357 = vst.msk [vmem:[#allocation2 + $0x2a0] sm:$0xff] %vm208_vm1, %v293_v56  ;;  %358 = vst.msk [vmem:[#allocation2 + $0x2a8] sm:$0xff] %vm208_vm1, %v294_v57  ;;  %v197_v29 = vld [vmem:[%s4935_s0 + $0x1a8] sm:$0xff]  ;;  %v305_v30 = vld [vmem:[%s4936_s1 + $0x100] sm:$0xff] }
  0x58   :  { %251 = vst.msk [vmem:[#allocation2 + $0x150] sm:$0xff] %vm208_vm1, %v186_v58  ;;  %252 = vst.msk [vmem:[#allocation2 + $0x158] sm:$0xff] %vm208_vm1, %v187_v59  ;;  %v306_v31 = vld [vmem:[%s4936_s1 + $0x108] sm:$0xff]  ;;  %v198_v32 = vld [vmem:[%s4935_s0 + $0x1b0] sm:$0xff] }
  0x59   :  { %359 = vst.msk [vmem:[#allocation2 + $0x2b0] sm:$0xff] %vm208_vm1, %v295_v61  ;;  %360 = vst.msk [vmem:[#allocation2 + $0x2b8] sm:$0xff] %vm208_vm1, %v296_v62  ;;  %v199_v33 = vld [vmem:[%s4935_s0 + $0x1b8] sm:$0xff]  ;;  %v419_v34 = vld [vmem:[#allocation2 + $0x90] sm:$0xff] }
  0x5a   :  { %3176 = vmatmul.mubr.msk.f32.gmra.mrb[8].mxu0 %vm15_vm0, %v410_v50  ;;  %253 = vst.msk [vmem:[#allocation2 + $0x160] sm:$0xff] %vm208_vm1, %v188_v8  ;;  %254 = vst.msk [vmem:[#allocation2 + $0x168] sm:$0xff] %vm208_vm1, %v189_v10  ;;  %v307_v35 = vld [vmem:[%s4936_s1 + $0x110] sm:$0xff]  ;;  %v308_v36 = vld [vmem:[%s4936_s1 + $0x118] sm:$0xff] }
  0x5b   :  { %3178 = vmatprep.mubr.msk.f32.mxu0 %vm15_vm0, %v411_v60  ;;  %361 = vst.msk [vmem:[#allocation2 + $0x2c0] sm:$0xff] %vm208_vm1, %v297_v11  ;;  %362 = vst.msk [vmem:[#allocation2 + $0x2c8] sm:$0xff] %vm208_vm1, %v298_v12  ;;  %v420_v40 = vld [vmem:[#allocation2 + $0x98] sm:$0xff]  ;;  %v421_v41 = vld [vmem:[#allocation2 + $0xa0] sm:$0xff] }
  0x5c   :  { %v483_v1 = vld [vmem:[#allocation2 + $0x290] sm:$0xff]  ;;  %v484_v2 = vld [vmem:[#allocation2 + $0x298] sm:$0xff]  ;;  %255 = vst.msk [vmem:[#allocation2 + $0x170] sm:$0xff] %vm208_vm1, %v190_v15  ;;  %256 = vst.msk [vmem:[#allocation2 + $0x178] sm:$0xff] %vm208_vm1, %v191_v16 }
  0x5d   :  { %3286 = vmatprep.mubr.msk.f32.mxu1 %vm15_vm0, %v483_v1  ;;  %363 = vst.msk [vmem:[#allocation2 + $0x2d0] sm:$0xff] %vm208_vm1, %v299_v17  ;;  %364 = vst.msk [vmem:[#allocation2 + $0x2d8] sm:$0xff] %vm208_vm1, %v300_v18  ;;  %v422_v44 = vld [vmem:[#allocation2 + $0xa8] sm:$0xff]  ;;  %v423_v45 = vld [vmem:[#allocation2 + $0xb0] sm:$0xff] }
  0x5e   :  { %3179 = vmatmul.mubr.msk.f32.gmra.mrb[10].mxu0 %vm15_vm0, %v412_v63  ;;  %v485_v3 = vld [vmem:[#allocation2 + $0x2a0] sm:$0xff]  ;;  %3287 = vmatmul.mubr.msk.f32.vlgmr.msra.gmra.mrb[0].mxu1 %vm15_vm0, %v484_v2  ;;  %v486_v6 = vld [vmem:[#allocation2 + $0x2a8] sm:$0xff]  ;;  %257 = vst.msk [vmem:[#allocation2 + $0x180] sm:$0xff] %vm208_vm1, %v192_v19  ;;  %258 = vst.msk [vmem:[#allocation2 + $0x188] sm:$0xff] %vm208_vm1, %v193_v20 }
  0x5f   :  { %3181 = vmatprep.mubr.msk.f32.mxu0 %vm15_vm0, %v413_v0  ;;  %3289 = vmatprep.mubr.msk.f32.mxu1 %vm15_vm0, %v485_v3  ;;  %365 = vst.msk [vmem:[#allocation2 + $0x2e0] sm:$0xff] %vm208_vm1, %v301_v21  ;;  %366 = vst.msk [vmem:[#allocation2 + $0x2e8] sm:$0xff] %vm208_vm1, %v302_v22  ;;  %v200_v48 = vld [vmem:[%s4935_s0 + $0x1c0] sm:$0xff]  ;;  %v424_v49 = vld [vmem:[#allocation2 + $0xb8] sm:$0xff] }
  0x60   :  { %v487_v7 = vld [vmem:[#allocation2 + $0x2b0] sm:$0xff]  ;;  %v488_v14 = vld [vmem:[#allocation2 + $0x2b8] sm:$0xff]  ;;  %259 = vst.msk [vmem:[#allocation2 + $0x190] sm:$0xff] %vm208_vm1, %v194_v23  ;;  %260 = vst.msk [vmem:[#allocation2 + $0x198] sm:$0xff] %vm208_vm1, %v195_v25 }
  0x61   :  { %367 = vst.msk [vmem:[#allocation2 + $0x2f0] sm:$0xff] %vm208_vm1, %v303_v26  ;;  %368 = vst.msk [vmem:[#allocation2 + $0x2f8] sm:$0xff] %vm208_vm1, %v304_v27  ;;  %v201_v50 = vld [vmem:[%s4935_s0 + $0x1c8] sm:$0xff]  ;;  %v309_v51 = vld [vmem:[%s4936_s1 + $0x120] sm:$0xff] }
  0x62   :  { %3182 = vmatmul.mubr.msk.f32.gmra.mrb[12].mxu0 %vm15_vm0, %v414_v4  ;;  %3290 = vmatmul.mubr.msk.f32.gmra.mrb[2].mxu1 %vm15_vm0, %v486_v6  ;;  %261 = vst.msk [vmem:[#allocation2 + $0x1a0] sm:$0xff] %vm208_vm1, %v196_v28  ;;  %262 = vst.msk [vmem:[#allocation2 + $0x1a8] sm:$0xff] %vm208_vm1, %v197_v29  ;;  %v489_v37 = vld [vmem:[#allocation2 + $0x2c0] sm:$0xff]  ;;  %v490_v38 = vld [vmem:[#allocation2 + $0x2c8] sm:$0xff] }
  0x63   :  { %3184 = vmatprep.mubr.msk.f32.mxu0 %vm15_vm0, %v415_v5  ;;  %3292 = vmatprep.mubr.msk.f32.mxu1 %vm15_vm0, %v487_v7  ;;  %369 = vst.msk [vmem:[#allocation2 + $0x300] sm:$0xff] %vm208_vm1, %v305_v30  ;;  %370 = vst.msk [vmem:[#allocation2 + $0x308] sm:$0xff] %vm208_vm1, %v306_v31  ;;  %v310_v52 = vld [vmem:[%s4936_s1 + $0x128] sm:$0xff]  ;;  %v425_v53 = vld [vmem:[#allocation2 + $0xc0] sm:$0xff] }
  0x64   :  { %263 = vst.msk [vmem:[#allocation2 + $0x1b0] sm:$0xff] %vm208_vm1, %v198_v32  ;;  %264 = vst.msk [vmem:[#allocation2 + $0x1b8] sm:$0xff] %vm208_vm1, %v199_v33  ;;  %v491_v39 = vld [vmem:[#allocation2 + $0x2d0] sm:$0xff]  ;;  %v492_v42 = vld [vmem:[#allocation2 + $0x2d8] sm:$0xff] }
  0x65   :  { %371 = vst.msk [vmem:[#allocation2 + $0x310] sm:$0xff] %vm208_vm1, %v307_v35  ;;  %372 = vst.msk [vmem:[#allocation2 + $0x318] sm:$0xff] %vm208_vm1, %v308_v36  ;;  %v202_v55 = vld [vmem:[%s4935_s0 + $0x1d0] sm:$0xff]  ;;  %v203_v56 = vld [vmem:[%s4935_s0 + $0x1d8] sm:$0xff] }
  0x66   :  { %3185 = vmatmul.mubr.msk.f32.gmra.mrb[14].mxu0 %vm15_vm0, %v416_v9  ;;  %3293 = vmatmul.mubr.msk.f32.gmra.mrb[4].mxu1 %vm15_vm0, %v488_v14  ;;  %v493_v43 = vld [vmem:[#allocation2 + $0x2e0] sm:$0xff]  ;;  %v494_v46 = vld [vmem:[#allocation2 + $0x2e8] sm:$0xff]  ;;  %265 = vst.msk [vmem:[#allocation2 + $0x1c0] sm:$0xff] %vm208_vm1, %v200_v48  ;;  %266 = vst.msk [vmem:[#allocation2 + $0x1c8] sm:$0xff] %vm208_vm1, %v201_v50 }
  0x67   :  { %3187 = vmatprep.mubr.msk.f32.mxu0 %vm15_vm0, %v417_v13  ;;  %3295 = vmatprep.mubr.msk.f32.mxu1 %vm15_vm0, %v489_v37  ;;  %373 = vst.msk [vmem:[#allocation2 + $0x320] sm:$0xff] %vm208_vm1, %v309_v51  ;;  %374 = vst.msk [vmem:[#allocation2 + $0x328] sm:$0xff] %vm208_vm1, %v310_v52  ;;  %v311_v57 = vld [vmem:[%s4936_s1 + $0x130] sm:$0xff]  ;;  %v312_v59 = vld [vmem:[%s4936_s1 + $0x138] sm:$0xff] }
  0x68   :  { %v495_v47 = vld [vmem:[#allocation2 + $0x2f0] sm:$0xff]  ;;  %v496_v54 = vld [vmem:[#allocation2 + $0x2f8] sm:$0xff]  ;;  %267 = vst.msk [vmem:[#allocation2 + $0x1d0] sm:$0xff] %vm208_vm1, %v202_v55  ;;  %268 = vst.msk [vmem:[#allocation2 + $0x1d8] sm:$0xff] %vm208_vm1, %v203_v56 }
  0x69   :  { %375 = vst.msk [vmem:[#allocation2 + $0x330] sm:$0xff] %vm208_vm1, %v311_v57  ;;  %v204_v60 = vld [vmem:[%s4935_s0 + $0x1e0] sm:$0xff]  ;;  %v205_v61 = vld [vmem:[%s4935_s0 + $0x1e8] sm:$0xff]  ;;  %376 = vst.msk [vmem:[#allocation2 + $0x338] sm:$0xff] %vm208_vm1, %v312_v59 }
  0x6a   :  { %3188 = vmatmul.mubr.msk.f32.gmra.mrb[16].mxu0 %vm15_vm0, %v418_v24  ;;  %3296 = vmatmul.mubr.msk.f32.gmra.mrb[6].mxu1 %vm15_vm0, %v490_v38  ;;  %v497_v58 = vld [vmem:[#allocation2 + $0x300] sm:$0xff]  ;;  %269 = vst.msk [vmem:[#allocation2 + $0x1e0] sm:$0xff] %vm208_vm1, %v204_v60  ;;  %270 = vst.msk [vmem:[#allocation2 + $0x1e8] sm:$0xff] %vm208_vm1, %v205_v61  ;;  %v314_v63 = vld [vmem:[%s4936_s1 + $0x148] sm:$0xff] }
  0x6b   :  { %3190 = vmatprep.mubr.msk.f32.mxu0 %vm15_vm0, %v419_v34  ;;  %3298 = vmatprep.mubr.msk.f32.mxu1 %vm15_vm0, %v491_v39  ;;  %v313_v62 = vld [vmem:[%s4936_s1 + $0x140] sm:$0xff]  ;;  %v206_v0 = vld [vmem:[%s4935_s0 + $0x1f0] sm:$0xff]  ;;  %v426_v1 = vld [vmem:[#allocation2 + $0xc8] sm:$0xff]  ;;  %378 = vst.msk [vmem:[#allocation2 + $0x348] sm:$0xff] %vm208_vm1, %v314_v63 }
  0x6c   :  { %377 = vst.msk [vmem:[#allocation2 + $0x340] sm:$0xff] %vm208_vm1, %v313_v62  ;;  %271 = vst.msk [vmem:[#allocation2 + $0x1f0] sm:$0xff] %vm208_vm1, %v206_v0  ;;  %v207_v2 = vld [vmem:[%s4935_s0 + $0x1f8] sm:$0xff]  ;;  %v315_v3 = vld [vmem:[%s4936_s1 + $0x150] sm:$0xff] }
  0x6d   :  { %v316_v4 = vld [vmem:[%s4936_s1 + $0x158] sm:$0xff]  ;;  %v427_v5 = vld [vmem:[#allocation2 + $0xd0] sm:$0xff]  ;;  %272 = vst.msk [vmem:[#allocation2 + $0x1f8] sm:$0xff] %vm208_vm1, %v207_v2  ;;  %379 = vst.msk [vmem:[#allocation2 + $0x350] sm:$0xff] %vm208_vm1, %v315_v3 }
  0x6e   :  { %3191 = vmatmul.mubr.msk.f32.gmra.mrb[18].mxu0 %vm15_vm0, %v420_v40  ;;  %3299 = vmatmul.mubr.msk.f32.gmra.mrb[8].mxu1 %vm15_vm0, %v492_v42  ;;  %380 = vst.msk [vmem:[#allocation2 + $0x358] sm:$0xff] %vm208_vm1, %v316_v4  ;;  %v273_v6 = vld [vmem:[%s4936_s1] sm:$0xff]  ;;  %v274_v7 = vld [vmem:[%s4936_s1 + $0x8] sm:$0xff]  ;;  %v275_v10 = vld [vmem:[%s4936_s1 + $0x10] sm:$0xff] }
  0x6f   :  { %3193 = vmatprep.mubr.msk.f32.mxu0 %vm15_vm0, %v421_v41  ;;  %3301 = vmatprep.mubr.msk.f32.mxu1 %vm15_vm0, %v493_v43  ;;  %v317_v8 = vld [vmem:[%s4936_s1 + $0x160] sm:$0xff]  ;;  %337 = vst.msk [vmem:[#allocation2 + $0x200] sm:$0xff] %vm208_vm1, %v273_v6  ;;  %338 = vst.msk [vmem:[#allocation2 + $0x208] sm:$0xff] %vm208_vm1, %v274_v7  ;;  %v318_v9 = vld [vmem:[%s4936_s1 + $0x168] sm:$0xff] }
  0x70   :  { %381 = vst.msk [vmem:[#allocation2 + $0x360] sm:$0xff] %vm208_vm1, %v317_v8  ;;  %v276_v11 = vld [vmem:[%s4936_s1 + $0x18] sm:$0xff]  ;;  %v498_v12 = vld [vmem:[#allocation2 + $0x308] sm:$0xff]  ;;  %382 = vst.msk [vmem:[#allocation2 + $0x368] sm:$0xff] %vm208_vm1, %v318_v9 }
  0x71   :  { %339 = vst.msk [vmem:[#allocation2 + $0x210] sm:$0xff] %vm208_vm1, %v275_v10  ;;  %340 = vst.msk [vmem:[#allocation2 + $0x218] sm:$0xff] %vm208_vm1, %v276_v11  ;;  %v319_v13 = vld [vmem:[%s4936_s1 + $0x170] sm:$0xff]  ;;  %v320_v14 = vld [vmem:[%s4936_s1 + $0x178] sm:$0xff] }
  0x72   :  { %3194 = vmatmul.mubr.msk.f32.gmra.mrb[20].mxu0 %vm15_vm0, %v422_v44  ;;  %3302 = vmatmul.mubr.msk.f32.gmra.mrb[10].mxu1 %vm15_vm0, %v494_v46  ;;  %v499_v15 = vld [vmem:[#allocation2 + $0x310] sm:$0xff]  ;;  %383 = vst.msk [vmem:[#allocation2 + $0x370] sm:$0xff] %vm208_vm1, %v319_v13  ;;  %384 = vst.msk [vmem:[#allocation2 + $0x378] sm:$0xff] %vm208_vm1, %v320_v14  ;;  %v428_v16 = vld [vmem:[#allocation2 + $0xd8] sm:$0xff] }
  0x73   :  { %3196 = vmatprep.mubr.msk.f32.mxu0 %vm15_vm0, %v423_v45  ;;  %3304 = vmatprep.mubr.msk.f32.mxu1 %vm15_vm0, %v495_v47  ;;  %v429_v17 = vld [vmem:[#allocation2 + $0xe0] sm:$0xff]  ;;  %v500_v18 = vld [vmem:[#allocation2 + $0x318] sm:$0xff]  ;;  %v430_v20 = vld [vmem:[#allocation2 + $0xe8] sm:$0xff] }
  0x74   :  { %v501_v19 = vld [vmem:[#allocation2 + $0x320] sm:$0xff]  ;;  %v431_v21 = vld [vmem:[#allocation2 + $0xf0] sm:$0xff]  ;;  %v502_v22 = vld [vmem:[#allocation2 + $0x328] sm:$0xff] }
  0x75   :  { %v503_v23 = vld [vmem:[#allocation2 + $0x330] sm:$0xff]  ;;  %v277_v24 = vld [vmem:[%s4936_s1 + $0x20] sm:$0xff]  ;;  %v432_v25 = vld [vmem:[#allocation2 + $0xf8] sm:$0xff] }
  0x76   :  { %3197 = vmatmul.mubr.msk.f32.gmra.mrb[22].mxu0 %vm15_vm0, %v424_v49  ;;  %3305 = vmatmul.mubr.msk.f32.gmra.mrb[12].mxu1 %vm15_vm0, %v496_v54  ;;  %341 = vst.msk [vmem:[#allocation2 + $0x220] sm:$0xff] %vm208_vm1, %v277_v24  ;;  %v278_v26 = vld [vmem:[%s4936_s1 + $0x28] sm:$0xff]  ;;  %v321_v27 = vld [vmem:[%s4936_s1 + $0x180] sm:$0xff]  ;;  %v504_v30 = vld [vmem:[#allocation2 + $0x338] sm:$0xff] }
  0x77   :  { %3199 = vmatprep.mubr.msk.f32.mxu0 %vm15_vm0, %v425_v53  ;;  %3307 = vmatprep.mubr.msk.f32.mxu1 %vm15_vm0, %v497_v58  ;;  %v322_v28 = vld [vmem:[%s4936_s1 + $0x188] sm:$0xff]  ;;  %v433_v29 = vld [vmem:[#allocation2 + $0x100] sm:$0xff]  ;;  %342 = vst.msk [vmem:[#allocation2 + $0x228] sm:$0xff] %vm208_vm1, %v278_v26  ;;  %385 = vst.msk [vmem:[#allocation2 + $0x380] sm:$0xff] %vm208_vm1, %v321_v27 }
  0x78   :  { %386 = vst.msk [vmem:[#allocation2 + $0x388] sm:$0xff] %vm208_vm1, %v322_v28  ;;  %v279_v31 = vld [vmem:[%s4936_s1 + $0x30] sm:$0xff]  ;;  %v280_v32 = vld [vmem:[%s4936_s1 + $0x38] sm:$0xff]  ;;  %v505_v34 = vld [vmem:[#allocation2 + $0x340] sm:$0xff] }
  0x79   :  { %v323_v33 = vld [vmem:[%s4936_s1 + $0x190] sm:$0xff]  ;;  %343 = vst.msk [vmem:[#allocation2 + $0x230] sm:$0xff] %vm208_vm1, %v279_v31  ;;  %344 = vst.msk [vmem:[#allocation2 + $0x238] sm:$0xff] %vm208_vm1, %v280_v32  ;;  %v324_v35 = vld [vmem:[%s4936_s1 + $0x198] sm:$0xff] }
  0x7a   :  { %3200 = vmatmul.mubr.msk.f32.gmra.mrb[24].mxu0 %vm15_vm0, %v426_v1  ;;  %3308 = vmatmul.mubr.msk.f32.gmra.mrb[14].mxu1 %vm15_vm0, %v498_v12  ;;  %387 = vst.msk [vmem:[#allocation2 + $0x390] sm:$0xff] %vm208_vm1, %v323_v33  ;;  %v281_v36 = vld [vmem:[%s4936_s1 + $0x40] sm:$0xff]  ;;  %v282_v37 = vld [vmem:[%s4936_s1 + $0x48] sm:$0xff]  ;;  %388 = vst.msk [vmem:[#allocation2 + $0x398] sm:$0xff] %vm208_vm1, %v324_v35 }
  0x7b   :  { %3202 = vmatprep.mubr.msk.f32.mxu0 %vm15_vm0, %v427_v5  ;;  %3310 = vmatprep.mubr.msk.f32.mxu1 %vm15_vm0, %v499_v15  ;;  %345 = vst.msk [vmem:[#allocation2 + $0x240] sm:$0xff] %vm208_vm1, %v281_v36  ;;  %346 = vst.msk [vmem:[#allocation2 + $0x248] sm:$0xff] %vm208_vm1, %v282_v37  ;;  %v325_v38 = vld [vmem:[%s4936_s1 + $0x1a0] sm:$0xff]  ;;  %v326_v39 = vld [vmem:[%s4936_s1 + $0x1a8] sm:$0xff] }
  0x7c   :  { %v283_v40 = vld [vmem:[%s4936_s1 + $0x50] sm:$0xff]  ;;  %v434_v41 = vld [vmem:[#allocation2 + $0x108] sm:$0xff]  ;;  %389 = vst.msk [vmem:[#allocation2 + $0x3a0] sm:$0xff] %vm208_vm1, %v325_v38  ;;  %390 = vst.msk [vmem:[#allocation2 + $0x3a8] sm:$0xff] %vm208_vm1, %v326_v39 }
  0x7d   :  { %347 = vst.msk [vmem:[#allocation2 + $0x250] sm:$0xff] %vm208_vm1, %v283_v40  ;;  %v284_v42 = vld [vmem:[%s4936_s1 + $0x58] sm:$0xff]  ;;  %v327_v43 = vld [vmem:[%s4936_s1 + $0x1b0] sm:$0xff]  ;;  %v285_v46 = vld [vmem:[%s4936_s1 + $0x60] sm:$0xff] }
  0x7e   :  { %3203 = vmatmul.mubr.msk.f32.gmra.mrb[26].mxu0 %vm15_vm0, %v428_v16  ;;  %3311 = vmatmul.mubr.msk.f32.gmra.mrb[16].mxu1 %vm15_vm0, %v500_v18  ;;  %v328_v44 = vld [vmem:[%s4936_s1 + $0x1b8] sm:$0xff]  ;;  %v435_v45 = vld [vmem:[#allocation2 + $0x110] sm:$0xff]  ;;  %348 = vst.msk [vmem:[#allocation2 + $0x258] sm:$0xff] %vm208_vm1, %v284_v42  ;;  %391 = vst.msk [vmem:[#allocation2 + $0x3b0] sm:$0xff] %vm208_vm1, %v327_v43 }
  0x7f   :  { %3205 = vmatprep.mubr.msk.f32.mxu0 %vm15_vm0, %v429_v17  ;;  %3313 = vmatprep.mubr.msk.f32.mxu1 %vm15_vm0, %v501_v19  ;;  %392 = vst.msk [vmem:[#allocation2 + $0x3b8] sm:$0xff] %vm208_vm1, %v328_v44  ;;  %v286_v47 = vld [vmem:[%s4936_s1 + $0x68] sm:$0xff]  ;;  %v329_v48 = vld [vmem:[%s4936_s1 + $0x1c0] sm:$0xff]  ;;  %349 = vst.msk [vmem:[#allocation2 + $0x260] sm:$0xff] %vm208_vm1, %v285_v46 }
  0x80   :  { %350 = vst.msk [vmem:[#allocation2 + $0x268] sm:$0xff] %vm208_vm1, %v286_v47  ;;  %393 = vst.msk [vmem:[#allocation2 + $0x3c0] sm:$0xff] %vm208_vm1, %v329_v48  ;;  %v330_v49 = vld [vmem:[%s4936_s1 + $0x1c8] sm:$0xff]  ;;  %v287_v50 = vld [vmem:[%s4936_s1 + $0x70] sm:$0xff] }
  0x81   :  { %v288_v51 = vld [vmem:[%s4936_s1 + $0x78] sm:$0xff]  ;;  %v506_v52 = vld [vmem:[#allocation2 + $0x348] sm:$0xff]  ;;  %394 = vst.msk [vmem:[#allocation2 + $0x3c8] sm:$0xff] %vm208_vm1, %v330_v49  ;;  %351 = vst.msk [vmem:[#allocation2 + $0x270] sm:$0xff] %vm208_vm1, %v287_v50 }
  0x82   :  { %3206 = vmatmul.mubr.msk.f32.gmra.mrb[28].mxu0 %vm15_vm0, %v430_v20  ;;  %3314 = vmatmul.mubr.msk.f32.gmra.mrb[18].mxu1 %vm15_vm0, %v502_v22  ;;  %352 = vst.msk [vmem:[#allocation2 + $0x278] sm:$0xff] %vm208_vm1, %v288_v51  ;;  %v331_v53 = vld [vmem:[%s4936_s1 + $0x1d0] sm:$0xff]  ;;  %v332_v54 = vld [vmem:[%s4936_s1 + $0x1d8] sm:$0xff]  ;;  %v437_v57 = vld [vmem:[#allocation2 + $0x120] sm:$0xff] }
  0x83   :  { %3208 = vmatprep.mubr.msk.f32.mxu0 %vm15_vm0, %v431_v21  ;;  %3316 = vmatprep.mubr.msk.f32.mxu1 %vm15_vm0, %v503_v23  ;;  %v507_v55 = vld [vmem:[#allocation2 + $0x350] sm:$0xff]  ;;  %395 = vst.msk [vmem:[#allocation2 + $0x3d0] sm:$0xff] %vm208_vm1, %v331_v53  ;;  %396 = vst.msk [vmem:[#allocation2 + $0x3d8] sm:$0xff] %vm208_vm1, %v332_v54  ;;  %v436_v56 = vld [vmem:[#allocation2 + $0x118] sm:$0xff] }
  0x84   :  { %v508_v58 = vld [vmem:[#allocation2 + $0x358] sm:$0xff]  ;;  %v509_v59 = vld [vmem:[#allocation2 + $0x360] sm:$0xff]  ;;  %v438_v60 = vld [vmem:[#allocation2 + $0x128] sm:$0xff] }
  0x85   :  { %v439_v61 = vld [vmem:[#allocation2 + $0x130] sm:$0xff]  ;;  %v510_v62 = vld [vmem:[#allocation2 + $0x368] sm:$0xff]  ;;  %v289_v0 = vld [vmem:[%s4936_s1 + $0x80] sm:$0xff] }
  0x86   :  { %3209 = vmatmul.mubr.msk.f32.gmra.mrb[30].mxu0 %vm15_vm0, %v432_v25  ;;  %3317 = vmatmul.mubr.msk.f32.gmra.mrb[20].mxu1 %vm15_vm0, %v504_v30  ;;  %v511_v63 = vld [vmem:[#allocation2 + $0x370] sm:$0xff]  ;;  %353 = vst.msk [vmem:[#allocation2 + $0x280] sm:$0xff] %vm208_vm1, %v289_v0  ;;  %v290_v1 = vld [vmem:[%s4936_s1 + $0x88] sm:$0xff]  ;;  %v333_v2 = vld [vmem:[%s4936_s1 + $0x1e0] sm:$0xff] }
  0x87   :  { %3211 = vmatprep.mubr.msk.f32.mxu0 %vm15_vm0, %v433_v29  ;;  %3319 = vmatprep.mubr.msk.f32.mxu1 %vm15_vm0, %v505_v34  ;;  %v334_v3 = vld [vmem:[%s4936_s1 + $0x1e8] sm:$0xff]  ;;  %354 = vst.msk [vmem:[#allocation2 + $0x288] sm:$0xff] %vm208_vm1, %v290_v1  ;;  %397 = vst.msk [vmem:[#allocation2 + $0x3e0] sm:$0xff] %vm208_vm1, %v333_v2  ;;  %v335_v4 = vld [vmem:[%s4936_s1 + $0x1f0] sm:$0xff] }
  0x88   :  { %398 = vst.msk [vmem:[#allocation2 + $0x3e8] sm:$0xff] %vm208_vm1, %v334_v3  ;;  %v336_v5 = vld [vmem:[%s4936_s1 + $0x1f8] sm:$0xff] }
  0x8a   :  { %3212 = vmatmul.mubr.msk.f32.gmra.mrb[32].mxu0 %vm15_vm0, %v434_v41  ;;  %3320 = vmatmul.mubr.msk.f32.gmra.mrb[22].mxu1 %vm15_vm0, %v506_v52 }
  0x8b   :  { %3214 = vmatprep.mubr.msk.f32.mxu0 %vm15_vm0, %v435_v45  ;;  %3322 = vmatprep.mubr.msk.f32.mxu1 %vm15_vm0, %v507_v55 }
  0x8e   :  { %3215 = vmatmul.mubr.msk.f32.gmra.mrb[34].mxu0 %vm15_vm0, %v436_v56  ;;  %3323 = vmatmul.mubr.msk.f32.gmra.mrb[24].mxu1 %vm15_vm0, %v508_v58 }
  0x8f   :  { %3217 = vmatprep.mubr.msk.f32.mxu0 %vm15_vm0, %v437_v57  ;;  %3325 = vmatprep.mubr.msk.f32.mxu1 %vm15_vm0, %v509_v59 }
  0x92   :  { %3218 = vmatmul.mubr.msk.f32.gmra.mrb[36].mxu0 %vm15_vm0, %v438_v60 }
  0x93   :  { %8 = vsyncpa [#allocation4], 0  ;;  %3220 = vmatprep.mubr.msk.f32.mxu0 %vm15_vm0, %v439_v61  ;;  %v440_v6 = vld [vmem:[#allocation2 + $0x138] sm:$0xff]  ;;  %3326 = vmatmul.mubr.msk.f32.gmra.mrb[26].mxu1 %vm15_vm0, %v510_v62  ;;  %399 = vst.msk [vmem:[#allocation2 + $0x3f0] sm:$0xff] %vm208_vm1, %v335_v4  ;;  %v441_v7 = vld [vmem:[#allocation2 + $0x140] sm:$0xff]  ;;  %vm1619_vm2 = vcmask 523264  }
  0x94   :  { %400 = vst.msk [vmem:[#allocation2 + $0x3f8] sm:$0xff] %vm208_vm1, %v336_v5  ;;  %3328 = vmatprep.mubr.msk.f32.mxu1 %vm15_vm0, %v511_v63  ;;  %v512_v8 = vld [vmem:[#allocation2 + $0x378] sm:$0xff]  ;;  %v513_v9 = vld [vmem:[#allocation2 + $0x380] sm:$0xff]  ;;  %v442_v10 = vld [vmem:[#allocation2 + $0x148] sm:$0xff]  ;;  %vm2023_vm3 = vcmask 1041409   ;;  %vm2026_vm4 = vcmask 1042434  }
  0x95   :  { %v443_v11 = vld [vmem:[#allocation2 + $0x150] sm:$0xff]  ;;  %v514_v12 = vld [vmem:[#allocation2 + $0x388] sm:$0xff]  ;;  %v444_v14 = vld [vmem:[#allocation2 + $0x158] sm:$0xff]  ;;  %vm2029_vm5 = vcmask 1043459   ;;  %vm2032_vm6 = vcmask 1044484   ;;  %vm2035_vm7 = vcmask 1045509  }
  0x96   :  { %3221 = vmatmul.mubr.msk.f32.gmra.mrb[38].mxu0 %vm15_vm0, %v440_v6  ;;  %v515_v13 = vld [vmem:[#allocation2 + $0x390] sm:$0xff]  ;;  %v445_v15 = vld [vmem:[#allocation2 + $0x160] sm:$0xff]  ;;  %v516_v16 = vld [vmem:[#allocation2 + $0x398] sm:$0xff]  ;;  %vm2038_vm8 = vcmask 1046534   ;;  %vm2041_vm9 = vcmask 1047559  }
  0x97   :  { %3223 = vmatprep.mubr.msk.f32.mxu0 %vm15_vm0, %v441_v7  ;;  %3329 = vmatmul.mubr.msk.f32.gmra.mrb[28].mxu1 %vm15_vm0, %v512_v8  ;;  %v517_v17 = vld [vmem:[#allocation2 + $0x3a0] sm:$0xff]  ;;  %v446_v18 = vld [vmem:[#allocation2 + $0x168] sm:$0xff]  ;;  %v447_v19 = vld [vmem:[#allocation2 + $0x170] sm:$0xff] }
  0x98   :  { %3331 = vmatprep.mubr.msk.f32.mxu1 %vm15_vm0, %v513_v9  ;;  %v518_v20 = vld [vmem:[#allocation2 + $0x3a8] sm:$0xff]  ;;  %v519_v21 = vld [vmem:[#allocation2 + $0x3b0] sm:$0xff]  ;;  %v448_v22 = vld [vmem:[#allocation2 + $0x178] sm:$0xff] }
  0x99   :  { %v449_v23 = vld [vmem:[#allocation2 + $0x180] sm:$0xff]  ;;  %v520_v24 = vld [vmem:[#allocation2 + $0x3b8] sm:$0xff]  ;;  %v450_v26 = vld [vmem:[#allocation2 + $0x188] sm:$0xff] }
  0x9a   :  { %3224 = vmatmul.mubr.msk.f32.gmra.mrb[40].mxu0 %vm15_vm0, %v442_v10  ;;  %v521_v25 = vld [vmem:[#allocation2 + $0x3c0] sm:$0xff]  ;;  %v451_v27 = vld [vmem:[#allocation2 + $0x190] sm:$0xff]  ;;  %v522_v28 = vld [vmem:[#allocation2 + $0x3c8] sm:$0xff] }
  0x9b   :  { %3226 = vmatprep.mubr.msk.f32.mxu0 %vm15_vm0, %v443_v11  ;;  %3332 = vmatmul.mubr.msk.f32.gmra.mrb[30].mxu1 %vm15_vm0, %v514_v12  ;;  %v523_v29 = vld [vmem:[#allocation2 + $0x3d0] sm:$0xff]  ;;  %v452_v30 = vld [vmem:[#allocation2 + $0x198] sm:$0xff]  ;;  %v453_v31 = vld [vmem:[#allocation2 + $0x1a0] sm:$0xff] }
  0x9c   :  { %3334 = vmatprep.mubr.msk.f32.mxu1 %vm15_vm0, %v515_v13  ;;  %v524_v32 = vld [vmem:[#allocation2 + $0x3d8] sm:$0xff]  ;;  %v525_v33 = vld [vmem:[#allocation2 + $0x3e0] sm:$0xff]  ;;  %v454_v34 = vld [vmem:[#allocation2 + $0x1a8] sm:$0xff] }
  0x9d   :  { %v455_v35 = vld [vmem:[#allocation2 + $0x1b0] sm:$0xff]  ;;  %v526_v36 = vld [vmem:[#allocation2 + $0x3e8] sm:$0xff]  ;;  %v456_v38 = vld [vmem:[#allocation2 + $0x1b8] sm:$0xff] }
  0x9e   :  { %3227 = vmatmul.mubr.msk.f32.gmra.mrb[42].mxu0 %vm15_vm0, %v444_v14  ;;  %v527_v37 = vld [vmem:[#allocation2 + $0x3f0] sm:$0xff]  ;;  %v457_v39 = vld [vmem:[#allocation2 + $0x1c0] sm:$0xff]  ;;  %v528_v40 = vld [vmem:[#allocation2 + $0x3f8] sm:$0xff] }
  0x9f   :  { %3229 = vmatprep.mubr.msk.f32.mxu0 %vm15_vm0, %v445_v15  ;;  %3335 = vmatmul.mubr.msk.f32.gmra.mrb[32].mxu1 %vm15_vm0, %v516_v16  ;;  %v458_v41 = vld [vmem:[#allocation2 + $0x1c8] sm:$0xff]  ;;  %v459_v42 = vld [vmem:[#allocation2 + $0x1d0] sm:$0xff]  ;;  %v460_v43 = vld [vmem:[#allocation2 + $0x1d8] sm:$0xff] }
  0xa0   :  { %3337 = vmatprep.mubr.msk.f32.mxu1 %vm15_vm0, %v517_v17  ;;  %v461_v44 = vld [vmem:[#allocation2 + $0x1e0] sm:$0xff]  ;;  %v462_v45 = vld [vmem:[#allocation2 + $0x1e8] sm:$0xff]  ;;  %v463_v46 = vld [vmem:[#allocation2 + $0x1f0] sm:$0xff] }
  0xa1   :  { %v464_v47 = vld [vmem:[#allocation2 + $0x1f8] sm:$0xff]  ;;  %v465_v48 = vld [vmem:[#allocation2 + $0x200] sm:$0xff]  ;;  %v466_v49 = vld [vmem:[#allocation2 + $0x208] sm:$0xff] }
  0xa2   :  { %3230 = vmatmul.mubr.msk.f32.gmra.mrb[44].mxu0 %vm15_vm0, %v446_v18  ;;  %v467_v50 = vld [vmem:[#allocation2 + $0x210] sm:$0xff]  ;;  %v468_v51 = vld [vmem:[#allocation2 + $0x218] sm:$0xff]  ;;  %v469_v52 = vld [vmem:[#allocation2 + $0x220] sm:$0xff] }
  0xa3   :  { %3232 = vmatprep.mubr.msk.f32.mxu0 %vm15_vm0, %v447_v19  ;;  %3338 = vmatmul.mubr.msk.f32.gmra.mrb[34].mxu1 %vm15_vm0, %v518_v20  ;;  %v470_v53 = vld [vmem:[#allocation2 + $0x228] sm:$0xff]  ;;  %v471_v54 = vld [vmem:[#allocation2 + $0x230] sm:$0xff]  ;;  %v472_v55 = vld [vmem:[#allocation2 + $0x238] sm:$0xff] }
  0xa4   :  { %3340 = vmatprep.mubr.msk.f32.mxu1 %vm15_vm0, %v519_v21  ;;  %v473_v56 = vld [vmem:[#allocation2 + $0x240] sm:$0xff]  ;;  %v474_v57 = vld [vmem:[#allocation2 + $0x248] sm:$0xff]  ;;  %v475_v58 = vld [vmem:[#allocation2 + $0x250] sm:$0xff] }
  0xa5   :  { %v476_v59 = vld [vmem:[#allocation2 + $0x258] sm:$0xff]  ;;  %v477_v60 = vld [vmem:[#allocation2 + $0x260] sm:$0xff]  ;;  %v478_v61 = vld [vmem:[#allocation2 + $0x268] sm:$0xff] }
  0xa6   :  { %3233 = vmatmul.mubr.msk.f32.gmra.mrb[46].mxu0 %vm15_vm0, %v448_v22  ;;  %v479_v62 = vld [vmem:[#allocation2 + $0x270] sm:$0xff]  ;;  %v480_v63 = vld [vmem:[#allocation2 + $0x278] sm:$0xff]  ;;  %v481_v0 = vld [vmem:[#allocation2 + $0x280] sm:$0xff] }
  0xa7   :  { %3235 = vmatprep.mubr.msk.f32.mxu0 %vm15_vm0, %v449_v23  ;;  %3341 = vmatmul.mubr.msk.f32.gmra.mrb[36].mxu1 %vm15_vm0, %v520_v24  ;;  %v482_v1 = vld [vmem:[#allocation2 + $0x288] sm:$0xff]  ;;  %v1994_v3 = vld [vmem:[%s4937_s2 + $0x10] sm:$0xff]  ;;  %v1995_v24 = vld [vmem:[%s4937_s2 + $0x18] sm:$0xff] }
  0xa8   :  { %3343 = vmatprep.mubr.msk.f32.mxu1 %vm15_vm0, %v521_v25  ;;  %v1993_v2 = vld [vmem:[%s4937_s2 + $0x8] sm:$0xff]  ;;  %v1996_v25 = vld [vmem:[%s4937_s2 + $0x20] sm:$0xff] }
  0xa9   :  { %v3450_v4 = vpack.c.bf16 %v1994_v3, %v1993_v2  ;;  %v1997_v3 = vld [vmem:[%s4937_s2 + $0x28] sm:$0xff] }
  0xaa   :  { %3236 = vmatmul.mubr.msk.f32.gmra.mrb[48].mxu0 %vm15_vm0, %v450_v26 }
  0xab   :  { %3238 = vmatprep.mubr.msk.f32.mxu0 %vm15_vm0, %v451_v27  ;;  %3344 = vmatmul.mubr.msk.f32.gmra.mrb[38].mxu1 %vm15_vm0, %v522_v28  ;;  %v3454_v27 = vpack.c.bf16 %v1996_v25, %v1995_v24 }
  0xac   :  { %3346 = vmatprep.mubr.msk.f32.mxu1 %vm15_vm0, %v523_v29  ;;  %3451 = vmatprep.subr.bf16.mxu1 %v3450_v4 }
  0xad   :  { %3453 = vmatpush3.bf16.msra.mxu1 %v3450_v4  ;;  %v1998_v4 = vld [vmem:[%s4937_s2 + $0x30] sm:$0xff] }
  0xae   :  { %3239 = vmatmul.mubr.msk.f32.gmra.mrb[50].mxu0 %vm15_vm0, %v452_v30  ;;  %3455 = vmatprep.subr.bf16.mxu1 %v3454_v27 }
  0xaf   :  { %3241 = vmatprep.mubr.msk.f32.mxu0 %vm15_vm0, %v453_v31  ;;  %3347 = vmatmul.mubr.msk.f32.gmra.mrb[40].mxu1 %vm15_vm0, %v524_v32 }
  0xb0   :  { %3349 = vmatprep.mubr.msk.f32.mxu1 %vm15_vm0, %v525_v33 }
  0xb1   :  { %3457 = vmatpush3.bf16.msra.mxu1 %v3454_v27 }
  0xb2   :  { %3242 = vmatmul.mubr.msk.f32.gmra.mrb[52].mxu0 %vm15_vm0, %v454_v34 }
  0xb3   :  { %3244 = vmatprep.mubr.msk.f32.mxu0 %vm15_vm0, %v455_v35  ;;  %3350 = vmatmul.mubr.msk.f32.gmra.mrb[42].mxu1 %vm15_vm0, %v526_v36 }
  0xb4   :  { %3352 = vmatprep.mubr.msk.f32.mxu1 %vm15_vm0, %v527_v37 }
  0xb6   :  { %3245 = vmatmul.mubr.msk.f32.gmra.mrb[54].mxu0 %vm15_vm0, %v456_v38 }
  0xb7   :  { %3247 = vmatprep.mubr.msk.f32.mxu0 %vm15_vm0, %v457_v39  ;;  %3353 = vmatmul.mubr.msk.f32.gmra.mrb[44].mxu1 %vm15_vm0, %v528_v40 }
  0xba   :  { %3248 = vmatmul.mubr.msk.f32.gmra.mrb[56].mxu0 %vm15_vm0, %v458_v41 }
  0xbb   :  { %3250 = vmatprep.mubr.msk.f32.mxu0 %vm15_vm0, %v459_v42 }
  0xbe   :  { %3251 = vmatmul.mubr.msk.f32.gmra.mrb[58].mxu0 %vm15_vm0, %v460_v43 }
  0xbf   :  { %3253 = vmatprep.mubr.msk.f32.mxu0 %vm15_vm0, %v461_v44 }
  0xc2   :  { %3254 = vmatmul.mubr.msk.f32.gmra.mrb[60].mxu0 %vm15_vm0, %v462_v45 }
  0xc3   :  { %3256 = vmatprep.mubr.msk.f32.mxu0 %vm15_vm0, %v463_v46 }
  0xc6   :  { %3257 = vmatmul.mubr.msk.f32.gmra.mrb[62].mxu0 %vm15_vm0, %v464_v47 }
  0xc7   :  { %3259 = vmatprep.mubr.msk.f32.mxu0 %vm15_vm0, %v465_v48 }
  0xca   :  { %3260 = vmatmul.mubr.msk.f32.gmra.mrb[64].mxu0 %vm15_vm0, %v466_v49 }
  0xcb   :  { %3262 = vmatprep.mubr.msk.f32.mxu0 %vm15_vm0, %v467_v50 }
  0xce   :  { %3263 = vmatmul.mubr.msk.f32.gmra.mrb[66].mxu0 %vm15_vm0, %v468_v51 }
  0xcf   :  { %3265 = vmatprep.mubr.msk.f32.mxu0 %vm15_vm0, %v469_v52 }
  0xd2   :  { %3266 = vmatmul.mubr.msk.f32.gmra.mrb[68].mxu0 %vm15_vm0, %v470_v53 }
  0xd3   :  { %3268 = vmatprep.mubr.msk.f32.mxu0 %vm15_vm0, %v471_v54 }
  0xd6   :  { %3269 = vmatmul.mubr.msk.f32.gmra.mrb[70].mxu0 %vm15_vm0, %v472_v55 }
  0xd7   :  { %3271 = vmatprep.mubr.msk.f32.mxu0 %vm15_vm0, %v473_v56 }
  0xda   :  { %3272 = vmatmul.mubr.msk.f32.gmra.mrb[72].mxu0 %vm15_vm0, %v474_v57 }
  0xdb   :  { %3274 = vmatprep.mubr.msk.f32.mxu0 %vm15_vm0, %v475_v58 }
  0xde   :  { %3275 = vmatmul.mubr.msk.f32.gmra.mrb[74].mxu0 %vm15_vm0, %v476_v59 }
  0xdf   :  { %3277 = vmatprep.mubr.msk.f32.mxu0 %vm15_vm0, %v477_v60 }
  0xe2   :  { %3278 = vmatmul.mubr.msk.f32.gmra.mrb[76].mxu0 %vm15_vm0, %v478_v61 }
  0xe3   :  { %3280 = vmatprep.mubr.msk.f32.mxu0 %vm15_vm0, %v479_v62 }
  0xe6   :  { %3281 = vmatmul.mubr.msk.f32.gmra.mrb[78].mxu0 %vm15_vm0, %v480_v63 }
  0xe7   :  { %3283 = vmatprep.mubr.msk.f32.mxu0 %vm15_vm0, %v481_v0 }
  0xea   :  { %3284 = vmatmul.mubr.msk.f32.gmra.mrb[80].mxu0 %vm15_vm0, %v482_v1 }
 0x11d   :  { %v3165_v5 = vpop.f32.mrb[0].mxu0 }
 0x11e   :  { %v1621_v6 = vsel %vm1619_vm2, %v3165_v5, -inf  ;;  %v980_v7 = vpop.f32.mrb[1].mxu0 }
 0x11f   :  { %v1620_v8 = vsel %vm1619_vm2, %v980_v7, -inf }
 0x120   :  { %v1622_v9 = vmax.f32 %v1620_v8, %v1621_v6 }
 0x121   :  { %v3168_v10 = vpop.f32.mrb[2].mxu0 }
 0x122   :  { %v990_v11 = vpop.f32.mrb[3].mxu0  ;;  %v1625_v14 = vsel %vm1619_vm2, %v3168_v10, -inf }
 0x123   :  { %v1623_v12 = vsel %vm1619_vm2, %v990_v11, -inf }
 0x124   :  { %v1624_v13 = vmax.f32 %v1622_v9, %v1623_v12  ;;  %v3458_v9 = vpack.c.bf16 %v1998_v4, %v1997_v3 }
 0x125   :  { %v3171_v15 = vpop.f32.mrb[4].mxu0 }
 0x126   :  { %v1000_v16 = vpop.f32.mrb[5].mxu0  ;;  %v1626_v17 = vmax.f32 %v1624_v13, %v1625_v14  ;;  %v1629_v20 = vsel %vm1619_vm2, %v3171_v15, -inf  ;;  %3459 = vmatprep.subr.bf16.mxu1 %v3458_v9 }
 0x127   :  { %v1627_v18 = vsel %vm1619_vm2, %v1000_v16, -inf  ;;  %3461 = vmatpush3.bf16.msra.mxu1 %v3458_v9 }
 0x128   :  { %v1628_v19 = vmax.f32 %v1626_v17, %v1627_v18 }
 0x129   :  { %v3174_v21 = vpop.f32.mrb[6].mxu0 }
 0x12a   :  { %v1010_v22 = vpop.f32.mrb[7].mxu0  ;;  %v1630_v23 = vmax.f32 %v1628_v19, %v1629_v20  ;;  %v1633_v29 = vsel %vm1619_vm2, %v3174_v21, -inf }
 0x12b   :  { %v1631_v26 = vsel %vm1619_vm2, %v1010_v22, -inf }
 0x12c   :  { %v1632_v28 = vmax.f32 %v1630_v23, %v1631_v26 }
 0x12d   :  { %v3177_v30 = vpop.f32.mrb[8].mxu0 }
 0x12e   :  { %v1634_v31 = vmax.f32 %v1632_v28, %v1633_v29  ;;  %v1642_v32 = vsel %vm1619_vm2, %v3177_v30, -inf  ;;  %v1020_v33 = vpop.f32.mrb[9].mxu0 }
 0x12f   :  { %v1641_v34 = vsel %vm1619_vm2, %v1020_v33, -inf }
 0x130   :  { %v1643_v35 = vmax.f32 %v1641_v34, %v1642_v32  ;;  %v1635_v39 = vrot.slane %v1634_v31, 4 }
 0x131   :  { %v3180_v36 = vpop.f32.mrb[10].mxu0  ;;  %v4541_v38 = vpop.f32.mrb[0].mxu1 }
 0x132   :  { %v1030_v37 = vpop.f32.mrb[11].mxu0  ;;  %v4544_v41 = vpop.f32.mrb[1].mxu1  ;;  %v1646_v43 = vsel %vm1619_vm2, %v3180_v36, -inf  ;;  %v1636_v48 = vmax.f32 %v1634_v31, %v1635_v39  ;;  %v4577_v36 = vld [vmem:[%s4937_s2 + $0x148] ss:$0 sm:$0xff] }
 0x133   :  { %v1644_v40 = vsel %vm1619_vm2, %v1030_v37, -inf }
 0x134   :  { %v1645_v42 = vmax.f32 %v1643_v35, %v1644_v40  ;;  %v1637_v57 = vrot.slane %v1636_v48, 2 }
 0x135   :  { %v3183_v44 = vpop.f32.mrb[12].mxu0  ;;  %v4547_v47 = vpop.f32.mrb[2].mxu1 }
 0x136   :  { %v1040_v45 = vpop.f32.mrb[13].mxu0  ;;  %v1647_v46 = vmax.f32 %v1645_v42, %v1646_v43  ;;  %v4550_v50 = vpop.f32.mrb[3].mxu1  ;;  %v1650_v52 = vsel %vm1619_vm2, %v3183_v44, -inf  ;;  %v1638_v5 = vmax.f32 %v1636_v48, %v1637_v57 }
 0x137   :  { %v1648_v49 = vsel %vm1619_vm2, %v1040_v45, -inf }
 0x138   :  { %v1649_v51 = vmax.f32 %v1647_v46, %v1648_v49  ;;  %v1639_v18 = vrot.slane %v1638_v5, 1 }
 0x139   :  { %v3186_v53 = vpop.f32.mrb[14].mxu0  ;;  %v4553_v56 = vpop.f32.mrb[4].mxu1 }
 0x13a   :  { %v1050_v54 = vpop.f32.mrb[15].mxu0  ;;  %v1651_v55 = vmax.f32 %v1649_v51, %v1650_v52  ;;  %v4556_v59 = vpop.f32.mrb[5].mxu1  ;;  %v1654_v61 = vsel %vm1619_vm2, %v3186_v53, -inf  ;;  %v1640_v32 = vmax.f32 %v1638_v5, %v1639_v18 }
 0x13b   :  { %v1652_v58 = vsel %vm1619_vm2, %v1050_v54, -inf }
 0x13c   :  { %v1653_v60 = vmax.f32 %v1651_v55, %v1652_v58  ;;  %v1961_v52 = vadd.f32 %v4577_v36, %v1640_v32 }
 0x13d   :  { %v3189_v62 = vpop.f32.mrb[16].mxu0  ;;  %v3297_v2 = vpop.f32.mrb[6].mxu1 }
 0x13e   :  { %v1655_v63 = vmax.f32 %v1653_v60, %v1654_v61  ;;  %v1663_v0 = vsel %vm1619_vm2, %v3189_v62, -inf  ;;  %v1060_v1 = vpop.f32.mrb[17].mxu0  ;;  %v1852_v7 = vsel %vm1619_vm2, %v3297_v2, -inf  ;;  %v1420_v8 = vpop.f32.mrb[7].mxu1 }
 0x13f   :  { %v1662_v6 = vsel %vm1619_vm2, %v1060_v1, -inf  ;;  %v1851_v12 = vsel %vm1619_vm2, %v1420_v8, -inf }
 0x140   :  { %v1656_v10 = vrot.slane %v1655_v63, 4  ;;  %v1664_v11 = vmax.f32 %v1662_v6, %v1663_v0  ;;  %v1853_v14 = vmax.f32 %v1851_v12, %v1852_v7  ;;  %v1977_v6 = vmax.f32 %v1961_v52, 0.0 }
 0x141   :  { %v3192_v13 = vpop.f32.mrb[18].mxu0  ;;  %v3300_v17 = vpop.f32.mrb[8].mxu1 }
 0x142   :  { %v1657_v15 = vmax.f32 %v1655_v63, %v1656_v10  ;;  %v1070_v16 = vpop.f32.mrb[19].mxu0  ;;  %v1430_v20 = vpop.f32.mrb[9].mxu1  ;;  %v1856_v23 = vsel %vm1619_vm2, %v3300_v17, -inf  ;;  %v1667_v25 = vsel %vm1619_vm2, %v3192_v13, -inf }
 0x143   :  { %v1665_v19 = vsel %vm1619_vm2, %v1070_v16, -inf  ;;  %v1854_v24 = vsel %vm1619_vm2, %v1430_v20, -inf }
 0x144   :  { %v1658_v21 = vrot.slane %v1657_v15, 2  ;;  %v1666_v22 = vmax.f32 %v1664_v11, %v1665_v19  ;;  %v1855_v27 = vmax.f32 %v1853_v14, %v1854_v24 }
 0x145   :  { %v3195_v26 = vpop.f32.mrb[20].mxu0  ;;  %v3303_v31 = vpop.f32.mrb[10].mxu1 }
 0x146   :  { %v1659_v28 = vmax.f32 %v1657_v15, %v1658_v21  ;;  %v1080_v29 = vpop.f32.mrb[21].mxu0  ;;  %v1668_v30 = vmax.f32 %v1666_v22, %v1667_v25  ;;  %v1440_v34 = vpop.f32.mrb[11].mxu1  ;;  %v1857_v35 = vmax.f32 %v1855_v27, %v1856_v23  ;;  %v1860_v40 = vsel %vm1619_vm2, %v3303_v31, -inf }
 0x147   :  { %v1669_v33 = vsel %vm1619_vm2, %v1080_v29, -inf  ;;  %v1858_v42 = vsel %vm1619_vm2, %v1440_v34, -inf  ;;  %v1671_v43 = vsel %vm1619_vm2, %v3195_v26, -inf }
 0x148   :  { %v1660_v37 = vrot.slane %v1659_v28, 1  ;;  %v1670_v39 = vmax.f32 %v1668_v30, %v1669_v33  ;;  %v1859_v45 = vmax.f32 %v1857_v35, %v1858_v42 }
 0x149   :  { %v3198_v44 = vpop.f32.mrb[22].mxu0  ;;  %v3306_v51 = vpop.f32.mrb[12].mxu1 }
 0x14a   :  { %v1661_v46 = vmax.f32 %v1659_v28, %v1660_v37  ;;  %v1090_v48 = vpop.f32.mrb[23].mxu0  ;;  %v1672_v49 = vmax.f32 %v1670_v39, %v1671_v43  ;;  %v1450_v54 = vpop.f32.mrb[13].mxu1  ;;  %v1861_v55 = vmax.f32 %v1859_v45, %v1860_v40  ;;  %v1864_v60 = vsel %vm1619_vm2, %v3306_v51, -inf }
 0x14b   :  { %v1673_v53 = vsel %vm1619_vm2, %v1090_v48, -inf  ;;  %v1862_v61 = vsel %vm1619_vm2, %v1450_v54, -inf  ;;  %v1675_v62 = vsel %vm1619_vm2, %v3198_v44, -inf }
 0x14c   :  { %v1962_v57 = vadd.f32 %v4577_v36, %v1661_v46  ;;  %v1674_v58 = vmax.f32 %v1672_v49, %v1673_v53  ;;  %v1863_v0 = vmax.f32 %v1861_v55, %v1862_v61 }
 0x14d   :  { %v3201_v63 = vpop.f32.mrb[24].mxu0  ;;  %v3309_v5 = vpop.f32.mrb[14].mxu1 }
 0x14e   :  { %v1978_v1 = vmax.f32 %v1962_v57, 0.0  ;;  %v1676_v2 = vmax.f32 %v1674_v58, %v1675_v62  ;;  %v1684_v3 = vsel %vm1619_vm2, %v3201_v63, -inf  ;;  %v1100_v4 = vpop.f32.mrb[25].mxu0  ;;  %v4590_v8 = vmax.f32 %v1863_v0, %v1864_v60  ;;  %v1460_v10 = vpop.f32.mrb[15].mxu1 }
 0x14f   :  { %v1683_v7 = vsel %vm1619_vm2, %v1100_v4, -inf  ;;  %v1873_v9 = vsel %vm1619_vm2, %v3309_v5, -inf  ;;  %v1872_v14 = vsel %vm1619_vm2, %v1460_v10, -inf }
 0x150   :  { %v2022_v11 = vrot.slane %v1978_v1, 7  ;;  %v1677_v12 = vrot.slane %v1676_v2, 4  ;;  %v1685_v13 = vmax.f32 %v1683_v7, %v1684_v3  ;;  %v1874_v16 = vmax.f32 %v1872_v14, %v1873_v9  ;;  %v2000_v7 = vld [vmem:[%s4937_s2 + $0x40] sm:$0xff] }
 0x151   :  { %v3204_v15 = vpop.f32.mrb[26].mxu0  ;;  %v3312_v19 = vpop.f32.mrb[16].mxu1 }
 0x152   :  { %v1678_v17 = vmax.f32 %v1676_v2, %v1677_v12  ;;  %v1110_v18 = vpop.f32.mrb[27].mxu0  ;;  %v2024_v20 = vsel %vm2023_vm3, %v2022_v11, %v1977_v6  ;;  %v1470_v22 = vpop.f32.mrb[17].mxu1  ;;  %v1877_v25 = vsel %vm1619_vm2, %v3312_v19, -inf  ;;  %v1688_v27 = vsel %vm1619_vm2, %v3204_v15, -inf  ;;  %v1999_v6 = vld [vmem:[%s4937_s2 + $0x38] sm:$0xff] }
 0x153   :  { %v1686_v21 = vsel %vm1619_vm2, %v1110_v18, -inf  ;;  %v1875_v26 = vsel %vm1619_vm2, %v1470_v22, -inf  ;;  %v3462_v19 = vpack.c.bf16 %v2000_v7, %v1999_v6 }
 0x154   :  { %v1679_v23 = vrot.slane %v1678_v17, 2  ;;  %v1687_v24 = vmax.f32 %v1685_v13, %v1686_v21  ;;  %v1876_v29 = vmax.f32 %v1874_v16, %v1875_v26 }
 0x155   :  { %v3207_v28 = vpop.f32.mrb[28].mxu0  ;;  %v3315_v33 = vpop.f32.mrb[18].mxu1  ;;  %3463 = vmatprep.subr.bf16.mxu1 %v3462_v19 }
 0x156   :  { %v1680_v30 = vmax.f32 %v1678_v17, %v1679_v23  ;;  %v1120_v31 = vpop.f32.mrb[29].mxu0  ;;  %v1689_v32 = vmax.f32 %v1687_v24, %v1688_v27  ;;  %v1480_v35 = vpop.f32.mrb[19].mxu1  ;;  %v1878_v37 = vmax.f32 %v1876_v29, %v1877_v25  ;;  %v1881_v42 = vsel %vm1619_vm2, %v3315_v33, -inf  ;;  %3465 = vmatpush3.bf16.msra.mxu1 %v3462_v19 }
 0x157   :  { %v1690_v34 = vsel %vm1619_vm2, %v1120_v31, -inf  ;;  %v1879_v43 = vsel %vm1619_vm2, %v1480_v35, -inf  ;;  %v1692_v44 = vsel %vm1619_vm2, %v3207_v28, -inf }
 0x158   :  { %v1681_v39 = vrot.slane %v1680_v30, 1  ;;  %v1691_v40 = vmax.f32 %v1689_v32, %v1690_v34  ;;  %v1880_v46 = vmax.f32 %v1878_v37, %v1879_v43 }
 0x159   :  { %v3210_v45 = vpop.f32.mrb[30].mxu0  ;;  %v3318_v52 = vpop.f32.mrb[20].mxu1 }
 0x15a   :  { %v1682_v48 = vmax.f32 %v1680_v30, %v1681_v39  ;;  %v1130_v49 = vpop.f32.mrb[31].mxu0  ;;  %v1693_v51 = vmax.f32 %v1691_v40, %v1692_v44  ;;  %v1490_v54 = vpop.f32.mrb[21].mxu1  ;;  %v1882_v55 = vmax.f32 %v1880_v46, %v1881_v42  ;;  %v1885_v60 = vsel %vm1619_vm2, %v3318_v52, -inf }
 0x15b   :  { %v1694_v53 = vsel %vm1619_vm2, %v1130_v49, -inf  ;;  %v1883_v61 = vsel %vm1619_vm2, %v1490_v54, -inf  ;;  %v1696_v62 = vsel %vm1619_vm2, %v3210_v45, -inf }
 0x15c   :  { %v1963_v57 = vadd.f32 %v4577_v36, %v1682_v48  ;;  %v1695_v58 = vmax.f32 %v1693_v51, %v1694_v53  ;;  %v1884_v0 = vmax.f32 %v1882_v55, %v1883_v61 }
 0x15d   :  { %v3213_v63 = vpop.f32.mrb[32].mxu0  ;;  %v3321_v5 = vpop.f32.mrb[22].mxu1 }
 0x15e   :  { %v1979_v1 = vmax.f32 %v1963_v57, 0.0  ;;  %v1697_v2 = vmax.f32 %v1695_v58, %v1696_v62  ;;  %v1705_v3 = vsel %vm1619_vm2, %v3213_v63, -inf  ;;  %v1140_v4 = vpop.f32.mrb[33].mxu0  ;;  %v4616_v10 = vmax.f32 %v1884_v0, %v1885_v60  ;;  %v1500_v12 = vpop.f32.mrb[23].mxu1 }
 0x15f   :  { %v1704_v9 = vsel %vm1619_vm2, %v1140_v4, -inf  ;;  %v1894_v11 = vsel %vm1619_vm2, %v3321_v5, -inf  ;;  %v1893_v16 = vsel %vm1619_vm2, %v1500_v12, -inf }
 0x160   :  { %v2025_v13 = vrot.slane %v1979_v1, 6  ;;  %v1698_v14 = vrot.slane %v1697_v2, 4  ;;  %v1706_v15 = vmax.f32 %v1704_v9, %v1705_v3  ;;  %v1895_v18 = vmax.f32 %v1893_v16, %v1894_v11 }
 0x161   :  { %v3216_v17 = vpop.f32.mrb[34].mxu0  ;;  %v3324_v23 = vpop.f32.mrb[24].mxu1 }
 0x162   :  { %v1699_v21 = vmax.f32 %v1697_v2, %v1698_v14  ;;  %v1150_v22 = vpop.f32.mrb[35].mxu0  ;;  %v2027_v24 = vsel %vm2026_vm4, %v2025_v13, %v2024_v20  ;;  %v1510_v26 = vpop.f32.mrb[25].mxu1  ;;  %v1898_v29 = vsel %vm1619_vm2, %v3324_v23, -inf  ;;  %v1709_v31 = vsel %vm1619_vm2, %v3216_v17, -inf }
 0x163   :  { %v1707_v25 = vsel %vm1619_vm2, %v1150_v22, -inf  ;;  %v1896_v30 = vsel %vm1619_vm2, %v1510_v26, -inf }
 0x164   :  { %v1700_v27 = vrot.slane %v1699_v21, 2  ;;  %v1708_v28 = vmax.f32 %v1706_v15, %v1707_v25  ;;  %v1897_v33 = vmax.f32 %v1895_v18, %v1896_v30 }
 0x165   :  { %v3219_v32 = vpop.f32.mrb[36].mxu0 }
 0x166   :  { %v1701_v34 = vmax.f32 %v1699_v21, %v1700_v27  ;;  %v1160_v35 = vpop.f32.mrb[37].mxu0  ;;  %v1710_v37 = vmax.f32 %v1708_v28, %v1709_v31  ;;  %v3327_v39 = vpop.f32.mrb[26].mxu1  ;;  %v1899_v42 = vmax.f32 %v1897_v33, %v1898_v29  ;;  %v1713_v48 = vsel %vm1619_vm2, %v3219_v32, -inf }
 0x167   :  { %v1711_v20 = vsel %vm1619_vm2, %v1160_v35, -inf  ;;  %v1520_v40 = vpop.f32.mrb[27].mxu1  ;;  %v1902_v45 = vsel %vm1619_vm2, %v3327_v39, -inf }
 0x168   :  { %v1702_v43 = vrot.slane %v1701_v34, 1  ;;  %v1712_v44 = vmax.f32 %v1710_v37, %v1711_v20  ;;  %v1900_v46 = vsel %vm1619_vm2, %v1520_v40, -inf }
 0x169   :  { %v3222_v49 = vpop.f32.mrb[38].mxu0  ;;  %v1901_v51 = vmax.f32 %v1899_v42, %v1900_v46 }
 0x16a   :  { %v1703_v52 = vmax.f32 %v1701_v34, %v1702_v43  ;;  %v1170_v53 = vpop.f32.mrb[39].mxu0  ;;  %v1714_v54 = vmax.f32 %v1712_v44, %v1713_v48  ;;  %v3330_v55 = vpop.f32.mrb[28].mxu1  ;;  %v1717_v1 = vsel %vm1619_vm2, %v3222_v49, -inf }
 0x16b   :  { %v1715_v57 = vsel %vm1619_vm2, %v1170_v53, -inf  ;;  %v1530_v58 = vpop.f32.mrb[29].mxu1  ;;  %v1903_v60 = vmax.f32 %v1901_v51, %v1902_v45  ;;  %v1906_v63 = vsel %vm1619_vm2, %v3330_v55, -inf }
 0x16c   :  { %v1964_v61 = vadd.f32 %v4577_v36, %v1703_v52  ;;  %v1716_v62 = vmax.f32 %v1714_v54, %v1715_v57  ;;  %v1904_v0 = vsel %vm1619_vm2, %v1530_v58, -inf }
 0x16d   :  { %v3225_v2 = vpop.f32.mrb[40].mxu0  ;;  %v1905_v3 = vmax.f32 %v1903_v60, %v1904_v0 }
 0x16e   :  { %v1980_v4 = vmax.f32 %v1964_v61, 0.0  ;;  %v1718_v5 = vmax.f32 %v1716_v62, %v1717_v1  ;;  %v1726_v6 = vsel %vm1619_vm2, %v3225_v2, -inf  ;;  %v1180_v7 = vpop.f32.mrb[41].mxu0  ;;  %v3333_v9 = vpop.f32.mrb[30].mxu1 }
 0x16f   :  { %v1725_v11 = vsel %vm1619_vm2, %v1180_v7, -inf  ;;  %v4636_v12 = vmax.f32 %v1905_v3, %v1906_v63  ;;  %v1915_v13 = vsel %vm1619_vm2, %v3333_v9, -inf  ;;  %v1540_v14 = vpop.f32.mrb[31].mxu1 }
 0x170   :  { %v2028_v15 = vrot.slane %v1980_v4, 5  ;;  %v1719_v16 = vrot.slane %v1718_v5, 4  ;;  %v1727_v17 = vmax.f32 %v1725_v11, %v1726_v6  ;;  %v1914_v18 = vsel %vm1619_vm2, %v1540_v14, -inf }
 0x171   :  { %v3228_v19 = vpop.f32.mrb[42].mxu0  ;;  %v1916_v21 = vmax.f32 %v1914_v18, %v1915_v13 }
 0x172   :  { %v1720_v22 = vmax.f32 %v1718_v5, %v1719_v16  ;;  %v1190_v23 = vpop.f32.mrb[43].mxu0  ;;  %v3336_v25 = vpop.f32.mrb[32].mxu1  ;;  %v2030_v26 = vsel %vm2029_vm5, %v2028_v15, %v2027_v24  ;;  %v1730_v33 = vsel %vm1619_vm2, %v3228_v19, -inf }
 0x173   :  { %v1728_v27 = vsel %vm1619_vm2, %v1190_v23, -inf  ;;  %v1550_v28 = vpop.f32.mrb[33].mxu1  ;;  %v1919_v31 = vsel %vm1619_vm2, %v3336_v25, -inf }
 0x174   :  { %v1721_v29 = vrot.slane %v1720_v22, 2  ;;  %v1729_v30 = vmax.f32 %v1727_v17, %v1728_v27  ;;  %v1917_v32 = vsel %vm1619_vm2, %v1550_v28, -inf }
 0x175   :  { %v3231_v34 = vpop.f32.mrb[44].mxu0  ;;  %v1918_v35 = vmax.f32 %v1916_v21, %v1917_v32 }
 0x176   :  { %v1722_v37 = vmax.f32 %v1720_v22, %v1721_v29  ;;  %v1200_v39 = vpop.f32.mrb[45].mxu0  ;;  %v1731_v20 = vmax.f32 %v1729_v30, %v1730_v33  ;;  %v3339_v40 = vpop.f32.mrb[34].mxu1  ;;  %v1734_v49 = vsel %vm1619_vm2, %v3231_v34, -inf }
 0x177   :  { %v1732_v42 = vsel %vm1619_vm2, %v1200_v39, -inf  ;;  %v1560_v24 = vpop.f32.mrb[35].mxu1  ;;  %v1920_v43 = vmax.f32 %v1918_v35, %v1919_v31  ;;  %v1923_v46 = vsel %vm1619_vm2, %v3339_v40, -inf }
 0x178   :  { %v1723_v44 = vrot.slane %v1722_v37, 1  ;;  %v1733_v45 = vmax.f32 %v1731_v20, %v1732_v42  ;;  %v1921_v48 = vsel %vm1619_vm2, %v1560_v24, -inf }
 0x179   :  { %v3234_v51 = vpop.f32.mrb[46].mxu0  ;;  %v1922_v52 = vmax.f32 %v1920_v43, %v1921_v48 }
 0x17a   :  { %v1724_v53 = vmax.f32 %v1722_v37, %v1723_v44  ;;  %v1210_v54 = vpop.f32.mrb[47].mxu0  ;;  %v1735_v55 = vmax.f32 %v1733_v45, %v1734_v49  ;;  %v3342_v57 = vpop.f32.mrb[36].mxu1  ;;  %v1738_v2 = vsel %vm1619_vm2, %v3234_v51, -inf }
 0x17b   :  { %v1736_v58 = vsel %vm1619_vm2, %v1210_v54, -inf  ;;  %v1570_v60 = vpop.f32.mrb[37].mxu1  ;;  %v1924_v61 = vmax.f32 %v1922_v52, %v1923_v46  ;;  %v1927_v0 = vsel %vm1619_vm2, %v3342_v57, -inf }
 0x17c   :  { %v1965_v62 = vadd.f32 %v4577_v36, %v1724_v53  ;;  %v1737_v63 = vmax.f32 %v1735_v55, %v1736_v58  ;;  %v1925_v1 = vsel %vm1619_vm2, %v1570_v60, -inf }
 0x17d   :  { %v3237_v3 = vpop.f32.mrb[48].mxu0  ;;  %v1926_v4 = vmax.f32 %v1924_v61, %v1925_v1 }
 0x17e   :  { %v1981_v5 = vmax.f32 %v1965_v62, 0.0  ;;  %v1739_v6 = vmax.f32 %v1737_v63, %v1738_v2  ;;  %v1747_v7 = vsel %vm1619_vm2, %v3237_v3, -inf  ;;  %v1220_v9 = vpop.f32.mrb[49].mxu0  ;;  %v3345_v11 = vpop.f32.mrb[38].mxu1 }
 0x17f   :  { %v1746_v13 = vsel %vm1619_vm2, %v1220_v9, -inf  ;;  %v4656_v14 = vmax.f32 %v1926_v4, %v1927_v0  ;;  %v1936_v15 = vsel %vm1619_vm2, %v3345_v11, -inf  ;;  %v1580_v16 = vpop.f32.mrb[39].mxu1 }
 0x180   :  { %v2031_v17 = vrot.slane %v1981_v5, 4  ;;  %v1740_v18 = vrot.slane %v1739_v6, 4  ;;  %v1748_v19 = vmax.f32 %v1746_v13, %v1747_v7  ;;  %v1935_v21 = vsel %vm1619_vm2, %v1580_v16, -inf }
 0x181   :  { %v3240_v22 = vpop.f32.mrb[50].mxu0  ;;  %v1937_v23 = vmax.f32 %v1935_v21, %v1936_v15 }
 0x182   :  { %v1741_v25 = vmax.f32 %v1739_v6, %v1740_v18  ;;  %v1230_v27 = vpop.f32.mrb[51].mxu0  ;;  %v2033_v28 = vsel %vm2032_vm6, %v2031_v17, %v2030_v26  ;;  %v3348_v29 = vpop.f32.mrb[40].mxu1  ;;  %v1751_v37 = vsel %vm1619_vm2, %v3240_v22, -inf }
 0x183   :  { %v1749_v30 = vsel %vm1619_vm2, %v1230_v27, -inf  ;;  %v1590_v31 = vpop.f32.mrb[41].mxu1  ;;  %v1940_v34 = vsel %vm1619_vm2, %v3348_v29, -inf }
 0x184   :  { %v1742_v32 = vrot.slane %v1741_v25, 2  ;;  %v1750_v33 = vmax.f32 %v1748_v19, %v1749_v30  ;;  %v1938_v35 = vsel %vm1619_vm2, %v1590_v31, -inf }
 0x185   :  { %v3243_v39 = vpop.f32.mrb[52].mxu0  ;;  %v1939_v20 = vmax.f32 %v1937_v23, %v1938_v35 }
 0x186   :  { %v1743_v40 = vmax.f32 %v1741_v25, %v1742_v32  ;;  %v1240_v42 = vpop.f32.mrb[53].mxu0  ;;  %v1752_v24 = vmax.f32 %v1750_v33, %v1751_v37  ;;  %v3351_v43 = vpop.f32.mrb[42].mxu1  ;;  %v1755_v52 = vsel %vm1619_vm2, %v3243_v39, -inf }
 0x187   :  { %v1753_v26 = vsel %vm1619_vm2, %v1240_v42, -inf  ;;  %v1600_v44 = vpop.f32.mrb[43].mxu1  ;;  %v1941_v45 = vmax.f32 %v1939_v20, %v1940_v34  ;;  %v1944_v49 = vsel %vm1619_vm2, %v3351_v43, -inf }
 0x188   :  { %v1744_v46 = vrot.slane %v1743_v40, 1  ;;  %v1754_v48 = vmax.f32 %v1752_v24, %v1753_v26  ;;  %v1942_v51 = vsel %vm1619_vm2, %v1600_v44, -inf }
 0x189   :  { %v3246_v53 = vpop.f32.mrb[54].mxu0  ;;  %v1943_v54 = vmax.f32 %v1941_v45, %v1942_v51 }
 0x18a   :  { %v1745_v55 = vmax.f32 %v1743_v40, %v1744_v46  ;;  %v1250_v57 = vpop.f32.mrb[55].mxu0  ;;  %v1756_v58 = vmax.f32 %v1754_v48, %v1755_v52  ;;  %v3354_v60 = vpop.f32.mrb[44].mxu1  ;;  %v1759_v4 = vsel %vm1619_vm2, %v3246_v53, -inf }
 0x18b   :  { %v1757_v61 = vsel %vm1619_vm2, %v1250_v57, -inf  ;;  %v1610_v62 = vpop.f32.mrb[45].mxu1  ;;  %v1945_v63 = vmax.f32 %v1943_v54, %v1944_v49  ;;  %v1948_v2 = vsel %vm1619_vm2, %v3354_v60, -inf }
 0x18c   :  { %v1966_v0 = vadd.f32 %v4577_v36, %v1745_v55  ;;  %v1758_v1 = vmax.f32 %v1756_v58, %v1757_v61  ;;  %v1946_v3 = vsel %vm1619_vm2, %v1610_v62, -inf }
 0x18d   :  { %v3249_v5 = vpop.f32.mrb[56].mxu0  ;;  %v1947_v6 = vmax.f32 %v1945_v63, %v1946_v3 }
 0x18e   :  { %v1982_v7 = vmax.f32 %v1966_v0, 0.0  ;;  %v1760_v9 = vmax.f32 %v1758_v1, %v1759_v4  ;;  %v1768_v11 = vsel %vm1619_vm2, %v3249_v5, -inf  ;;  %v1260_v13 = vpop.f32.mrb[57].mxu0 }
 0x18f   :  { %v1767_v15 = vsel %vm1619_vm2, %v1260_v13, -inf  ;;  %v4676_v16 = vmax.f32 %v1947_v6, %v1948_v2 }
 0x190   :  { %v1761_v17 = vrot.slane %v1760_v9, 4  ;;  %v1769_v18 = vmax.f32 %v1767_v15, %v1768_v11  ;;  %v2034_v19 = vrot.slane %v1982_v7, 3 }
 0x191   :  { %v3252_v21 = vpop.f32.mrb[58].mxu0 }
 0x192   :  { %v1762_v22 = vmax.f32 %v1760_v9, %v1761_v17  ;;  %v1270_v23 = vpop.f32.mrb[59].mxu0  ;;  %v2036_v25 = vsel %vm2035_vm7, %v2034_v19, %v2033_v28  ;;  %v1772_v31 = vsel %vm1619_vm2, %v3252_v21, -inf }
 0x193   :  { %v1770_v27 = vsel %vm1619_vm2, %v1270_v23, -inf }
 0x194   :  { %v1763_v29 = vrot.slane %v1762_v22, 2  ;;  %v1771_v30 = vmax.f32 %v1769_v18, %v1770_v27 }
 0x195   :  { %v3255_v32 = vpop.f32.mrb[60].mxu0 }
 0x196   :  { %v1764_v33 = vmax.f32 %v1762_v22, %v1763_v29  ;;  %v1280_v34 = vpop.f32.mrb[61].mxu0  ;;  %v1773_v35 = vmax.f32 %v1771_v30, %v1772_v31  ;;  %v1776_v40 = vsel %vm1619_vm2, %v3255_v32, -inf }
 0x197   :  { %v1774_v37 = vsel %vm1619_vm2, %v1280_v34, -inf }
 0x198   :  { %v1765_v39 = vrot.slane %v1764_v33, 1  ;;  %v1775_v20 = vmax.f32 %v1773_v35, %v1774_v37 }
 0x199   :  { %v3258_v42 = vpop.f32.mrb[62].mxu0 }
 0x19a   :  { %v1766_v24 = vmax.f32 %v1764_v33, %v1765_v39  ;;  %v1290_v43 = vpop.f32.mrb[63].mxu0  ;;  %v1777_v28 = vmax.f32 %v1775_v20, %v1776_v40  ;;  %v1780_v46 = vsel %vm1619_vm2, %v3258_v42, -inf }
 0x19b   :  { %v1778_v26 = vsel %vm1619_vm2, %v1290_v43, -inf }
 0x19c   :  { %v1779_v44 = vmax.f32 %v1777_v28, %v1778_v26  ;;  %v1967_v45 = vadd.f32 %v4577_v36, %v1766_v24 }
 0x19d   :  { %v3261_v48 = vpop.f32.mrb[64].mxu0 }
 0x19e   :  { %v1781_v49 = vmax.f32 %v1779_v44, %v1780_v46  ;;  %v1789_v51 = vsel %vm1619_vm2, %v3261_v48, -inf  ;;  %v1300_v52 = vpop.f32.mrb[65].mxu0  ;;  %v1983_v53 = vmax.f32 %v1967_v45, 0.0 }
 0x19f   :  { %v1788_v54 = vsel %vm1619_vm2, %v1300_v52, -inf }
 0x1a0   :  { %v1782_v55 = vrot.slane %v1781_v49, 4  ;;  %v1790_v57 = vmax.f32 %v1788_v54, %v1789_v51  ;;  %v2037_v58 = vrot.slane %v1983_v53, 2 }
 0x1a1   :  { %v3264_v60 = vpop.f32.mrb[66].mxu0 }
 0x1a2   :  { %v1783_v61 = vmax.f32 %v1781_v49, %v1782_v55  ;;  %v1310_v62 = vpop.f32.mrb[67].mxu0  ;;  %v2039_v63 = vsel %vm2038_vm8, %v2037_v58, %v2036_v25  ;;  %v1793_v3 = vsel %vm1619_vm2, %v3264_v60, -inf }
 0x1a3   :  { %v1791_v0 = vsel %vm1619_vm2, %v1310_v62, -inf }
 0x1a4   :  { %v1784_v1 = vrot.slane %v1783_v61, 2  ;;  %v1792_v2 = vmax.f32 %v1790_v57, %v1791_v0 }
 0x1a5   :  { %v3267_v4 = vpop.f32.mrb[68].mxu0 }
 0x1a6   :  { %v1785_v5 = vmax.f32 %v1783_v61, %v1784_v1  ;;  %v1320_v6 = vpop.f32.mrb[69].mxu0  ;;  %v1794_v7 = vmax.f32 %v1792_v2, %v1793_v3  ;;  %v1797_v15 = vsel %vm1619_vm2, %v3267_v4, -inf  ;;  %v1866_v1 = vrot.slane %v4590_v8, 4 }
 0x1a7   :  { %v1795_v9 = vsel %vm1619_vm2, %v1320_v6, -inf  ;;  %v1887_v3 = vrot.slane %v4616_v10, 4 }
 0x1a8   :  { %v1786_v11 = vrot.slane %v1785_v5, 1  ;;  %v1796_v13 = vmax.f32 %v1794_v7, %v1795_v9  ;;  %v1833_v7 = vsel %vm1619_vm2, %v4544_v41, -inf  ;;  %v1908_v9 = vrot.slane %v4636_v12, 4 }
 0x1a9   :  { %v3270_v17 = vpop.f32.mrb[70].mxu0  ;;  %v1837_v41 = vsel %vm1619_vm2, %v4550_v50, -inf }
 0x1aa   :  { %v1787_v18 = vmax.f32 %v1785_v5, %v1786_v11  ;;  %v1330_v19 = vpop.f32.mrb[71].mxu0  ;;  %v1798_v21 = vmax.f32 %v1796_v13, %v1797_v15  ;;  %v1801_v27 = vsel %vm1619_vm2, %v3270_v17, -inf  ;;  %v1929_v11 = vrot.slane %v4656_v14, 4 }
 0x1ab   :  { %v1799_v22 = vsel %vm1619_vm2, %v1330_v19, -inf  ;;  %v1835_v17 = vsel %vm1619_vm2, %v4541_v38, -inf  ;;  %v1950_v19 = vrot.slane %v4676_v16, 4  ;;  %v1839_v38 = vsel %vm1619_vm2, %v4547_v47, -inf }
 0x1ac   :  { %v1800_v23 = vmax.f32 %v1798_v21, %v1799_v22  ;;  %v1968_v25 = vadd.f32 %v4577_v36, %v1787_v18  ;;  %v1867_v18 = vmax.f32 %v4590_v8, %v1866_v1  ;;  %v1888_v21 = vmax.f32 %v4616_v10, %v1887_v3 }
 0x1ad   :  { %v3273_v29 = vpop.f32.mrb[72].mxu0 }
 0x1ae   :  { %v1802_v30 = vmax.f32 %v1800_v23, %v1801_v27  ;;  %v1810_v31 = vsel %vm1619_vm2, %v3273_v29, -inf  ;;  %v1340_v32 = vpop.f32.mrb[73].mxu0  ;;  %v1984_v33 = vmax.f32 %v1968_v25, 0.0  ;;  %v1909_v27 = vmax.f32 %v4636_v12, %v1908_v9 }
 0x1af   :  { %v1809_v34 = vsel %vm1619_vm2, %v1340_v32, -inf  ;;  %v1930_v29 = vmax.f32 %v4656_v14, %v1929_v11  ;;  %v1868_v8 = vrot.slane %v1867_v18, 2  ;;  %v1951_v32 = vmax.f32 %v4676_v16, %v1950_v19 }
 0x1b0   :  { %v1811_v35 = vmax.f32 %v1809_v34, %v1810_v31  ;;  %v2040_v37 = vrot.slane %v1984_v33, 1  ;;  %v1803_v24 = vrot.slane %v1802_v30, 4  ;;  %v1889_v33 = vrot.slane %v1888_v21, 2 }
 0x1b1   :  { %v3276_v39 = vpop.f32.mrb[74].mxu0  ;;  %v1910_v50 = vrot.slane %v1909_v27, 2  ;;  %v1843_v14 = vsel %vm1619_vm2, %v4553_v56, -inf }
 0x1b2   :  { %v1350_v20 = vpop.f32.mrb[75].mxu0  ;;  %v2042_v40 = vsel %vm2041_vm9, %v2040_v37, %v2039_v63  ;;  %v1814_v28 = vsel %vm1619_vm2, %v3276_v39, -inf  ;;  %v1804_v48 = vmax.f32 %v1802_v30, %v1803_v24  ;;  %v1841_v37 = vsel %vm1619_vm2, %v4556_v59, -inf }
 0x1b3   :  { %v1812_v42 = vsel %vm1619_vm2, %v1350_v20, -inf  ;;  %3371 = vmatprep.mubr.msk.f32.mxu1 %vm1619_vm2, %v2042_v40  ;;  %v1931_v39 = vrot.slane %v1930_v29, 2  ;;  %v1869_v40 = vmax.f32 %v1867_v18, %v1868_v8  ;;  %v1890_v47 = vmax.f32 %v1888_v21, %v1889_v33  ;;  %v2196_v33 = vld [vmem:[%s4937_s2 + $0x50] sm:$0xff] }
 0x1b4   :  { %v1813_v43 = vmax.f32 %v1811_v35, %v1812_v42  ;;  %v1805_v57 = vrot.slane %v1804_v48, 2  ;;  %v1952_v42 = vrot.slane %v1951_v32, 2 }
 0x1b5   :  { %v3279_v26 = vpop.f32.mrb[76].mxu0  ;;  %v1870_v59 = vrot.slane %v1869_v40, 1 }
 0x1b6   :  { %v1360_v44 = vpop.f32.mrb[77].mxu0  ;;  %v1815_v45 = vmax.f32 %v1813_v43, %v1814_v28  ;;  %v1818_v51 = vsel %vm1619_vm2, %v3279_v26, -inf  ;;  %v1806_v4 = vmax.f32 %v1804_v48, %v1805_v57  ;;  %v1911_v28 = vmax.f32 %v1909_v27, %v1910_v50  ;;  %v2199_v50 = vld [vmem:[%s4937_s2 + $0x68] sm:$0xff] }
 0x1b7   :  { %v1816_v46 = vsel %vm1619_vm2, %v1360_v44, -inf  ;;  %v1932_v26 = vmax.f32 %v1930_v29, %v1931_v39  ;;  %v1891_v48 = vrot.slane %v1890_v47, 1  ;;  %v1871_v57 = vmax.f32 %v1869_v40, %v1870_v59  ;;  %v2200_v39 = vld [vmem:[%s4937_s2 + $0x70] sm:$0xff] }
 0x1b8   :  { %v1817_v49 = vmax.f32 %v1815_v45, %v1816_v46  ;;  %v1807_v22 = vrot.slane %v1806_v4, 1  ;;  %v1953_v46 = vmax.f32 %v1951_v32, %v1952_v42  ;;  %v2195_v32 = vld [vmem:[%s4937_s2 + $0x48] sm:$0xff] }
 0x1b9   :  { %v3282_v52 = vpop.f32.mrb[78].mxu0  ;;  %v1933_v56 = vrot.slane %v1932_v26, 1  ;;  %v1972_v1 = vadd.f32 %v4577_v36, %v1871_v57  ;;  %v2959_v42 = vld [vmem:[%s4937_s2 + $0x149] ss:$0 sm:$0xff] }
 0x1ba   :  { %v1370_v53 = vpop.f32.mrb[79].mxu0  ;;  %v1819_v54 = vmax.f32 %v1817_v49, %v1818_v51  ;;  %v1822_v60 = vsel %vm1619_vm2, %v3282_v52, -inf  ;;  %v1808_v10 = vmax.f32 %v1806_v4, %v1807_v22 }
 0x1bb   :  { %v1820_v55 = vsel %vm1619_vm2, %v1370_v53, -inf  ;;  %v1912_v53 = vrot.slane %v1911_v28, 1  ;;  %v1988_v9 = vmax.f32 %v1972_v1, 0.0 }
 0x1bc   :  { %v1821_v58 = vmax.f32 %v1819_v54, %v1820_v55  ;;  %v1969_v24 = vadd.f32 %v4577_v36, %v1808_v10  ;;  %v3466_v10 = vpack.c.bf16 %v2196_v33, %v2195_v32 }
 0x1bd   :  { %v3285_v61 = vpop.f32.mrb[80].mxu0  ;;  %v2047_v21 = vrot.slane %v1988_v9, 5 }
 0x1be   :  { %v1823_v62 = vmax.f32 %v1821_v58, %v1822_v60  ;;  %v1831_v63 = vsel %vm1619_vm2, %v3285_v61, -inf  ;;  %v1380_v0 = vpop.f32.mrb[81].mxu0  ;;  %v1985_v49 = vmax.f32 %v1969_v24, 0.0  ;;  %v1954_v58 = vrot.slane %v1953_v46, 1  ;;  %3467 = vmatprep.subr.bf16.mxu1 %v3466_v10 }
 0x1bf   :  { %v1830_v2 = vsel %vm1619_vm2, %v1380_v0, -inf  ;;  %v1892_v60 = vmax.f32 %v1890_v47, %v1891_v48 }
 0x1c0   :  { %v1824_v5 = vrot.slane %v1823_v62, 4  ;;  %v1832_v6 = vmax.f32 %v1830_v2, %v1831_v63  ;;  %v1934_v63 = vmax.f32 %v1932_v26, %v1933_v56  ;;  %v1955_v2 = vmax.f32 %v1953_v46, %v1954_v58 }
 0x1c1   :  { %v1973_v3 = vadd.f32 %v4577_v36, %v1892_v60 }
 0x1c2   :  { %v1825_v13 = vmax.f32 %v1823_v62, %v1824_v5  ;;  %v1834_v15 = vmax.f32 %v1832_v6, %v1833_v7  ;;  %v1913_v62 = vmax.f32 %v1911_v28, %v1912_v53  ;;  %v1975_v6 = vadd.f32 %v4577_v36, %v1934_v63 }
 0x1c3   :  { %v1976_v11 = vadd.f32 %v4577_v36, %v1955_v2 }
 0x1c4   :  { %v1826_v23 = vrot.slane %v1825_v13, 2  ;;  %v1836_v25 = vmax.f32 %v1834_v15, %v1835_v17  ;;  %v1974_v5 = vadd.f32 %v4577_v36, %v1913_v62  ;;  %v1991_v18 = vmax.f32 %v1975_v6, 0.0 }
 0x1c5   :  { %v1992_v22 = vmax.f32 %v1976_v11, 0.0 }
 0x1c6   :  { %v1827_v30 = vmax.f32 %v1825_v13, %v1826_v23  ;;  %v1838_v31 = vmax.f32 %v1836_v25, %v1837_v41  ;;  %v1989_v13 = vmax.f32 %v1973_v3, 0.0  ;;  %v1990_v17 = vmax.f32 %v1974_v5, 0.0 }
 0x1c7   :  { %v2053_v29 = vrot.slane %v1991_v18, 2 }
 0x1c8   :  { %v1828_v34 = vrot.slane %v1827_v30, 1  ;;  %v1840_v35 = vmax.f32 %v1838_v31, %v1839_v38  ;;  %v2049_v23 = vrot.slane %v1989_v13, 4  ;;  %v2051_v41 = vrot.slane %v1990_v17, 3 }
 0x1c9   :  { %v2055_v31 = vrot.slane %v1992_v22, 1 }
 0x1ca   :  { %v1829_v12 = vmax.f32 %v1827_v30, %v1828_v34  ;;  %v1842_v20 = vmax.f32 %v1840_v35, %v1841_v37  ;;  %v2197_v34 = vld [vmem:[%s4937_s2 + $0x58] sm:$0xff]  ;;  %v2198_v35 = vld [vmem:[%s4937_s2 + $0x60] sm:$0xff] }
 0x1cb   :  { %v3470_v37 = vpack.c.bf16 %v2198_v35, %v2197_v34  ;;  %v2347_v34 = vld [vmem:[%s4937_s2 + $0x88] sm:$0xff]  ;;  %v2348_v35 = vld [vmem:[%s4937_s2 + $0x90] sm:$0xff] }
 0x1cc   :  { %v1970_v16 = vadd.f32 %v4577_v36, %v1829_v12  ;;  %v1844_v43 = vmax.f32 %v1842_v20, %v1843_v14  ;;  %v3474_v12 = vpack.c.bf16 %v2200_v39, %v2199_v50  ;;  %v2201_v20 = vld [vmem:[%s4937_s2 + $0x78] sm:$0xff]  ;;  %v2202_v14 = vld [vmem:[%s4937_s2 + $0x80] sm:$0xff] }
 0x1cd   :  { %v3478_v40 = vpack.c.bf16 %v2202_v14, %v2201_v20  ;;  %v2349_v50 = vld [vmem:[%s4937_s2 + $0x98] sm:$0xff]  ;;  %v2350_v39 = vld [vmem:[%s4937_s2 + $0xa0] sm:$0xff]  ;;  %v2351_v20 = vld [vmem:[%s4937_s2 + $0xa8] sm:$0xff] }
 0x1ce   :  { %v1986_v44 = vmax.f32 %v1970_v16, 0.0  ;;  %v1845_v45 = vrot.slane %v1844_v43, 4  ;;  %v2352_v14 = vld [vmem:[%s4937_s2 + $0xb0] sm:$0xff] }
 0x1d0   :  { %v2043_v51 = vrot.slane %v1986_v44, 7  ;;  %v1846_v52 = vmax.f32 %v1844_v43, %v1845_v45 }
 0x1d2   :  { %v2044_v54 = vsel %vm2023_vm3, %v2043_v51, %v1985_v49  ;;  %v1847_v55 = vrot.slane %v1846_v52, 2 }
 0x1d4   :  { %v1848_v61 = vmax.f32 %v1846_v52, %v1847_v55 }
 0x1d6   :  { %v1849_v0 = vrot.slane %v1848_v61, 1 }
 0x1d8   :  { %v1850_v4 = vmax.f32 %v1848_v61, %v1849_v0 }
 0x1da   :  { %v1971_v7 = vadd.f32 %v4577_v36, %v1850_v4 }
 0x1dc   :  { %v1987_v15 = vmax.f32 %v1971_v7, 0.0 }
 0x1de   :  { %v2045_v19 = vrot.slane %v1987_v15, 6 }
 0x1e0   :  { %v2046_v25 = vsel %vm2026_vm4, %v2045_v19, %v2044_v54 }
 0x1e1   :  { %v2048_v27 = vsel %vm2029_vm5, %v2047_v21, %v2046_v25 }
 0x1e2   :  { %v2050_v30 = vsel %vm2032_vm6, %v2049_v23, %v2048_v27 }
 0x1e3   :  { %v2052_v38 = vsel %vm2035_vm7, %v2051_v41, %v2050_v30  ;;  %v2962_v41 = vld [vmem:[%s4937_s2 + $0x14a] ss:$0 sm:$0xff]  ;;  %v2963_v30 = vld [vmem:[%s4937_s2 + $0x14b] ss:$0 sm:$0xff] }
 0x1e4   :  { %v2054_v36 = vsel %vm2038_vm8, %v2053_v29, %v2052_v38 }
 0x1e5   :  { %v2056_v8 = vsel %vm2041_vm9, %v2055_v31, %v2054_v36 }
 0x1e6   :  { %3372 = vmatmul.mubr.msk.f32.vlgmr.msra.gmra.mrb[46].mxu1 %vm1619_vm2, %v2056_v8 }
 0x1e7   :  { %3469 = vmatpush3.bf16.msra.mxu1 %v3466_v10 }
 0x1e8   :  { %3471 = vmatprep.subr.bf16.mxu1 %v3470_v37 }
 0x1eb   :  { %3473 = vmatpush3.bf16.msra.mxu1 %v3470_v37  ;;  %v3482_v37 = vpack.c.bf16 %v2348_v35, %v2347_v34 }
 0x1ec   :  { %3475 = vmatprep.subr.bf16.mxu1 %v3474_v12 }
 0x1ef   :  { %3477 = vmatpush3.bf16.msra.mxu1 %v3474_v12  ;;  %v3486_v12 = vpack.c.bf16 %v2350_v39, %v2349_v50  ;;  %v2497_v50 = vld [vmem:[%s4937_s2 + $0xc8] sm:$0xff]  ;;  %v2498_v39 = vld [vmem:[%s4937_s2 + $0xd0] sm:$0xff] }
 0x1f0   :  { %3479 = vmatprep.subr.bf16.mxu1 %v3478_v40 }
 0x1f3   :  { %3481 = vmatpush3.bf16.msra.mxu1 %v3478_v40  ;;  %v3490_v40 = vpack.c.bf16 %v2352_v14, %v2351_v20  ;;  %v2499_v20 = vld [vmem:[%s4937_s2 + $0xd8] sm:$0xff]  ;;  %v2500_v14 = vld [vmem:[%s4937_s2 + $0xe0] sm:$0xff] }
 0x1f4   :  { %3483 = vmatprep.subr.bf16.mxu1 %v3482_v37 }
 0x2b9   :  { %v3373_v47 = vpop.f32.mrb[46].mxu1 }
 0x2ba   :  { %v2133_v24 = vadd.f32 %v3373_v47, %v2959_v42  ;;  %v2127_v16 = vpop.f32.mrb[47].mxu1  ;;  %v2354_v47 = vld [vmem:[%s4937_s2 + $0xc0] sm:$0xff] }
 0x2bb   :  { %v2128_v43 = vadd.f32 %v2959_v42, %v2127_v16  ;;  %v2353_v42 = vld [vmem:[%s4937_s2 + $0xb8] sm:$0xff]  ;;  %v2964_v16 = vld [vmem:[%s4937_s2 + $0x14c] ss:$0 sm:$0xff] }
 0x2bc   :  { %v2143_v28 = vsel %vm1619_vm2, %v2133_v24, 0.0 }
 0x2bd   :  { %v2144_v26 = vrot.slane %v2143_v28, 4  ;;  %v2136_v44 = vsel %vm1619_vm2, %v2128_v43, 0.0 }
 0x2be   :  { %v2137_v45 = vrot.slane %v2136_v44, 4 }
 0x2bf   :  { %v2145_v59 = vadd.f32 %v2144_v26, %v2143_v28 }
 0x2c0   :  { %v2138_v46 = vadd.f32 %v2137_v45, %v2136_v44 }
 0x2c1   :  { %v2146_v48 = vrot.slane %v2145_v59, 2 }
 0x2c2   :  { %v2139_v49 = vrot.slane %v2138_v46, 2 }
 0x2c3   :  { %v2147_v51 = vadd.f32 %v2146_v48, %v2145_v59 }
 0x2c4   :  { %v2140_v52 = vadd.f32 %v2139_v49, %v2138_v46 }
 0x2c5   :  { %v2148_v53 = vrot.slane %v2147_v51, 1 }
 0x2c6   :  { %v2141_v56 = vrot.slane %v2140_v52, 1 }
 0x2c7   :  { %v2149_v54 = vadd.f32 %v2148_v53, %v2147_v51 }
 0x2c8   :  { %v2142_v55 = vadd.f32 %v2141_v56, %v2140_v52 }
 0x2c9   :  { %v2152_v57 = vmul.f32 0.125, %v2149_v54 }
 0x2ca   :  { %v2151_v58 = vmul.f32 0.125, %v2142_v55 }
 0x2cb   :  { %v2154_v60 = vsub.f32 %v2133_v24, %v2152_v57  ;;  %v3494_v24 = vpack.c.bf16 %v2354_v47, %v2353_v42  ;;  %v2501_v42 = vld [vmem:[%s4937_s2 + $0xe8] sm:$0xff]  ;;  %v2502_v47 = vld [vmem:[%s4937_s2 + $0xf0] sm:$0xff] }
 0x2cc   :  { %v2153_v61 = vsub.f32 %v2128_v43, %v2151_v58 }
 0x2cd   :  { %v2156_v62 = vmul.f32 %v2154_v60, %v2154_v60 }
 0x2ce   :  { %v2155_v63 = vmul.f32 %v2153_v61, %v2153_v61 }
 0x2cf   :  { %v2164_v0 = vsel %vm1619_vm2, %v2156_v62, 0.0 }
 0x2d0   :  { %v2165_v1 = vrot.slane %v2164_v0, 4  ;;  %v2157_v2 = vsel %vm1619_vm2, %v2155_v63, 0.0 }
 0x2d1   :  { %v2158_v3 = vrot.slane %v2157_v2, 4 }
 0x2d2   :  { %v2166_v4 = vadd.f32 %v2165_v1, %v2164_v0 }
 0x2d3   :  { %v2159_v5 = vadd.f32 %v2158_v3, %v2157_v2 }
 0x2d4   :  { %v2167_v6 = vrot.slane %v2166_v4, 2 }
 0x2d5   :  { %v2160_v7 = vrot.slane %v2159_v5, 2 }
 0x2d6   :  { %v2168_v9 = vadd.f32 %v2167_v6, %v2166_v4 }
 0x2d7   :  { %v2161_v11 = vadd.f32 %v2160_v7, %v2159_v5 }
 0x2d8   :  { %v2169_v13 = vrot.slane %v2168_v9, 1 }
 0x2d9   :  { %v2162_v15 = vrot.slane %v2161_v11, 1 }
 0x2da   :  { %v2170_v17 = vadd.f32 %v2169_v13, %v2168_v9 }
 0x2db   :  { %v2163_v18 = vadd.f32 %v2162_v15, %v2161_v11 }
 0x2dc   :  { %v2172_v19 = vmul.f32 0.125, %v2170_v17 }
 0x2dd   :  { %v2171_v21 = vmul.f32 0.125, %v2163_v18 }
 0x2de   :  { %v2174_v22 = vadd.f32 1e-05, %v2172_v19 }
 0x2df   :  { %v2173_v23 = vadd.f32 1e-05, %v2171_v21 }
 0x2e0   :  { %3534 = vrsqrt.f32 %v2174_v22 }
 0x2e1   :  { %3536 = vrsqrt.f32 %v2173_v23 }
 0x2ea   :  { %v3535_v25 = vpop.eup %3534 }
 0x2eb   :  { %v3537_v27 = vpop.eup %3536  ;;  %v2178_v29 = vmul.f32 %v3535_v25, %v2154_v60 }
 0x2ec   :  { %v2177_v31 = vmul.f32 %v3537_v27, %v2153_v61 }
 0x2ed   :  { %v2185_v38 = vmul.f32 %v2962_v41, %v2178_v29 }
 0x2ee   :  { %v2184_v36 = vmul.f32 %v2962_v41, %v2177_v31 }
 0x2ef   :  { %v2192_v8 = vadd.f32 %v2963_v30, %v2185_v38 }
 0x2f0   :  { %v2191_v32 = vadd.f32 %v2963_v30, %v2184_v36  ;;  %v2967_v30 = vld [vmem:[%s4937_s2 + $0x14d] ss:$0 sm:$0xff]  ;;  %v2968_v36 = vld [vmem:[%s4937_s2 + $0x14e] ss:$0 sm:$0xff] }
 0x2f1   :  { %v2194_v10 = vmax.f32 %v2192_v8, 0.0 }
 0x2f2   :  { %v2193_v33 = vmax.f32 %v2191_v32, 0.0 }
 0x2f4   :  { %3390 = vmatprep.mubr.msk.f32.mxu1 %vm1619_vm2, %v2193_v33 }
 0x2f5   :  { %3391 = vmatmul.mubr.msk.f32.vlgmr.msra.gmra.mrb[48].mxu1 %vm1619_vm2, %v2194_v10 }
 0x2f6   :  { %3485 = vmatpush3.bf16.msra.mxu1 %v3482_v37 }
 0x2f7   :  { %3487 = vmatprep.subr.bf16.mxu1 %v3486_v12 }
 0x2fa   :  { %3489 = vmatpush3.bf16.msra.mxu1 %v3486_v12  ;;  %v3498_v12 = vpack.c.bf16 %v2498_v39, %v2497_v50 }
 0x2fb   :  { %3491 = vmatprep.subr.bf16.mxu1 %v3490_v40 }
 0x2fe   :  { %3493 = vmatpush3.bf16.msra.mxu1 %v3490_v40  ;;  %v3502_v40 = vpack.c.bf16 %v2500_v14, %v2499_v20 }
 0x2ff   :  { %3495 = vmatprep.subr.bf16.mxu1 %v3494_v24 }
 0x302   :  { %3497 = vmatpush3.bf16.msra.mxu1 %v3494_v24  ;;  %v3506_v24 = vpack.c.bf16 %v2502_v47, %v2501_v42  ;;  %v2650_v42 = vld [vmem:[%s4937_s2 + $0x110] sm:$0xff] }
 0x303   :  { %3499 = vmatprep.subr.bf16.mxu1 %v3498_v12 }
 0x3c8   :  { %v3392_v43 = vpop.f32.mrb[48].mxu1 }
 0x3c9   :  { %v2286_v28 = vadd.f32 %v3392_v43, %v2964_v16  ;;  %v2280_v26 = vpop.f32.mrb[49].mxu1  ;;  %v2504_v43 = vld [vmem:[%s4937_s2 + $0x100] sm:$0xff] }
 0x3ca   :  { %v2281_v44 = vadd.f32 %v2964_v16, %v2280_v26  ;;  %v2503_v16 = vld [vmem:[%s4937_s2 + $0xf8] sm:$0xff]  ;;  %v2969_v26 = vld [vmem:[%s4937_s2 + $0x14f] ss:$0 sm:$0xff] }
 0x3cb   :  { %v2296_v45 = vsel %vm1619_vm2, %v2286_v28, 0.0 }
 0x3cc   :  { %v2297_v59 = vrot.slane %v2296_v45, 4  ;;  %v2289_v46 = vsel %vm1619_vm2, %v2281_v44, 0.0 }
 0x3cd   :  { %v2290_v48 = vrot.slane %v2289_v46, 4 }
 0x3ce   :  { %v2298_v49 = vadd.f32 %v2297_v59, %v2296_v45 }
 0x3cf   :  { %v2291_v51 = vadd.f32 %v2290_v48, %v2289_v46 }
 0x3d0   :  { %v2299_v52 = vrot.slane %v2298_v49, 2 }
 0x3d1   :  { %v2292_v53 = vrot.slane %v2291_v51, 2 }
 0x3d2   :  { %v2300_v56 = vadd.f32 %v2299_v52, %v2298_v49 }
 0x3d3   :  { %v2293_v54 = vadd.f32 %v2292_v53, %v2291_v51 }
 0x3d4   :  { %v2301_v55 = vrot.slane %v2300_v56, 1 }
 0x3d5   :  { %v2294_v57 = vrot.slane %v2293_v54, 1 }
 0x3d6   :  { %v2302_v58 = vadd.f32 %v2301_v55, %v2300_v56 }
 0x3d7   :  { %v2295_v60 = vadd.f32 %v2294_v57, %v2293_v54 }
 0x3d8   :  { %v2304_v61 = vmul.f32 0.125, %v2302_v58 }
 0x3d9   :  { %v2303_v62 = vmul.f32 0.125, %v2295_v60 }
 0x3da   :  { %v2306_v63 = vsub.f32 %v2286_v28, %v2304_v61  ;;  %v3510_v28 = vpack.c.bf16 %v2504_v43, %v2503_v16  ;;  %v2652_v16 = vld [vmem:[%s4937_s2 + $0x120] sm:$0xff] }
 0x3db   :  { %v2305_v0 = vsub.f32 %v2281_v44, %v2303_v62 }
 0x3dc   :  { %v2308_v1 = vmul.f32 %v2306_v63, %v2306_v63 }
 0x3dd   :  { %v2307_v2 = vmul.f32 %v2305_v0, %v2305_v0 }
 0x3de   :  { %v2316_v3 = vsel %vm1619_vm2, %v2308_v1, 0.0 }
 0x3df   :  { %v2317_v4 = vrot.slane %v2316_v3, 4  ;;  %v2309_v5 = vsel %vm1619_vm2, %v2307_v2, 0.0 }
 0x3e0   :  { %v2310_v6 = vrot.slane %v2309_v5, 4 }
 0x3e1   :  { %v2318_v7 = vadd.f32 %v2317_v4, %v2316_v3 }
 0x3e2   :  { %v2311_v9 = vadd.f32 %v2310_v6, %v2309_v5 }
 0x3e3   :  { %v2319_v11 = vrot.slane %v2318_v7, 2 }
 0x3e4   :  { %v2312_v13 = vrot.slane %v2311_v9, 2 }
 0x3e5   :  { %v2320_v15 = vadd.f32 %v2319_v11, %v2318_v7 }
 0x3e6   :  { %v2313_v17 = vadd.f32 %v2312_v13, %v2311_v9 }
 0x3e7   :  { %v2321_v18 = vrot.slane %v2320_v15, 1 }
 0x3e8   :  { %v2314_v19 = vrot.slane %v2313_v17, 1 }
 0x3e9   :  { %v2322_v21 = vadd.f32 %v2321_v18, %v2320_v15 }
 0x3ea   :  { %v2315_v22 = vadd.f32 %v2314_v19, %v2313_v17 }
 0x3eb   :  { %v2324_v23 = vmul.f32 0.125, %v2322_v21 }
 0x3ec   :  { %v2323_v25 = vmul.f32 0.125, %v2315_v22 }
 0x3ed   :  { %v2326_v41 = vadd.f32 1e-05, %v2324_v23 }
 0x3ee   :  { %v2325_v27 = vadd.f32 1e-05, %v2323_v25 }
 0x3ef   :  { %3538 = vrsqrt.f32 %v2326_v41 }
 0x3f0   :  { %3540 = vrsqrt.f32 %v2325_v27 }
 0x3f9   :  { %v3539_v29 = vpop.eup %3538 }
 0x3fa   :  { %v3541_v31 = vpop.eup %3540  ;;  %v2330_v38 = vmul.f32 %v3539_v29, %v2306_v63 }
 0x3fb   :  { %v2329_v8 = vmul.f32 %v3541_v31, %v2305_v0 }
 0x3fc   :  { %v2337_v32 = vmul.f32 %v2967_v30, %v2330_v38 }
 0x3fd   :  { %v2336_v33 = vmul.f32 %v2967_v30, %v2329_v8 }
 0x3fe   :  { %v2344_v10 = vadd.f32 %v2968_v36, %v2337_v32 }
 0x3ff   :  { %v2343_v34 = vadd.f32 %v2968_v36, %v2336_v33  ;;  %v2972_v36 = vld [vmem:[%s4937_s2 + $0x150] ss:$0 sm:$0xff]  ;;  %v2973_v33 = vld [vmem:[%s4937_s2 + $0x151] ss:$0 sm:$0xff] }
 0x400   :  { %v2346_v37 = vmax.f32 %v2344_v10, 0.0 }
 0x401   :  { %v2345_v35 = vmax.f32 %v2343_v34, 0.0 }
 0x403   :  { %3409 = vmatprep.mubr.msk.f32.mxu1 %vm1619_vm2, %v2345_v35 }
 0x404   :  { %3410 = vmatmul.mubr.msk.f32.vlgmr.msra.gmra.mrb[50].mxu1 %vm1619_vm2, %v2346_v37 }
 0x405   :  { %3501 = vmatpush3.bf16.msra.mxu1 %v3498_v12 }
 0x406   :  { %3503 = vmatprep.subr.bf16.mxu1 %v3502_v40 }
 0x409   :  { %3505 = vmatpush3.bf16.msra.mxu1 %v3502_v40  ;;  %v2649_v40 = vld [vmem:[%s4937_s2 + $0x108] sm:$0xff] }
 0x40a   :  { %3507 = vmatprep.subr.bf16.mxu1 %v3506_v24  ;;  %v3514_v47 = vpack.c.bf16 %v2650_v42, %v2649_v40 }
 0x40d   :  { %3509 = vmatpush3.bf16.msra.mxu1 %v3506_v24  ;;  %v2651_v24 = vld [vmem:[%s4937_s2 + $0x118] sm:$0xff] }
 0x40e   :  { %3511 = vmatprep.subr.bf16.mxu1 %v3510_v28  ;;  %v3518_v43 = vpack.c.bf16 %v2652_v16, %v2651_v24 }
 0x411   :  { %3513 = vmatpush3.bf16.msra.mxu1 %v3510_v28  ;;  %v2653_v28 = vld [vmem:[%s4937_s2 + $0x128] sm:$0xff] }
 0x412   :  { %3515 = vmatprep.subr.bf16.mxu1 %v3514_v47 }
 0x4d7   :  { %v3411_v44 = vpop.f32.mrb[50].mxu1 }
 0x4d8   :  { %v2438_v45 = vadd.f32 %v3411_v44, %v2969_v26  ;;  %v2432_v59 = vpop.f32.mrb[51].mxu1 }
 0x4d9   :  { %v2433_v46 = vadd.f32 %v2969_v26, %v2432_v59  ;;  %v2654_v26 = vld [vmem:[%s4937_s2 + $0x130] sm:$0xff]  ;;  %v2656_v59 = vld [vmem:[%s4937_s2 + $0x140] sm:$0xff] }
 0x4da   :  { %v2448_v48 = vsel %vm1619_vm2, %v2438_v45, 0.0  ;;  %v3522_v44 = vpack.c.bf16 %v2654_v26, %v2653_v28 }
 0x4db   :  { %v2449_v49 = vrot.slane %v2448_v48, 4  ;;  %v2441_v51 = vsel %vm1619_vm2, %v2433_v46, 0.0 }
 0x4dc   :  { %v2442_v52 = vrot.slane %v2441_v51, 4 }
 0x4dd   :  { %v2450_v53 = vadd.f32 %v2449_v49, %v2448_v48  ;;  %v2974_v48 = vld [vmem:[%s4937_s2 + $0x152] ss:$0 sm:$0xff] }
 0x4de   :  { %v2443_v56 = vadd.f32 %v2442_v52, %v2441_v51 }
 0x4df   :  { %v2451_v54 = vrot.slane %v2450_v53, 2 }
 0x4e0   :  { %v2444_v55 = vrot.slane %v2443_v56, 2 }
 0x4e1   :  { %v2452_v57 = vadd.f32 %v2451_v54, %v2450_v53 }
 0x4e2   :  { %v2445_v58 = vadd.f32 %v2444_v55, %v2443_v56 }
 0x4e3   :  { %v2453_v60 = vrot.slane %v2452_v57, 1 }
 0x4e4   :  { %v2446_v61 = vrot.slane %v2445_v58, 1 }
 0x4e5   :  { %v2454_v62 = vadd.f32 %v2453_v60, %v2452_v57 }
 0x4e6   :  { %v2447_v63 = vadd.f32 %v2446_v61, %v2445_v58 }
 0x4e7   :  { %v2456_v0 = vmul.f32 0.125, %v2454_v62 }
 0x4e8   :  { %v2455_v1 = vmul.f32 0.125, %v2447_v63 }
 0x4e9   :  { %v2458_v2 = vsub.f32 %v2438_v45, %v2456_v0  ;;  %v2655_v45 = vld [vmem:[%s4937_s2 + $0x138] sm:$0xff] }
 0x4ea   :  { %v2457_v3 = vsub.f32 %v2433_v46, %v2455_v1  ;;  %v3526_v46 = vpack.c.bf16 %v2656_v59, %v2655_v45 }
 0x4eb   :  { %v2460_v4 = vmul.f32 %v2458_v2, %v2458_v2 }
 0x4ec   :  { %v2459_v5 = vmul.f32 %v2457_v3, %v2457_v3 }
 0x4ed   :  { %v2468_v6 = vsel %vm1619_vm2, %v2460_v4, 0.0 }
 0x4ee   :  { %v2469_v7 = vrot.slane %v2468_v6, 4  ;;  %v2461_v9 = vsel %vm1619_vm2, %v2459_v5, 0.0 }
 0x4ef   :  { %v2462_v11 = vrot.slane %v2461_v9, 4 }
 0x4f0   :  { %v2470_v13 = vadd.f32 %v2469_v7, %v2468_v6 }
 0x4f1   :  { %v2463_v15 = vadd.f32 %v2462_v11, %v2461_v9 }
 0x4f2   :  { %v2471_v17 = vrot.slane %v2470_v13, 2 }
 0x4f3   :  { %v2464_v18 = vrot.slane %v2463_v15, 2 }
 0x4f4   :  { %v2472_v19 = vadd.f32 %v2471_v17, %v2470_v13 }
 0x4f5   :  { %v2465_v21 = vadd.f32 %v2464_v18, %v2463_v15 }
 0x4f6   :  { %v2473_v22 = vrot.slane %v2472_v19, 1 }
 0x4f7   :  { %v2466_v23 = vrot.slane %v2465_v21, 1 }
 0x4f8   :  { %v2474_v25 = vadd.f32 %v2473_v22, %v2472_v19 }
 0x4f9   :  { %v2467_v41 = vadd.f32 %v2466_v23, %v2465_v21 }
 0x4fa   :  { %v2476_v27 = vmul.f32 0.125, %v2474_v25 }
 0x4fb   :  { %v2475_v29 = vmul.f32 0.125, %v2467_v41 }
 0x4fc   :  { %v2478_v30 = vadd.f32 1e-05, %v2476_v27 }
 0x4fd   :  { %v2477_v31 = vadd.f32 1e-05, %v2475_v29 }
 0x4fe   :  { %3542 = vrsqrt.f32 %v2478_v30 }
 0x4ff   :  { %3544 = vrsqrt.f32 %v2477_v31 }
 0x508   :  { %v3543_v38 = vpop.eup %3542 }
 0x509   :  { %v3545_v8 = vpop.eup %3544  ;;  %v2482_v32 = vmul.f32 %v3543_v38, %v2458_v2 }
 0x50a   :  { %v2481_v10 = vmul.f32 %v3545_v8, %v2457_v3 }
 0x50b   :  { %v2489_v34 = vmul.f32 %v2972_v36, %v2482_v32 }
 0x50c   :  { %v2488_v35 = vmul.f32 %v2972_v36, %v2481_v10 }
 0x50d   :  { %v4861_v37 = vadd.f32 %v2973_v33, %v2489_v34  ;;  %v2977_v34 = vld [vmem:[%s4937_s2 + $0x153] ss:$0 sm:$0xff] }
 0x50e   :  { %v4863_v50 = vadd.f32 %v2973_v33, %v2488_v35 }
 0x50f   :  { %v2775_v39 = vmul.f32 %v4861_v37, %v4861_v37 }
 0x510   :  { %3428 = vmatprep.mubr.msk.f32.mxu1 %vm1619_vm2, %v4863_v50  ;;  %v2776_v20 = vmul.f32 %v4863_v50, %v4863_v50 }
 0x511   :  { %3429 = vmatmul.mubr.msk.f32.vlgmr.msra.gmra.mrb[52].mxu1 %vm1619_vm2, %v4861_v37  ;;  %v2777_v12 = vsel %vm1619_vm2, %v2775_v39, 0.0 }
 0x512   :  { %2778 = vadd.xlane.f32.xlu1 %v2777_v12  ;;  %v2780_v14 = vsel %vm1619_vm2, %v2776_v20, 0.0  ;;  %3517 = vmatpush3.bf16.msra.mxu1 %v3514_v47  ;;  %v2978_v12 = vld [vmem:[%s4937_s2 + $0x154] ss:$0 sm:$0xff] }
 0x513   :  { %3519 = vmatprep.subr.bf16.mxu1 %v3518_v43 }
 0x516   :  { %2781 = vadd.xlane.f32.xlu1 %v2780_v14  ;;  %3521 = vmatpush3.bf16.msra.mxu1 %v3518_v43  ;;  %v2979_v43 = vld [vmem:[%s4937_s2 + $0x155] ss:$0 sm:$0xff]  ;;  %s3587_s2 = smov [#allocation3]  }
 0x517   :  { %3523 = vmatprep.subr.bf16.mxu1 %v3522_v44  ;;  %s2822_s16 = sshll.u32 %s3587_s2, 4  ;;  %s2823_s16 = int_to_ptr.vmem [resolvable:$true] %s2822_s16 }
 0x518   :  { %s3562_s17 = scalar_lea.vmem %s2823_s16, 16  ;;  %s3566_s18 = scalar_lea.vmem %s2823_s16, 32 }
 0x519   :  { %p3563_p0 = scmp.ne.s32.totalorder %s2823_s16, %s3562_s17  ;;  %p3567_p1 = scmp.lt.s32.totalorder %s2823_s16, %s2823_s16 }
 0x51a   :  { %3525 = vmatpush3.bf16.msra.mxu1 %v3522_v44  ;;  %p3568_p2 = scmp.lt.s32.totalorder %s3566_s18, %s3562_s17 }
 0x51b   :  { %3527 = vmatprep.subr.bf16.mxu1 %v3526_v46 }
 0x51c   :  { %p3569_p3 = por %p3568_p2, %p3567_p1 }
 0x51e   :  { %3529 = vmatpush3.bf16.msra.mxu1 %v3526_v46  ;;  %p3570_p4 = pnand %p3569_p3, %p3563_p0 }
 0x5e4   :  { %v3430_v49 = vpop.f32.mrb[52].mxu1 }
 0x5e5   :  { %v2588_v51 = vadd.f32 %v3430_v49, %v2974_v48  ;;  %v2582_v52 = vpop.f32.mrb[53].mxu1 }
 0x5e6   :  { %v2583_v53 = vadd.f32 %v2974_v48, %v2582_v52 }
 0x5e7   :  { %v2598_v56 = vsel %vm1619_vm2, %v2588_v51, 0.0 }
 0x5e8   :  { %v2599_v54 = vrot.slane %v2598_v56, 4  ;;  %v2591_v55 = vsel %vm1619_vm2, %v2583_v53, 0.0 }
 0x5e9   :  { %v2592_v57 = vrot.slane %v2591_v55, 4 }
 0x5ea   :  { %v2600_v58 = vadd.f32 %v2599_v54, %v2598_v56  ;;  %v2779_v54 = vpop.xlane.xlu1 %2778 }
 0x5eb   :  { %v2593_v60 = vadd.f32 %v2592_v57, %v2591_v55  ;;  %vm2785_vm10 = vcmp.eq.f32.partialorder %v2779_v54, inf  ;;  %vm2787_vm11 = vcmp.eq.f32.partialorder %v2779_v54, 0.0 }
 0x5ec   :  { %v2601_v61 = vrot.slane %v2600_v58, 2 }
 0x5ed   :  { %v2594_v62 = vrot.slane %v2593_v60, 2 }
 0x5ee   :  { %v2602_v63 = vadd.f32 %v2601_v61, %v2600_v58  ;;  %v2782_v55 = vpop.xlane.xlu1 %2781 }
 0x5ef   :  { %v2595_v0 = vadd.f32 %v2594_v62, %v2593_v60  ;;  %vm2792_vm12 = vcmp.eq.f32.partialorder %v2782_v55, inf  ;;  %vm2794_vm15 = vcmp.eq.f32.partialorder %v2782_v55, 0.0 }
 0x5f0   :  { %v2603_v1 = vrot.slane %v2602_v63, 1 }
 0x5f1   :  { %v2596_v2 = vrot.slane %v2595_v0, 1 }
 0x5f2   :  { %v2604_v3 = vadd.f32 %v2603_v1, %v2602_v63 }
 0x5f3   :  { %v2597_v4 = vadd.f32 %v2596_v2, %v2595_v0 }
 0x5f4   :  { %v2606_v5 = vmul.f32 0.125, %v2604_v3 }
 0x5f5   :  { %v2605_v6 = vmul.f32 0.125, %v2597_v4 }
 0x5f6   :  { %v2608_v7 = vsub.f32 %v2588_v51, %v2606_v5 }
 0x5f7   :  { %v2607_v9 = vsub.f32 %v2583_v53, %v2605_v6 }
 0x5f8   :  { %v2610_v11 = vmul.f32 %v2608_v7, %v2608_v7 }
 0x5f9   :  { %v2609_v13 = vmul.f32 %v2607_v9, %v2607_v9 }
 0x5fa   :  { %v2618_v15 = vsel %vm1619_vm2, %v2610_v11, 0.0 }
 0x5fb   :  { %v2619_v17 = vrot.slane %v2618_v15, 4  ;;  %v2611_v18 = vsel %vm1619_vm2, %v2609_v13, 0.0 }
 0x5fc   :  { %v2612_v19 = vrot.slane %v2611_v18, 4 }
 0x5fd   :  { %v2620_v21 = vadd.f32 %v2619_v17, %v2618_v15 }
 0x5fe   :  { %v2613_v22 = vadd.f32 %v2612_v19, %v2611_v18 }
 0x5ff   :  { %v2621_v23 = vrot.slane %v2620_v21, 2 }
 0x600   :  { %v2614_v25 = vrot.slane %v2613_v22, 2 }
 0x601   :  { %v2622_v41 = vadd.f32 %v2621_v23, %v2620_v21 }
 0x602   :  { %v2615_v27 = vadd.f32 %v2614_v25, %v2613_v22 }
 0x603   :  { %v2623_v29 = vrot.slane %v2622_v41, 1 }
 0x604   :  { %v2616_v30 = vrot.slane %v2615_v27, 1 }
 0x605   :  { %v2624_v31 = vadd.f32 %v2623_v29, %v2622_v41 }
 0x606   :  { %v2617_v38 = vadd.f32 %v2616_v30, %v2615_v27 }
 0x607   :  { %v2626_v36 = vmul.f32 0.125, %v2624_v31 }
 0x608   :  { %v2625_v8 = vmul.f32 0.125, %v2617_v38 }
 0x609   :  { %v2628_v32 = vadd.f32 1e-05, %v2626_v36 }
 0x60a   :  { %v2627_v33 = vadd.f32 1e-05, %v2625_v8 }
 0x60b   :  { %3546 = vrsqrt.f32 %v2628_v32 }
 0x60c   :  { %3548 = vrsqrt.f32 %v2627_v33 }
 0x60d   :  { %3550 = vrsqrt.f32 %v2779_v54 }
 0x60e   :  { %3552 = vrsqrt.f32 %v2782_v55 }
 0x615   :  { %v3547_v10 = vpop.eup %3546 }
 0x616   :  { %v3549_v35 = vpop.eup %3548  ;;  %v2632_v39 = vmul.f32 %v3547_v10, %v2608_v7  ;;  %v2795_v7 = vand.u32 2147483648, %v2782_v55 }
 0x617   :  { %v2631_v20 = vmul.f32 %v3549_v35, %v2607_v9  ;;  %v3551_v57 = vpop.eup %3550 }
 0x618   :  { %v2639_v14 = vmul.f32 %v2977_v34, %v2632_v39  ;;  %v2784_v60 = vmul.f32 %v3551_v57, %v2779_v54  ;;  %v3553_v61 = vpop.eup %3552 }
 0x619   :  { %v2638_v40 = vmul.f32 %v2977_v34, %v2631_v20  ;;  %v2791_v63 = vmul.f32 %v3553_v61, %v2782_v55 }
 0x61a   :  { %v2646_v42 = vadd.f32 %v2978_v12, %v2639_v14  ;;  %v2786_v62 = vsel %vm2785_vm10, %v2779_v54, %v2784_v60 }
 0x61b   :  { %v2645_v47 = vadd.f32 %v2978_v12, %v2638_v40  ;;  %v2793_v4 = vsel %vm2792_vm12, %v2782_v55, %v2791_v63 }
 0x61c   :  { %v2648_v16 = vmax.f32 %v2646_v42, 0.0  ;;  %v2796_v17 = vsel %vm2794_vm15, %v2795_v7, %v2793_v4 }
 0x61d   :  { %v2647_v24 = vmax.f32 %v2645_v47, 0.0  ;;  %v2798_v23 = vmax.f32 %v2796_v17, 1e-08 }
 0x61f   :  { %3447 = vmatprep.mubr.msk.f32.mxu1 %vm1619_vm2, %v2647_v24 }
 0x620   :  { %3448 = vmatmul.mubr.msk.f32.vlgmr.msra.gmra.mrb[54].mxu1 %vm1619_vm2, %v2648_v16 }
 0x6f3   :  { %v3449_v28 = vpop.f32.mrb[54].mxu1 }
 0x6f4   :  { %v2740_v26 = vadd.f32 %v3449_v28, %v2979_v43  ;;  %v2734_v44 = vpop.f32.mrb[55].mxu1 }
 0x6f5   :  { %v2735_v45 = vadd.f32 %v2979_v43, %v2734_v44 }
 0x6f6   :  { %v2744_v59 = vmul.f32 %v2740_v26, %v4863_v50  ;;  %v2752_v51 = vmul.f32 %v2740_v26, %v2740_v26 }
 0x6f7   :  { %v2751_v46 = vmul.f32 %v2735_v45, %v2735_v45  ;;  %v2743_v53 = vmul.f32 %v2735_v45, %v4861_v37  ;;  %v2788_v37 = vand.u32 2147483648, %v2779_v54 }
 0x6f8   :  { %v2748_v48 = vsel %vm1619_vm2, %v2744_v59, 0.0  ;;  %v2756_v52 = vsel %vm1619_vm2, %v2752_v51, 0.0 }
 0x6f9   :  { %2749 = vadd.xlane.f32.xlu1 %v2748_v48  ;;  %v2753_v49 = vsel %vm1619_vm2, %v2751_v46, 0.0  ;;  %v2745_v56 = vsel %vm1619_vm2, %v2743_v53, 0.0  ;;  %v2789_v2 = vsel %vm2787_vm11, %v2788_v37, %v2786_v62  ;;  %vm2814_vm2 = vcmask 0  }
 0x6fa   :  { %2754 = vadd.xlane.f32.xlu0 %v2753_v49  ;;  %v2797_v15 = vmax.f32 %v2789_v2, 1e-08 }
 0x6fe   :  { %2757 = vadd.xlane.f32.xlu0 %v2756_v52 }
 0x702   :  { %2746 = vadd.xlane.f32.xlu0 %v2745_v56 }
 0x786   :  { %v2750_v30 = vpop.xlane.xlu1 %2749 }
 0x787   :  { %v2755_v50 = vpop.xlane.xlu0 %2754 }
 0x788   :  { %3554 = vrsqrt.f32 %v2755_v50  ;;  %vm2761_vm13 = vcmp.eq.f32.partialorder %v2755_v50, inf  ;;  %v2764_v3 = vand.u32 2147483648, %v2755_v50  ;;  %vm2763_vm14 = vcmp.eq.f32.partialorder %v2755_v50, 0.0 }
 0x78b   :  { %v2758_v58 = vpop.xlane.xlu0 %2757 }
 0x78c   :  { %3556 = vrsqrt.f32 %v2758_v58  ;;  %vm2768_vm0 = vcmp.eq.f32.partialorder %v2758_v58, inf  ;;  %v2771_v18 = vand.u32 2147483648, %v2758_v58  ;;  %vm2770_vm1 = vcmp.eq.f32.partialorder %v2758_v58, 0.0 }
 0x78f   :  { %v2747_v31 = vpop.xlane.xlu0 %2746 }
 0x792   :  { %v3555_v0 = vpop.eup %3554 }
 0x793   :  { %v2760_v1 = vmul.f32 %v3555_v0, %v2755_v50 }
 0x795   :  { %v2762_v5 = vsel %vm2761_vm13, %v2755_v50, %v2760_v1 }
 0x796   :  { %v3557_v6 = vpop.eup %3556  ;;  %v2765_v9 = vsel %vm2763_vm14, %v2764_v3, %v2762_v5 }
 0x797   :  { %v2767_v11 = vmul.f32 %v3557_v6, %v2758_v58  ;;  %v2773_v13 = vmax.f32 %v2765_v9, 1e-08 }
 0x799   :  { %v2769_v19 = vsel %vm2768_vm0, %v2758_v58, %v2767_v11  ;;  %v2799_v21 = vmul.f32 %v2797_v15, %v2773_v13 }
 0x79a   :  { %v2772_v22 = vsel %vm2770_vm1, %v2771_v18, %v2769_v19 }
 0x79b   :  { %v2774_v25 = vmax.f32 %v2772_v22, 1e-08  ;;  %3558 = vrcp.f32 %v2799_v21 }
 0x79d   :  { %v2800_v41 = vmul.f32 %v2798_v23, %v2774_v25 }
 0x79f   :  { %3560 = vrcp.f32 %v2800_v41 }
 0x7a5   :  { %v3559_v27 = vpop.eup %3558 }
 0x7a6   :  { %v2803_v36 = vmul.f32 %v3559_v27, %v2747_v31 }
 0x7a9   :  { %v3561_v29 = vpop.eup %3560 }
 0x7aa   :  { %v2804_v38 = vmul.f32 %v3561_v29, %v2750_v30 }
 0x7ac   :  { %v2805_v8 = vadd.f32 %v2804_v38, %v2803_v36 }
 0x7ae   :  { %v2806_v32 = vrot.slane %v2805_v8, 4 }
 0x7b0   :  { %v2807_v33 = vadd.f32 %v2806_v32, %v2805_v8 }
 0x7b2   :  { %v2808_v10 = vrot.slane %v2807_v33, 2 }
 0x7b4   :  { %v2809_v34 = vadd.f32 %v2808_v10, %v2807_v33 }
 0x7b6   :  { %v2810_v35 = vrot.slane %v2809_v34, 1 }
 0x7b8   :  { %v2811_v39 = vadd.f32 %v2810_v35, %v2809_v34 }
 0x7ba   :  { %v2812_v12 = vsub.f32 0.0, %v2811_v39 }
 0x7bc   :  { %v2813_v20 = vmul.f32 0.0625, %v2812_v12 }
 0x7be   :  { %2815 = vst.msk [vmem:[#allocation3] sm:$0x1] %vm2814_vm2, %v2813_v20 }
 0x7bf   :  { %3573 = shalt.err (!%p3570_p4)
}
 0x7c0   :  { %s3574_s21 = scalar_lea.hbm %s4938_s3, 16 }
 0x7c1   :  { %p3575_p5 = scmp.ne.s32.totalorder %s4938_s3, %s3574_s21  ;;  %p3578_p6 = scmp.lt.u32.totalorder %s3574_s21, %s4938_s3 }
 0x7c3   :  { %p3580_p7 = pnand %p3578_p6, %p3575_p5 }
 0x7c5   :  { %3583 = shalt.err (!%p3580_p7)
}
 0x7c6   :  { %2825 = dma.vmem_to_hbm [thread:$0]  %s2823_s16, 16, %s4938_s3, [#allocation4]  }
 0x7c7   :  { %3584 = dma.done.wait [#allocation4], 16  }
 0x7c8   :  { %3585 = vsyncadd [#allocation4], 4294967280 }
 0x7c9   :  { %2829 = vsyncpa [#allocation4], 1 }

</bundles_post_ra>
